<compile_context>
chip_gen: v6e
topology: v6e:2x2x1
jax: 0.10.0
libtpu: 0.0.40
codegen_flags: <defaults>
</compile_context>

<pallas_src>
import jax
import jax.numpy as jnp
from jax.experimental import pallas as pl
from jax.experimental.pallas import tpu as pltpu


def conv1x1_kernel(w_ref, x_ref, o_ref):
    # w_ref: [Cout_blk, Cin] f32, x_ref: [Cin, HW] f32, o_ref: [Cout_blk, HW] f32.
    # Single MXU matmul with f32 accumulation; kernel is HBM/launch-bound so
    # MXU-shape tuning is not worth any complexity here.
    o_ref[...] = jnp.dot(
        w_ref[...], x_ref[...], preferred_element_type=jnp.float32
    ).astype(o_ref.dtype)


def _num_cout_blocks():
    """Use 2 Cout blocks on v7x (2 TensorCores/chip), else 1."""
    try:
        kind = jax.devices()[0].device_kind.lower()
    except Exception:
        kind = ""
    return 2 if "v7" in kind else 1


def conv2d_1x1(x_nchw, w_oihw):
    """1x1 conv, stride 1, no bias. x: [N, Cin, H, W], w: [Cout, Cin, 1, 1]."""
    N, Cin, H, W = x_nchw.shape
    Cout = w_oihw.shape[0]
    assert w_oihw.shape == (Cout, Cin, 1, 1)
    HW = H * W

    # Free reshapes only — no casts, no data movement in the wrapper.
    x_mat = x_nchw.reshape(N, Cin, HW)
    w_mat = w_oihw.reshape(Cout, Cin)

    n_cout_blocks = _num_cout_blocks()
    assert Cout % n_cout_blocks == 0
    cout_blk = Cout // n_cout_blocks  # 384 or 192; both divisible by 8 (sublane)

    out = pl.pallas_call(
        conv1x1_kernel,
        out_shape=jax.ShapeDtypeStruct((N, Cout, HW), x_nchw.dtype),
        grid_spec=pltpu.PrefetchScalarGridSpec(
            num_scalar_prefetch=0,
            grid=(N, n_cout_blocks),
            in_specs=[
                # Weight: one [cout_blk, Cin] slab per Cout block.
                pl.BlockSpec((cout_blk, Cin), lambda n, c: (c, 0)),
                # Activation: per-batch [Cin, HW] slab (leading dim squeezed),
                # same block across Cout steps (no re-DMA).
                pl.BlockSpec((None, Cin, HW), lambda n, c: (n, 0, 0)),
            ],
            out_specs=pl.BlockSpec((None, cout_blk, HW), lambda n, c: (n, c, 0)),
        ),
        compiler_params=pltpu.CompilerParams(
            dimension_semantics=("parallel", "parallel")
        ),
    )(w_mat, x_mat)

    # Free reshape back to NCHW.
    return out.reshape(N, Cout, H, W)


if __name__ == "__main__":
    key = jax.random.PRNGKey(0)
    kx, kw = jax.random.split(key)

    # Shapes implied by the module's forward: x843 = [1, 2304, 7, 7].
    x = jax.random.normal(kx, (1, 2304, 7, 7), dtype=jnp.float32)
    # Conv2d(2304, 384, kernel_size=1, bias=False) weight: [384, 2304, 1, 1].
    fan_in = 2304
    bound = 1.0 / (fan_in ** 0.5)
    w = jax.random.uniform(
        kw, (384, 2304, 1, 1), dtype=jnp.float32, minval=-bound, maxval=bound
    )

    y = conv2d_1x1(x, w)
    y = jax.block_until_ready(y)
    assert y.shape == (1, 384, 7, 7), y.shape
    assert y.dtype == jnp.float32, y.dtype

    # Correctness: compare against an f32 XLA reference (both run at the TPU's
    # default matmul precision, so the tolerance covers only pass-rounding noise).
    ref = jnp.einsum(
        "nchw,oc->nohw", x, w.reshape(384, 2304), preferred_element_type=jnp.float32
    )
    max_err = float(jnp.max(jnp.abs(y - ref)))
    assert jnp.allclose(y, ref, atol=1e-2, rtol=1e-2), max_err

    print("KERNEL_OK")
</pallas_src>

<mosaic_0001>
module attributes {stable_mosaic.version = 11 : i64} {
  func.func @conv1x1_kernel(%arg0: i32, %arg1: i32, %arg2: memref<384x2304xf32, #tpu.memory_space<vmem>>, %arg3: memref<1x2304x49xf32, #tpu.memory_space<vmem>>, %arg4: memref<1x384x49xf32, #tpu.memory_space<vmem>>) attributes {dimension_semantics = [#tpu.dimension_semantics<parallel>, #tpu.dimension_semantics<parallel>], iteration_bounds = array<i64: 1, 1>, scalar_prefetch = 0 : i64, scratch_operands = 0 : i64, tpu.core_type = #tpu.core_type<tc>, window_params = [{transform_indices = @transform_0, window_bounds = array<i64: 384, 2304>}, {transform_indices = @transform_1, window_bounds = array<i64: 1, 2304, 49>}, {transform_indices = @transform_2, window_bounds = array<i64: 1, 384, 49>}]} {
    %c0 = arith.constant 0 : index
    %c0_0 = arith.constant 0 : index
    %0 = vector.load %arg2[%c0, %c0_0] : memref<384x2304xf32, #tpu.memory_space<vmem>>, vector<384x2304xf32>
    %c0_1 = arith.constant 0 : index
    %c0_2 = arith.constant 0 : index
    %c0_3 = arith.constant 0 : index
    %1 = vector.load %arg3[%c0_1, %c0_2, %c0_3] : memref<1x2304x49xf32, #tpu.memory_space<vmem>>, vector<1x2304x49xf32>
    %2 = vector.shape_cast %1 : vector<1x2304x49xf32> to vector<2304x49xf32>
    %cst = arith.constant dense<0.000000e+00> : vector<384x49xf32>
    %3 = tpu.matmul %0, %2, %cst {dimension_numbers = #tpu.dot_dimension_numbers<[1], [0], [0], [1], [0, 0, 1, 1], [], []>} : vector<384x2304xf32>, vector<2304x49xf32>, vector<384x49xf32> -> vector<384x49xf32>
    %c0_4 = arith.constant 0 : index
    %c0_5 = arith.constant 0 : index
    %c0_6 = arith.constant 0 : index
    %4 = vector.load %arg4[%c0_4, %c0_5, %c0_6] : memref<1x384x49xf32, #tpu.memory_space<vmem>>, vector<1x384x49xf32>
    %5 = vector.shape_cast %4 : vector<1x384x49xf32> to vector<384x49xf32>
    %6 = vector.shape_cast %3 : vector<384x49xf32> to vector<1x384x49xf32>
    tpu.vector_store %arg4[%c0_4, %c0_5, %c0_6], %6 {strides = array<i32>} : memref<1x384x49xf32, #tpu.memory_space<vmem>>, vector<1x384x49xf32>,
    return
  }
  func.func @transform_0(%arg0: i32, %arg1: i32) -> (i32, i32) {
    %c0_i32 = arith.constant 0 : i32
    %c0_i32_0 = arith.constant 0 : i32
    return %arg1, %c0_i32 : i32, i32
  }
  func.func @transform_1(%arg0: i32, %arg1: i32) -> (i32, i32, i32) {
    %c0_i32 = arith.constant 0 : i32
    %c0_i32_0 = arith.constant 0 : i32
    %c0_i32_1 = arith.constant 0 : i32
    return %arg0, %c0_i32, %c0_i32_0 : i32, i32, i32
  }
  func.func @transform_2(%arg0: i32, %arg1: i32) -> (i32, i32, i32) {
    %c0_i32 = arith.constant 0 : i32
    %c0_i32_0 = arith.constant 0 : i32
    return %arg0, %arg1, %c0_i32 : i32, i32, i32
  }
}

</mosaic_0001>

<bundles_post_ra>
// kernel: tpu_custom_call.1
= control target key start
LH: loop header
LB: loop body
LE: loop exit
PB: predicated region body
PF: predicated region fallthrough
CT: control target
= control target key end

     0   :  { %7 = vsyncpa [#allocation3], 0  ;;  %s4066_s9 = smov [#allocation2]   ;;  %s6040_s0 = inlined_call_operand.hbm [shape: f32[384,2304], index: 0, kind: input, shape index: {}]   ;;  %s6041_s1 = inlined_call_operand.vmem [shape: f32[1,2304,49], index: 1, kind: input, shape index: {}]   ;;  %s6042_s2 = inlined_call_operand.vmem [shape: f32[1,384,49], index: 2, kind: output, shape index: {}]  }
   0x1   :  { %s13_s10 = sshll.u32 %s4066_s9, 4  ;;  %s14_s10 = int_to_ptr.vmem [resolvable:$true] %s13_s10 }
   0x2   :  { %s4052_s11 = scalar_lea.vmem %s14_s10, 110592  ;;  %p4057_p1 = scmp.lt.s32.totalorder %s14_s10, %s14_s10 }
   0x3   :  { %p4053_p0 = scmp.ne.s32.totalorder %s14_s10, %s4052_s11  ;;  %p4058_p2 = scmp.lt.s32.totalorder %s4052_s11, %s4052_s11 }
   0x5   :  { %p4059_p3 = por %p4058_p2, %p4057_p1 }
   0x7   :  { %p4060_p4 = pnand %p4059_p3, %p4053_p0 }
   0x9   :  { %4063 = shalt.err (!%p4060_p4)
}
   0xa   :  { %s4067_s12 = smov 2304   ;;  %s4068_s13 = smov 144  }
   0xb   :  { %19 = dma.hbm_to_vmem [thread:$0]  %s6040_s0, 110592, %s14_s10, [#allocation3], %s4067_s12, %s4067_s12, %s4068_s13  }
   0xc   :  { %4064 = dma.done.wait [#allocation3], 110592  }
   0xd   :  { %4065 = vsyncadd [#allocation3], 4294856704  ;;  %v6043_v0 = vmov 0.0   ;;  %v904_v1 = vld [vmem:[%s6041_s1 + $0x78] sm:$0xff]  ;;  %v903_v2 = vld [vmem:[%s6041_s1 + $0x70] sm:$0xff]  ;;  %vm3922_vm0 = vcmask 400384  }
   0xe   :  { %3976 = vmatprep.subr.mxu1 %v6043_v0  ;;  %1177 = vmatprep.subr.mxu0 %v6043_v0  ;;  %v902_v3 = vld [vmem:[%s6041_s1 + $0x68] sm:$0xff]  ;;  %v901_v4 = vld [vmem:[%s6041_s1 + $0x60] sm:$0xff]  ;;  %v900_v5 = vld [vmem:[%s6041_s1 + $0x58] sm:$0xff] }
   0xf   :  { %4008 = vmatpush1.msra.mxu1 %v904_v1  ;;  %1178 = vmatpush1.msra.mxu0 %v904_v1  ;;  %v899_v6 = vld [vmem:[%s6041_s1 + $0x50] sm:$0xff]  ;;  %v898_v7 = vld [vmem:[%s6041_s1 + $0x48] sm:$0xff]  ;;  %v897_v8 = vld [vmem:[%s6041_s1 + $0x40] sm:$0xff] }
  0x10   :  { %3977 = vmatprep.subr.mxu1 %v6043_v0  ;;  %1179 = vmatprep.subr.mxu0 %v6043_v0  ;;  %v896_v9 = vld [vmem:[%s6041_s1 + $0x38] sm:$0xff]  ;;  %v895_v10 = vld [vmem:[%s6041_s1 + $0x30] sm:$0xff]  ;;  %v894_v11 = vld [vmem:[%s6041_s1 + $0x28] sm:$0xff] }
  0x11   :  { %4009 = vmatpush1.msra.mxu1 %v903_v2  ;;  %1180 = vmatpush1.msra.mxu0 %v903_v2  ;;  %v893_v12 = vld [vmem:[%s6041_s1 + $0x20] sm:$0xff]  ;;  %v892_v13 = vld [vmem:[%s6041_s1 + $0x18] sm:$0xff]  ;;  %v891_v14 = vld [vmem:[%s6041_s1 + $0x10] sm:$0xff] }
  0x12   :  { %3978 = vmatprep.subr.mxu1 %v6043_v0  ;;  %1181 = vmatprep.subr.mxu0 %v6043_v0  ;;  %v890_v15 = vld [vmem:[%s6041_s1 + $0x8] sm:$0xff]  ;;  %v889_v16 = vld [vmem:[%s6041_s1] sm:$0xff]  ;;  %v920_v17 = vld [vmem:[%s6041_s1 + $0xf8] sm:$0xff] }
  0x13   :  { %4010 = vmatpush1.msra.mxu1 %v902_v3  ;;  %1182 = vmatpush1.msra.mxu0 %v902_v3  ;;  %v919_v18 = vld [vmem:[%s6041_s1 + $0xf0] sm:$0xff]  ;;  %v918_v19 = vld [vmem:[%s6041_s1 + $0xe8] sm:$0xff]  ;;  %v917_v20 = vld [vmem:[%s6041_s1 + $0xe0] sm:$0xff] }
  0x14   :  { %3979 = vmatprep.subr.mxu1 %v6043_v0  ;;  %1183 = vmatprep.subr.mxu0 %v6043_v0  ;;  %v916_v21 = vld [vmem:[%s6041_s1 + $0xd8] sm:$0xff]  ;;  %v915_v22 = vld [vmem:[%s6041_s1 + $0xd0] sm:$0xff]  ;;  %v914_v23 = vld [vmem:[%s6041_s1 + $0xc8] sm:$0xff] }
  0x15   :  { %4011 = vmatpush1.msra.mxu1 %v901_v4  ;;  %1184 = vmatpush1.msra.mxu0 %v901_v4  ;;  %v913_v24 = vld [vmem:[%s6041_s1 + $0xc0] sm:$0xff]  ;;  %v912_v25 = vld [vmem:[%s6041_s1 + $0xb8] sm:$0xff]  ;;  %v911_v26 = vld [vmem:[%s6041_s1 + $0xb0] sm:$0xff] }
  0x16   :  { %3980 = vmatprep.subr.mxu1 %v6043_v0  ;;  %1185 = vmatprep.subr.mxu0 %v6043_v0  ;;  %v910_v27 = vld [vmem:[%s6041_s1 + $0xa8] sm:$0xff]  ;;  %v909_v28 = vld [vmem:[%s6041_s1 + $0xa0] sm:$0xff]  ;;  %v908_v29 = vld [vmem:[%s6041_s1 + $0x98] sm:$0xff] }
  0x17   :  { %4012 = vmatpush1.msra.mxu1 %v900_v5  ;;  %1186 = vmatpush1.msra.mxu0 %v900_v5  ;;  %v907_v30 = vld [vmem:[%s6041_s1 + $0x90] sm:$0xff]  ;;  %v906_v31 = vld [vmem:[%s6041_s1 + $0x88] sm:$0xff]  ;;  %v905_v32 = vld [vmem:[%s6041_s1 + $0x80] sm:$0xff] }
  0x18   :  { %3981 = vmatprep.subr.mxu1 %v6043_v0  ;;  %1187 = vmatprep.subr.mxu0 %v6043_v0  ;;  %v458_v33 = vld [vmem:[#allocation2 + $0xd88] sm:$0xff]  ;;  %v457_v35 = vld [vmem:[#allocation2 + $0xd80] sm:$0xff]  ;;  %v936_v37 = vld [vmem:[%s6041_s1 + $0x178] sm:$0xff] }
  0x19   :  { %4013 = vmatpush1.msra.mxu1 %v899_v6  ;;  %1188 = vmatpush1.msra.mxu0 %v899_v6  ;;  %v26_v34 = vld [vmem:[#allocation2 + $0x8] sm:$0xff]  ;;  %v25_v36 = vld [vmem:[#allocation2] sm:$0xff]  ;;  %v476_v38 = vld [vmem:[#allocation2 + $0xe18] sm:$0xff] }
  0x1a   :  { %3982 = vmatprep.subr.mxu1 %v6043_v0  ;;  %1189 = vmatprep.subr.mxu0 %v6043_v0  ;;  %v968_v39 = vld [vmem:[%s6041_s1 + $0x278] sm:$0xff]  ;;  %v475_v41 = vld [vmem:[#allocation2 + $0xe10] sm:$0xff]  ;;  %v494_v45 = vld [vmem:[#allocation2 + $0xea8] sm:$0xff] }
  0x1b   :  { %4014 = vmatpush1.msra.mxu1 %v898_v7  ;;  %1190 = vmatpush1.msra.mxu0 %v898_v7  ;;  %v44_v40 = vld [vmem:[#allocation2 + $0x98] sm:$0xff]  ;;  %v935_v42 = vld [vmem:[%s6041_s1 + $0x170] sm:$0xff]  ;;  %v934_v46 = vld [vmem:[%s6041_s1 + $0x168] sm:$0xff] }
  0x1c   :  { %3983 = vmatprep.subr.mxu1 %v6043_v0  ;;  %1191 = vmatprep.subr.mxu0 %v6043_v0  ;;  %v43_v43 = vld [vmem:[#allocation2 + $0x90] sm:$0xff]  ;;  %v62_v47 = vld [vmem:[#allocation2 + $0x128] sm:$0xff]  ;;  %v493_v48 = vld [vmem:[#allocation2 + $0xea0] sm:$0xff] }
  0x1d   :  { %4015 = vmatpush1.msra.mxu1 %v897_v8  ;;  %1192 = vmatpush1.msra.mxu0 %v897_v8  ;;  %v967_v44 = vld [vmem:[%s6041_s1 + $0x270] sm:$0xff]  ;;  %v61_v49 = vld [vmem:[#allocation2 + $0x120] sm:$0xff]  ;;  %v966_v50 = vld [vmem:[%s6041_s1 + $0x268] sm:$0xff] }
  0x1e   :  { %3984 = vmatprep.subr.mxu1 %v6043_v0  ;;  %1193 = vmatprep.subr.mxu0 %v6043_v0  ;;  %v933_v51 = vld [vmem:[%s6041_s1 + $0x160] sm:$0xff]  ;;  %v512_v52 = vld [vmem:[#allocation2 + $0xf38] sm:$0xff]  ;;  %v511_v54 = vld [vmem:[#allocation2 + $0xf30] sm:$0xff] }
  0x1f   :  { %4016 = vmatpush1.msra.mxu1 %v896_v9  ;;  %1194 = vmatpush1.msra.mxu0 %v896_v9  ;;  %v80_v53 = vld [vmem:[#allocation2 + $0x1b8] sm:$0xff]  ;;  %v965_v55 = vld [vmem:[%s6041_s1 + $0x260] sm:$0xff]  ;;  %v79_v56 = vld [vmem:[#allocation2 + $0x1b0] sm:$0xff] }
  0x20   :  { %3985 = vmatprep.subr.mxu1 %v6043_v0  ;;  %1195 = vmatprep.subr.mxu0 %v6043_v0  ;;  %v932_v57 = vld [vmem:[%s6041_s1 + $0x158] sm:$0xff]  ;;  %v530_v58 = vld [vmem:[#allocation2 + $0xfc8] sm:$0xff]  ;;  %v529_v61 = vld [vmem:[#allocation2 + $0xfc0] sm:$0xff] }
  0x21   :  { %4017 = vmatpush1.msra.mxu1 %v895_v10  ;;  %1196 = vmatpush1.msra.mxu0 %v895_v10  ;;  %v964_v59 = vld [vmem:[%s6041_s1 + $0x258] sm:$0xff]  ;;  %v98_v60 = vld [vmem:[#allocation2 + $0x248] sm:$0xff]  ;;  %v931_v62 = vld [vmem:[%s6041_s1 + $0x150] sm:$0xff] }
  0x22   :  { %3986 = vmatprep.subr.mxu1 %v6043_v0  ;;  %1197 = vmatprep.subr.mxu0 %v6043_v0  ;;  %v97_v63 = vld [vmem:[#allocation2 + $0x240] sm:$0xff]  ;;  %v963_v1 = vld [vmem:[%s6041_s1 + $0x250] sm:$0xff]  ;;  %v548_v2 = vld [vmem:[#allocation2 + $0x1058] sm:$0xff] }
  0x23   :  { %4018 = vmatpush1.msra.mxu1 %v894_v11  ;;  %1198 = vmatpush1.msra.mxu0 %v894_v11  ;;  %v930_v3 = vld [vmem:[%s6041_s1 + $0x148] sm:$0xff]  ;;  %v116_v4 = vld [vmem:[#allocation2 + $0x2d8] sm:$0xff]  ;;  %v547_v5 = vld [vmem:[#allocation2 + $0x1050] sm:$0xff] }
  0x24   :  { %3987 = vmatprep.subr.mxu1 %v6043_v0  ;;  %1199 = vmatprep.subr.mxu0 %v6043_v0  ;;  %v115_v6 = vld [vmem:[#allocation2 + $0x2d0] sm:$0xff]  ;;  %v962_v7 = vld [vmem:[%s6041_s1 + $0x248] sm:$0xff]  ;;  %v929_v8 = vld [vmem:[%s6041_s1 + $0x140] sm:$0xff] }
  0x25   :  { %4019 = vmatpush1.msra.mxu1 %v893_v12  ;;  %1200 = vmatpush1.msra.mxu0 %v893_v12  ;;  %v566_v9 = vld [vmem:[#allocation2 + $0x10e8] sm:$0xff]  ;;  %v565_v11 = vld [vmem:[#allocation2 + $0x10e0] sm:$0xff] }
  0x26   :  { %3988 = vmatprep.subr.mxu1 %v6043_v0  ;;  %1201 = vmatprep.subr.mxu0 %v6043_v0  ;;  %v134_v10 = vld [vmem:[#allocation2 + $0x368] sm:$0xff]  ;;  %v961_v12 = vld [vmem:[%s6041_s1 + $0x240] sm:$0xff] }
  0x27   :  { %4020 = vmatpush1.msra.mxu1 %v892_v13  ;;  %1202 = vmatpush1.msra.mxu0 %v892_v13  ;;  %v133_v13 = vld [vmem:[#allocation2 + $0x360] sm:$0xff] }
  0x28   :  { %3989 = vmatprep.subr.mxu1 %v6043_v0  ;;  %1203 = vmatprep.subr.mxu0 %v6043_v0 }
  0x29   :  { %4021 = vmatpush1.msra.mxu1 %v891_v14  ;;  %1204 = vmatpush1.msra.mxu0 %v891_v14  ;;  %v928_v14 = vld [vmem:[%s6041_s1 + $0x138] sm:$0xff] }
  0x2a   :  { %3990 = vmatprep.subr.mxu1 %v6043_v0  ;;  %1205 = vmatprep.subr.mxu0 %v6043_v0 }
  0x2b   :  { %4022 = vmatpush1.msra.mxu1 %v890_v15  ;;  %1206 = vmatpush1.msra.mxu0 %v890_v15  ;;  %v584_v15 = vld [vmem:[#allocation2 + $0x1178] sm:$0xff] }
  0x2c   :  { %3991 = vmatprep.subr.mxu1 %v6043_v0  ;;  %1207 = vmatprep.subr.mxu0 %v6043_v0 }
  0x2d   :  { %4023 = vmatpush1.msra.mxu1 %v889_v16  ;;  %1208 = vmatpush1.msra.mxu0 %v889_v16  ;;  %v960_v16 = vld [vmem:[%s6041_s1 + $0x238] sm:$0xff] }
  0x2e   :  { %3992 = vmatprep.subr.mxu1 %v6043_v0  ;;  %1209 = vmatprep.subr.mxu0 %v6043_v0 }
  0x2f   :  { %4024 = vmatpush2.msra.mxu1 %v920_v17  ;;  %1210 = vmatpush2.msra.mxu0 %v920_v17  ;;  %v152_v17 = vld [vmem:[#allocation2 + $0x3f8] sm:$0xff] }
  0x30   :  { %3993 = vmatprep.subr.mxu1 %v6043_v0  ;;  %1211 = vmatprep.subr.mxu0 %v6043_v0 }
  0x31   :  { %4025 = vmatpush2.msra.mxu1 %v919_v18  ;;  %1212 = vmatpush2.msra.mxu0 %v919_v18  ;;  %v583_v18 = vld [vmem:[#allocation2 + $0x1170] sm:$0xff] }
  0x32   :  { %3994 = vmatprep.subr.mxu1 %v6043_v0  ;;  %1213 = vmatprep.subr.mxu0 %v6043_v0 }
  0x33   :  { %4026 = vmatpush2.msra.mxu1 %v918_v19  ;;  %1214 = vmatpush2.msra.mxu0 %v918_v19  ;;  %v927_v19 = vld [vmem:[%s6041_s1 + $0x130] sm:$0xff] }
  0x34   :  { %3995 = vmatprep.subr.mxu1 %v6043_v0  ;;  %1215 = vmatprep.subr.mxu0 %v6043_v0 }
  0x35   :  { %4027 = vmatpush2.msra.mxu1 %v917_v20  ;;  %1216 = vmatpush2.msra.mxu0 %v917_v20  ;;  %v151_v20 = vld [vmem:[#allocation2 + $0x3f0] sm:$0xff] }
  0x36   :  { %3996 = vmatprep.subr.mxu1 %v6043_v0  ;;  %1217 = vmatprep.subr.mxu0 %v6043_v0 }
  0x37   :  { %4028 = vmatpush2.msra.mxu1 %v916_v21  ;;  %1218 = vmatpush2.msra.mxu0 %v916_v21  ;;  %v959_v21 = vld [vmem:[%s6041_s1 + $0x230] sm:$0xff] }
  0x38   :  { %3997 = vmatprep.subr.mxu1 %v6043_v0  ;;  %1219 = vmatprep.subr.mxu0 %v6043_v0 }
  0x39   :  { %4029 = vmatpush2.msra.mxu1 %v915_v22  ;;  %1220 = vmatpush2.msra.mxu0 %v915_v22  ;;  %v602_v22 = vld [vmem:[#allocation2 + $0x1208] sm:$0xff] }
  0x3a   :  { %3998 = vmatprep.subr.mxu1 %v6043_v0  ;;  %1221 = vmatprep.subr.mxu0 %v6043_v0 }
  0x3b   :  { %4030 = vmatpush2.msra.mxu1 %v914_v23  ;;  %1222 = vmatpush2.msra.mxu0 %v914_v23  ;;  %v926_v23 = vld [vmem:[%s6041_s1 + $0x128] sm:$0xff] }
  0x3c   :  { %3999 = vmatprep.subr.mxu1 %v6043_v0  ;;  %1223 = vmatprep.subr.mxu0 %v6043_v0 }
  0x3d   :  { %4031 = vmatpush2.msra.mxu1 %v913_v24  ;;  %1224 = vmatpush2.msra.mxu0 %v913_v24  ;;  %v170_v24 = vld [vmem:[#allocation2 + $0x488] sm:$0xff] }
  0x3e   :  { %4000 = vmatprep.subr.mxu1 %v6043_v0  ;;  %1225 = vmatprep.subr.mxu0 %v6043_v0 }
  0x3f   :  { %4032 = vmatpush2.msra.mxu1 %v912_v25  ;;  %1226 = vmatpush2.msra.mxu0 %v912_v25  ;;  %v601_v25 = vld [vmem:[#allocation2 + $0x1200] sm:$0xff] }
  0x40   :  { %4001 = vmatprep.subr.mxu1 %v6043_v0  ;;  %1227 = vmatprep.subr.mxu0 %v6043_v0 }
  0x41   :  { %4033 = vmatpush2.msra.mxu1 %v911_v26  ;;  %1228 = vmatpush2.msra.mxu0 %v911_v26  ;;  %v169_v26 = vld [vmem:[#allocation2 + $0x480] sm:$0xff] }
  0x42   :  { %4002 = vmatprep.subr.mxu1 %v6043_v0  ;;  %1229 = vmatprep.subr.mxu0 %v6043_v0 }
  0x43   :  { %4034 = vmatpush2.msra.mxu1 %v910_v27  ;;  %1230 = vmatpush2.msra.mxu0 %v910_v27  ;;  %v958_v27 = vld [vmem:[%s6041_s1 + $0x228] sm:$0xff] }
  0x44   :  { %4003 = vmatprep.subr.mxu1 %v6043_v0  ;;  %1231 = vmatprep.subr.mxu0 %v6043_v0 }
  0x45   :  { %4035 = vmatpush2.msra.mxu1 %v909_v28  ;;  %1232 = vmatpush2.msra.mxu0 %v909_v28  ;;  %v925_v28 = vld [vmem:[%s6041_s1 + $0x120] sm:$0xff] }
  0x46   :  { %4004 = vmatprep.subr.mxu1 %v6043_v0  ;;  %1233 = vmatprep.subr.mxu0 %v6043_v0 }
  0x47   :  { %4036 = vmatpush2.msra.mxu1 %v908_v29  ;;  %1234 = vmatpush2.msra.mxu0 %v908_v29  ;;  %v620_v29 = vld [vmem:[#allocation2 + $0x1298] sm:$0xff] }
  0x48   :  { %4005 = vmatprep.subr.mxu1 %v6043_v0  ;;  %1235 = vmatprep.subr.mxu0 %v6043_v0 }
  0x49   :  { %4037 = vmatpush2.msra.mxu1 %v907_v30  ;;  %1236 = vmatpush2.msra.mxu0 %v907_v30  ;;  %v188_v30 = vld [vmem:[#allocation2 + $0x518] sm:$0xff] }
  0x4a   :  { %4006 = vmatprep.subr.mxu1 %v6043_v0  ;;  %1237 = vmatprep.subr.mxu0 %v6043_v0 }
  0x4b   :  { %4038 = vmatpush2.msra.mxu1 %v906_v31  ;;  %1238 = vmatpush2.msra.mxu0 %v906_v31  ;;  %v619_v31 = vld [vmem:[#allocation2 + $0x1290] sm:$0xff] }
  0x4c   :  { %4007 = vmatprep.subr.mxu1 %v6043_v0  ;;  %1239 = vmatprep.subr.mxu0 %v6043_v0 }
  0x4d   :  { %4039 = vmatpush2.msra.mxu1 %v905_v32  ;;  %1361 = vmatprep.mubr.f32.mxu1 %v458_v33  ;;  %v187_v33 = vld [vmem:[#allocation2 + $0x510] sm:$0xff] }
  0x4e   :  { %1240 = vmatpush2.msra.mxu0 %v905_v32  ;;  %1241 = vmatprep.mubr.f32.mxu0 %v26_v34  ;;  %v957_v32 = vld [vmem:[%s6041_s1 + $0x220] sm:$0xff]  ;;  %v924_v34 = vld [vmem:[%s6041_s1 + $0x118] sm:$0xff] }
  0x4f   :  { %1362 = vmatmul.mubr.f32.vlgmr.msra.gmra.mxu1 %v457_v35  ;;  %1482 = vmatprep.subr.mxu1 %v6043_v0  ;;  %v638_v35 = vld [vmem:[#allocation2 + $0x1328] sm:$0xff] }
  0x50   :  { %1242 = vmatmul.mubr.f32.vlgmr.msra.gmra.mxu0 %v25_v36  ;;  %1483 = vmatpush1.msra.mxu1 %v936_v37  ;;  %v956_v36 = vld [vmem:[%s6041_s1 + $0x218] sm:$0xff]  ;;  %v206_v37 = vld [vmem:[#allocation2 + $0x5a8] sm:$0xff] }
  0x51   :  { %1787 = vmatprep.subr.mxu0 %v6043_v0  ;;  %1366 = vmatprep.mubr.f32.mxu1 %v476_v38  ;;  %v637_v38 = vld [vmem:[#allocation2 + $0x1320] sm:$0xff] }
  0x52   :  { %1484 = vmatprep.subr.mxu1 %v6043_v0  ;;  %1788 = vmatpush1.msra.mxu0 %v968_v39  ;;  %v923_v39 = vld [vmem:[%s6041_s1 + $0x110] sm:$0xff] }
  0x53   :  { %1246 = vmatprep.mubr.f32.mxu0 %v44_v40  ;;  %1367 = vmatmul.mubr.f32.gmra.mxu1 %v475_v41  ;;  %v205_v40 = vld [vmem:[#allocation2 + $0x5a0] sm:$0xff]  ;;  %v955_v41 = vld [vmem:[%s6041_s1 + $0x210] sm:$0xff] }
  0x54   :  { %1485 = vmatpush1.msra.mxu1 %v935_v42  ;;  %1247 = vmatmul.mubr.f32.gmra.mxu0 %v43_v43  ;;  %v656_v42 = vld [vmem:[#allocation2 + $0x13b8] sm:$0xff]  ;;  %v922_v43 = vld [vmem:[%s6041_s1 + $0x108] sm:$0xff] }
  0x55   :  { %1789 = vmatprep.subr.mxu0 %v6043_v0  ;;  %1486 = vmatprep.subr.mxu1 %v6043_v0 }
  0x56   :  { %1790 = vmatpush1.msra.mxu0 %v967_v44  ;;  %1371 = vmatprep.mubr.f32.mxu1 %v494_v45  ;;  %v224_v44 = vld [vmem:[#allocation2 + $0x638] sm:$0xff]  ;;  %v655_v45 = vld [vmem:[#allocation2 + $0x13b0] sm:$0xff] }
  0x57   :  { %1487 = vmatpush1.msra.mxu1 %v934_v46  ;;  %1251 = vmatprep.mubr.f32.mxu0 %v62_v47  ;;  %v223_v46 = vld [vmem:[#allocation2 + $0x630] sm:$0xff]  ;;  %v954_v47 = vld [vmem:[%s6041_s1 + $0x208] sm:$0xff] }
  0x58   :  { %1372 = vmatmul.mubr.f32.gmra.mxu1 %v493_v48  ;;  %1791 = vmatprep.subr.mxu0 %v6043_v0  ;;  %v921_v48 = vld [vmem:[%s6041_s1 + $0x100] sm:$0xff] }
  0x59   :  { %1252 = vmatmul.mubr.f32.gmra.mxu0 %v61_v49  ;;  %1488 = vmatprep.subr.mxu1 %v6043_v0  ;;  %v674_v49 = vld [vmem:[#allocation2 + $0x1448] sm:$0xff] }
  0x5a   :  { %1792 = vmatpush1.msra.mxu0 %v966_v50  ;;  %1489 = vmatpush1.msra.mxu1 %v933_v51  ;;  %v242_v50 = vld [vmem:[#allocation2 + $0x6c8] sm:$0xff]  ;;  %v673_v51 = vld [vmem:[#allocation2 + $0x1440] sm:$0xff] }
  0x5b   :  { %1376 = vmatprep.mubr.f32.mxu1 %v512_v52  ;;  %1793 = vmatprep.subr.mxu0 %v6043_v0  ;;  %v953_v52 = vld [vmem:[%s6041_s1 + $0x200] sm:$0xff] }
  0x5c   :  { %1256 = vmatprep.mubr.f32.mxu0 %v80_v53  ;;  %1377 = vmatmul.mubr.f32.gmra.mxu1 %v511_v54  ;;  %v241_v53 = vld [vmem:[#allocation2 + $0x6c0] sm:$0xff]  ;;  %v952_v54 = vld [vmem:[%s6041_s1 + $0x1f8] sm:$0xff] }
  0x5d   :  { %1490 = vmatprep.subr.mxu1 %v6043_v0  ;;  %1794 = vmatpush1.msra.mxu0 %v965_v55  ;;  %v692_v55 = vld [vmem:[#allocation2 + $0x14d8] sm:$0xff] }
  0x5e   :  { %1257 = vmatmul.mubr.f32.gmra.mxu0 %v79_v56  ;;  %1491 = vmatpush1.msra.mxu1 %v932_v57  ;;  %v984_v56 = vld [vmem:[%s6041_s1 + $0x2f8] sm:$0xff] }
  0x5f   :  { %1795 = vmatprep.subr.mxu0 %v6043_v0  ;;  %1381 = vmatprep.mubr.f32.mxu1 %v530_v58  ;;  %v260_v57 = vld [vmem:[#allocation2 + $0x758] sm:$0xff]  ;;  %v691_v58 = vld [vmem:[#allocation2 + $0x14d0] sm:$0xff] }
  0x60   :  { %1492 = vmatprep.subr.mxu1 %v6043_v0  ;;  %1796 = vmatpush1.msra.mxu0 %v964_v59  ;;  %v951_v59 = vld [vmem:[%s6041_s1 + $0x1f0] sm:$0xff] }
  0x61   :  { %1261 = vmatprep.mubr.f32.mxu0 %v98_v60  ;;  %1382 = vmatmul.mubr.f32.gmra.mxu1 %v529_v61  ;;  %v259_v60 = vld [vmem:[#allocation2 + $0x750] sm:$0xff] }
  0x62   :  { %1493 = vmatpush1.msra.mxu1 %v931_v62  ;;  %1262 = vmatmul.mubr.f32.gmra.mxu0 %v97_v63  ;;  %v983_v61 = vld [vmem:[%s6041_s1 + $0x2f0] sm:$0xff]  ;;  %v710_v62 = vld [vmem:[#allocation2 + $0x1568] sm:$0xff] }
  0x63   :  { %1797 = vmatprep.subr.mxu0 %v6043_v0  ;;  %1494 = vmatprep.subr.mxu1 %v6043_v0  ;;  %v950_v63 = vld [vmem:[%s6041_s1 + $0x1e8] sm:$0xff] }
  0x64   :  { %1798 = vmatpush1.msra.mxu0 %v963_v1  ;;  %1386 = vmatprep.mubr.f32.mxu1 %v548_v2  ;;  %v278_v1 = vld [vmem:[#allocation2 + $0x7e8] sm:$0xff]  ;;  %v709_v2 = vld [vmem:[#allocation2 + $0x1560] sm:$0xff] }
  0x65   :  { %1495 = vmatpush1.msra.mxu1 %v930_v3  ;;  %1266 = vmatprep.mubr.f32.mxu0 %v116_v4  ;;  %v277_v3 = vld [vmem:[#allocation2 + $0x7e0] sm:$0xff]  ;;  %v982_v4 = vld [vmem:[%s6041_s1 + $0x2e8] sm:$0xff] }
  0x66   :  { %1387 = vmatmul.mubr.f32.gmra.mxu1 %v547_v5  ;;  %1799 = vmatprep.subr.mxu0 %v6043_v0  ;;  %v949_v5 = vld [vmem:[%s6041_s1 + $0x1e0] sm:$0xff] }
  0x67   :  { %1267 = vmatmul.mubr.f32.gmra.mxu0 %v115_v6  ;;  %1496 = vmatprep.subr.mxu1 %v6043_v0  ;;  %v728_v6 = vld [vmem:[#allocation2 + $0x15f8] sm:$0xff] }
  0x68   :  { %1800 = vmatpush1.msra.mxu0 %v962_v7  ;;  %1497 = vmatpush1.msra.mxu1 %v929_v8  ;;  %v296_v7 = vld [vmem:[#allocation2 + $0x878] sm:$0xff]  ;;  %v727_v8 = vld [vmem:[#allocation2 + $0x15f0] sm:$0xff] }
  0x69   :  { %1391 = vmatprep.mubr.f32.mxu1 %v566_v9  ;;  %1801 = vmatprep.subr.mxu0 %v6043_v0  ;;  %v981_v9 = vld [vmem:[%s6041_s1 + $0x2e0] sm:$0xff] }
  0x6a   :  { %1271 = vmatprep.mubr.f32.mxu0 %v134_v10  ;;  %1392 = vmatmul.mubr.f32.gmra.mxu1 %v565_v11  ;;  %v295_v10 = vld [vmem:[#allocation2 + $0x870] sm:$0xff]  ;;  %v948_v11 = vld [vmem:[%s6041_s1 + $0x1d8] sm:$0xff] }
  0x6b   :  { %1498 = vmatprep.subr.mxu1 %v6043_v0  ;;  %1802 = vmatpush1.msra.mxu0 %v961_v12  ;;  %v746_v12 = vld [vmem:[#allocation2 + $0x1688] sm:$0xff] }
  0x6c   :  { %1272 = vmatmul.mubr.f32.gmra.mxu0 %v133_v13  ;;  %1499 = vmatpush1.msra.mxu1 %v928_v14  ;;  %v980_v13 = vld [vmem:[%s6041_s1 + $0x2d8] sm:$0xff]  ;;  %v314_v14 = vld [vmem:[#allocation2 + $0x908] sm:$0xff] }
  0x6d   :  { %1803 = vmatprep.subr.mxu0 %v6043_v0  ;;  %1396 = vmatprep.mubr.f32.mxu1 %v584_v15  ;;  %v745_v15 = vld [vmem:[#allocation2 + $0x1680] sm:$0xff] }
  0x6e   :  { %1500 = vmatprep.subr.mxu1 %v6043_v0  ;;  %1804 = vmatpush1.msra.mxu0 %v960_v16  ;;  %v947_v16 = vld [vmem:[%s6041_s1 + $0x1d0] sm:$0xff] }
  0x6f   :  { %1276 = vmatprep.mubr.f32.mxu0 %v152_v17  ;;  %1397 = vmatmul.mubr.f32.gmra.mxu1 %v583_v18  ;;  %v313_v17 = vld [vmem:[#allocation2 + $0x900] sm:$0xff]  ;;  %v979_v18 = vld [vmem:[%s6041_s1 + $0x2d0] sm:$0xff] }
  0x70   :  { %1501 = vmatpush1.msra.mxu1 %v927_v19  ;;  %1277 = vmatmul.mubr.f32.gmra.mxu0 %v151_v20  ;;  %v764_v19 = vld [vmem:[#allocation2 + $0x1718] sm:$0xff]  ;;  %v946_v20 = vld [vmem:[%s6041_s1 + $0x1c8] sm:$0xff] }
  0x71   :  { %1805 = vmatprep.subr.mxu0 %v6043_v0  ;;  %1502 = vmatprep.subr.mxu1 %v6043_v0 }
  0x72   :  { %1806 = vmatpush1.msra.mxu0 %v959_v21  ;;  %1401 = vmatprep.mubr.f32.mxu1 %v602_v22  ;;  %v332_v21 = vld [vmem:[#allocation2 + $0x998] sm:$0xff]  ;;  %v763_v22 = vld [vmem:[#allocation2 + $0x1710] sm:$0xff] }
  0x73   :  { %1503 = vmatpush1.msra.mxu1 %v926_v23  ;;  %1281 = vmatprep.mubr.f32.mxu0 %v170_v24  ;;  %v331_v23 = vld [vmem:[#allocation2 + $0x990] sm:$0xff]  ;;  %v978_v24 = vld [vmem:[%s6041_s1 + $0x2c8] sm:$0xff] }
  0x74   :  { %1402 = vmatmul.mubr.f32.gmra.mxu1 %v601_v25  ;;  %1807 = vmatprep.subr.mxu0 %v6043_v0  ;;  %v945_v25 = vld [vmem:[%s6041_s1 + $0x1c0] sm:$0xff] }
  0x75   :  { %1282 = vmatmul.mubr.f32.gmra.mxu0 %v169_v26  ;;  %1504 = vmatprep.subr.mxu1 %v6043_v0  ;;  %v782_v26 = vld [vmem:[#allocation2 + $0x17a8] sm:$0xff] }
  0x76   :  { %1808 = vmatpush1.msra.mxu0 %v958_v27  ;;  %1505 = vmatpush1.msra.mxu1 %v925_v28  ;;  %v350_v27 = vld [vmem:[#allocation2 + $0xa28] sm:$0xff]  ;;  %v781_v28 = vld [vmem:[#allocation2 + $0x17a0] sm:$0xff] }
  0x77   :  { %1406 = vmatprep.mubr.f32.mxu1 %v620_v29  ;;  %1809 = vmatprep.subr.mxu0 %v6043_v0  ;;  %v977_v29 = vld [vmem:[%s6041_s1 + $0x2c0] sm:$0xff] }
  0x78   :  { %1286 = vmatprep.mubr.f32.mxu0 %v188_v30  ;;  %1407 = vmatmul.mubr.f32.gmra.mxu1 %v619_v31  ;;  %v349_v30 = vld [vmem:[#allocation2 + $0xa20] sm:$0xff]  ;;  %v944_v31 = vld [vmem:[%s6041_s1 + $0x1b8] sm:$0xff] }
  0x79   :  { %1506 = vmatprep.subr.mxu1 %v6043_v0  ;;  %1810 = vmatpush1.msra.mxu0 %v957_v32  ;;  %v800_v32 = vld [vmem:[#allocation2 + $0x1838] sm:$0xff] }
  0x7a   :  { %1287 = vmatmul.mubr.f32.gmra.mxu0 %v187_v33  ;;  %1507 = vmatpush1.msra.mxu1 %v924_v34  ;;  %v976_v33 = vld [vmem:[%s6041_s1 + $0x2b8] sm:$0xff] }
  0x7b   :  { %1811 = vmatprep.subr.mxu0 %v6043_v0  ;;  %1411 = vmatprep.mubr.f32.mxu1 %v638_v35  ;;  %v368_v34 = vld [vmem:[#allocation2 + $0xab8] sm:$0xff]  ;;  %v799_v35 = vld [vmem:[#allocation2 + $0x1830] sm:$0xff] }
  0x7c   :  { %1508 = vmatprep.subr.mxu1 %v6043_v0  ;;  %1812 = vmatpush1.msra.mxu0 %v956_v36  ;;  %v943_v36 = vld [vmem:[%s6041_s1 + $0x1b0] sm:$0xff] }
  0x7d   :  { %1291 = vmatprep.mubr.f32.mxu0 %v206_v37  ;;  %1412 = vmatmul.mubr.f32.gmra.mxu1 %v637_v38  ;;  %v367_v37 = vld [vmem:[#allocation2 + $0xab0] sm:$0xff] }
  0x7e   :  { %1509 = vmatpush1.msra.mxu1 %v923_v39  ;;  %1292 = vmatmul.mubr.f32.gmra.mxu0 %v205_v40  ;;  %v975_v38 = vld [vmem:[%s6041_s1 + $0x2b0] sm:$0xff]  ;;  %v818_v39 = vld [vmem:[#allocation2 + $0x18c8] sm:$0xff] }
  0x7f   :  { %1813 = vmatprep.subr.mxu0 %v6043_v0  ;;  %1510 = vmatprep.subr.mxu1 %v6043_v0  ;;  %v942_v40 = vld [vmem:[%s6041_s1 + $0x1a8] sm:$0xff] }
  0x80   :  { %1814 = vmatpush1.msra.mxu0 %v955_v41  ;;  %1416 = vmatprep.mubr.f32.mxu1 %v656_v42  ;;  %v386_v41 = vld [vmem:[#allocation2 + $0xb48] sm:$0xff]  ;;  %v817_v42 = vld [vmem:[#allocation2 + $0x18c0] sm:$0xff] }
  0x81   :  { %1511 = vmatpush1.msra.mxu1 %v922_v43  ;;  %1296 = vmatprep.mubr.f32.mxu0 %v224_v44  ;;  %v385_v43 = vld [vmem:[#allocation2 + $0xb40] sm:$0xff]  ;;  %v974_v44 = vld [vmem:[%s6041_s1 + $0x2a8] sm:$0xff] }
  0x82   :  { %1417 = vmatmul.mubr.f32.gmra.mxu1 %v655_v45  ;;  %1815 = vmatprep.subr.mxu0 %v6043_v0  ;;  %v941_v45 = vld [vmem:[%s6041_s1 + $0x1a0] sm:$0xff] }
  0x83   :  { %1297 = vmatmul.mubr.f32.gmra.mxu0 %v223_v46  ;;  %1512 = vmatprep.subr.mxu1 %v6043_v0  ;;  %v836_v46 = vld [vmem:[#allocation2 + $0x1958] sm:$0xff] }
  0x84   :  { %1816 = vmatpush1.msra.mxu0 %v954_v47  ;;  %1513 = vmatpush1.msra.mxu1 %v921_v48  ;;  %v404_v47 = vld [vmem:[#allocation2 + $0xbd8] sm:$0xff]  ;;  %v835_v48 = vld [vmem:[#allocation2 + $0x1950] sm:$0xff] }
  0x85   :  { %1421 = vmatprep.mubr.f32.mxu1 %v674_v49  ;;  %1817 = vmatprep.subr.mxu0 %v6043_v0  ;;  %v973_v49 = vld [vmem:[%s6041_s1 + $0x2a0] sm:$0xff] }
  0x86   :  { %1301 = vmatprep.mubr.f32.mxu0 %v242_v50  ;;  %1422 = vmatmul.mubr.f32.gmra.mxu1 %v673_v51  ;;  %v403_v50 = vld [vmem:[#allocation2 + $0xbd0] sm:$0xff]  ;;  %v940_v51 = vld [vmem:[%s6041_s1 + $0x198] sm:$0xff] }
  0x87   :  { %1514 = vmatprep.subr.mxu1 %v6043_v0  ;;  %1818 = vmatpush1.msra.mxu0 %v953_v52  ;;  %v854_v52 = vld [vmem:[#allocation2 + $0x19e8] sm:$0xff] }
  0x88   :  { %1302 = vmatmul.mubr.f32.gmra.mxu0 %v241_v53  ;;  %1515 = vmatpush2.msra.mxu1 %v952_v54  ;;  %v972_v53 = vld [vmem:[%s6041_s1 + $0x298] sm:$0xff]  ;;  %v422_v54 = vld [vmem:[#allocation2 + $0xc68] sm:$0xff] }
  0x89   :  { %1819 = vmatprep.subr.mxu0 %v6043_v0  ;;  %1426 = vmatprep.mubr.f32.mxu1 %v692_v55  ;;  %v853_v55 = vld [vmem:[#allocation2 + $0x19e0] sm:$0xff] }
  0x8a   :  { %1516 = vmatprep.subr.mxu1 %v6043_v0  ;;  %1820 = vmatpush2.msra.mxu0 %v984_v56  ;;  %v939_v56 = vld [vmem:[%s6041_s1 + $0x190] sm:$0xff] }
  0x8b   :  { %1306 = vmatprep.mubr.f32.mxu0 %v260_v57  ;;  %1427 = vmatmul.mubr.f32.gmra.mxu1 %v691_v58  ;;  %v421_v57 = vld [vmem:[#allocation2 + $0xc60] sm:$0xff]  ;;  %v971_v58 = vld [vmem:[%s6041_s1 + $0x290] sm:$0xff] }
  0x8c   :  { %1517 = vmatpush2.msra.mxu1 %v951_v59  ;;  %1307 = vmatmul.mubr.f32.gmra.mxu0 %v259_v60  ;;  %v872_v59 = vld [vmem:[#allocation2 + $0x1a78] sm:$0xff]  ;;  %v938_v60 = vld [vmem:[%s6041_s1 + $0x188] sm:$0xff] }
  0x8d   :  { %1821 = vmatprep.subr.mxu0 %v6043_v0  ;;  %1518 = vmatprep.subr.mxu1 %v6043_v0 }
  0x8e   :  { %1822 = vmatpush2.msra.mxu0 %v983_v61  ;;  %1431 = vmatprep.mubr.f32.mxu1 %v710_v62  ;;  %v440_v61 = vld [vmem:[#allocation2 + $0xcf8] sm:$0xff]  ;;  %v871_v62 = vld [vmem:[#allocation2 + $0x1a70] sm:$0xff] }
  0x8f   :  { %1519 = vmatpush2.msra.mxu1 %v950_v63  ;;  %1311 = vmatprep.mubr.f32.mxu0 %v278_v1  ;;  %v439_v63 = vld [vmem:[#allocation2 + $0xcf0] sm:$0xff]  ;;  %v970_v1 = vld [vmem:[%s6041_s1 + $0x288] sm:$0xff] }
  0x90   :  { %1432 = vmatmul.mubr.f32.gmra.mxu1 %v709_v2  ;;  %1823 = vmatprep.subr.mxu0 %v6043_v0  ;;  %v937_v2 = vld [vmem:[%s6041_s1 + $0x180] sm:$0xff] }
  0x91   :  { %1312 = vmatmul.mubr.f32.gmra.mxu0 %v277_v3  ;;  %1520 = vmatprep.subr.mxu1 %v6043_v0  ;;  %v28_v3 = vld [vmem:[#allocation2 + $0x18] sm:$0xff] }
  0x92   :  { %1824 = vmatpush2.msra.mxu0 %v982_v4  ;;  %1521 = vmatpush2.msra.mxu1 %v949_v5  ;;  %v27_v4 = vld [vmem:[#allocation2 + $0x10] sm:$0xff]  ;;  %v969_v5 = vld [vmem:[%s6041_s1 + $0x280] sm:$0xff] }
  0x93   :  { %1436 = vmatprep.mubr.f32.mxu1 %v728_v6  ;;  %1825 = vmatprep.subr.mxu0 %v6043_v0  ;;  %v30_v6 = vld [vmem:[#allocation2 + $0x28] sm:$0xff] }
  0x94   :  { %1316 = vmatprep.mubr.f32.mxu0 %v296_v7  ;;  %1437 = vmatmul.mubr.f32.gmra.mxu1 %v727_v8  ;;  %v29_v7 = vld [vmem:[#allocation2 + $0x20] sm:$0xff]  ;;  %v1000_v8 = vld [vmem:[%s6041_s1 + $0x378] sm:$0xff] }
  0x95   :  { %1522 = vmatprep.subr.mxu1 %v6043_v0  ;;  %1826 = vmatpush2.msra.mxu0 %v981_v9  ;;  %v46_v9 = vld [vmem:[#allocation2 + $0xa8] sm:$0xff] }
  0x96   :  { %1317 = vmatmul.mubr.f32.gmra.mxu0 %v295_v10  ;;  %1523 = vmatpush2.msra.mxu1 %v948_v11  ;;  %v1032_v10 = vld [vmem:[%s6041_s1 + $0x478] sm:$0xff]  ;;  %v45_v11 = vld [vmem:[#allocation2 + $0xa0] sm:$0xff] }
  0x97   :  { %1827 = vmatprep.subr.mxu0 %v6043_v0  ;;  %1441 = vmatprep.mubr.f32.mxu1 %v746_v12  ;;  %v48_v12 = vld [vmem:[#allocation2 + $0xb8] sm:$0xff] }
  0x98   :  { %1524 = vmatprep.subr.mxu1 %v6043_v0  ;;  %1828 = vmatpush2.msra.mxu0 %v980_v13  ;;  %v47_v13 = vld [vmem:[#allocation2 + $0xb0] sm:$0xff] }
  0x99   :  { %1321 = vmatprep.mubr.f32.mxu0 %v314_v14  ;;  %1442 = vmatmul.mubr.f32.gmra.mxu1 %v745_v15  ;;  %v64_v14 = vld [vmem:[#allocation2 + $0x138] sm:$0xff]  ;;  %v999_v15 = vld [vmem:[%s6041_s1 + $0x370] sm:$0xff] }
  0x9a   :  { %1525 = vmatpush2.msra.mxu1 %v947_v16  ;;  %1322 = vmatmul.mubr.f32.gmra.mxu0 %v313_v17  ;;  %v66_v16 = vld [vmem:[#allocation2 + $0x148] sm:$0xff]  ;;  %v63_v17 = vld [vmem:[#allocation2 + $0x130] sm:$0xff] }
  0x9b   :  { %1829 = vmatprep.subr.mxu0 %v6043_v0  ;;  %1526 = vmatprep.subr.mxu1 %v6043_v0 }
  0x9c   :  { %1830 = vmatpush2.msra.mxu0 %v979_v18  ;;  %1446 = vmatprep.mubr.f32.mxu1 %v764_v19  ;;  %v1031_v18 = vld [vmem:[%s6041_s1 + $0x470] sm:$0xff]  ;;  %v82_v19 = vld [vmem:[#allocation2 + $0x1c8] sm:$0xff] }
  0x9d   :  { %1527 = vmatpush2.msra.mxu1 %v946_v20  ;;  %1326 = vmatprep.mubr.f32.mxu0 %v332_v21  ;;  %v65_v20 = vld [vmem:[#allocation2 + $0x140] sm:$0xff]  ;;  %v84_v21 = vld [vmem:[#allocation2 + $0x1d8] sm:$0xff] }
  0x9e   :  { %1447 = vmatmul.mubr.f32.gmra.mxu1 %v763_v22  ;;  %1831 = vmatprep.subr.mxu0 %v6043_v0  ;;  %v998_v22 = vld [vmem:[%s6041_s1 + $0x368] sm:$0xff] }
  0x9f   :  { %1327 = vmatmul.mubr.f32.gmra.mxu0 %v331_v23  ;;  %1528 = vmatprep.subr.mxu1 %v6043_v0  ;;  %v81_v23 = vld [vmem:[#allocation2 + $0x1c0] sm:$0xff] }
  0xa0   :  { %1832 = vmatpush2.msra.mxu0 %v978_v24  ;;  %1529 = vmatpush2.msra.mxu1 %v945_v25  ;;  %v100_v24 = vld [vmem:[#allocation2 + $0x258] sm:$0xff]  ;;  %v1030_v25 = vld [vmem:[%s6041_s1 + $0x468] sm:$0xff] }
  0xa1   :  { %1451 = vmatprep.mubr.f32.mxu1 %v782_v26  ;;  %1833 = vmatprep.subr.mxu0 %v6043_v0  ;;  %v83_v26 = vld [vmem:[#allocation2 + $0x1d0] sm:$0xff] }
  0xa2   :  { %1331 = vmatprep.mubr.f32.mxu0 %v350_v27  ;;  %1452 = vmatmul.mubr.f32.gmra.mxu1 %v781_v28  ;;  %v102_v27 = vld [vmem:[#allocation2 + $0x268] sm:$0xff]  ;;  %v997_v28 = vld [vmem:[%s6041_s1 + $0x360] sm:$0xff] }
  0xa3   :  { %1530 = vmatprep.subr.mxu1 %v6043_v0  ;;  %1834 = vmatpush2.msra.mxu0 %v977_v29  ;;  %v99_v29 = vld [vmem:[#allocation2 + $0x250] sm:$0xff] }
  0xa4   :  { %1332 = vmatmul.mubr.f32.gmra.mxu0 %v349_v30  ;;  %1531 = vmatpush2.msra.mxu1 %v944_v31  ;;  %v118_v30 = vld [vmem:[#allocation2 + $0x2e8] sm:$0xff]  ;;  %v1029_v31 = vld [vmem:[%s6041_s1 + $0x460] sm:$0xff] }
  0xa5   :  { %1835 = vmatprep.subr.mxu0 %v6043_v0  ;;  %1456 = vmatprep.mubr.f32.mxu1 %v800_v32  ;;  %v101_v32 = vld [vmem:[#allocation2 + $0x260] sm:$0xff] }
  0xa6   :  { %1532 = vmatprep.subr.mxu1 %v6043_v0  ;;  %1836 = vmatpush2.msra.mxu0 %v976_v33  ;;  %v120_v33 = vld [vmem:[#allocation2 + $0x2f8] sm:$0xff] }
  0xa7   :  { %1336 = vmatprep.mubr.f32.mxu0 %v368_v34  ;;  %1457 = vmatmul.mubr.f32.gmra.mxu1 %v799_v35  ;;  %v996_v34 = vld [vmem:[%s6041_s1 + $0x358] sm:$0xff]  ;;  %v117_v35 = vld [vmem:[#allocation2 + $0x2e0] sm:$0xff] }
  0xa8   :  { %1533 = vmatpush2.msra.mxu1 %v943_v36  ;;  %1337 = vmatmul.mubr.f32.gmra.mxu0 %v367_v37  ;;  %v136_v36 = vld [vmem:[#allocation2 + $0x378] sm:$0xff] }
  0xa9   :  { %1837 = vmatprep.subr.mxu0 %v6043_v0  ;;  %1534 = vmatprep.subr.mxu1 %v6043_v0  ;;  %v1028_v37 = vld [vmem:[%s6041_s1 + $0x458] sm:$0xff] }
  0xaa   :  { %1838 = vmatpush2.msra.mxu0 %v975_v38  ;;  %1461 = vmatprep.mubr.f32.mxu1 %v818_v39  ;;  %v119_v38 = vld [vmem:[#allocation2 + $0x2f0] sm:$0xff]  ;;  %v138_v39 = vld [vmem:[#allocation2 + $0x388] sm:$0xff] }
  0xab   :  { %1535 = vmatpush2.msra.mxu1 %v942_v40  ;;  %1341 = vmatprep.mubr.f32.mxu0 %v386_v41  ;;  %v995_v40 = vld [vmem:[%s6041_s1 + $0x350] sm:$0xff] }
  0xac   :  { %1462 = vmatmul.mubr.f32.gmra.mxu1 %v817_v42  ;;  %1839 = vmatprep.subr.mxu0 %v6043_v0  ;;  %v135_v41 = vld [vmem:[#allocation2 + $0x370] sm:$0xff]  ;;  %v154_v42 = vld [vmem:[#allocation2 + $0x408] sm:$0xff] }
  0xad   :  { %1342 = vmatmul.mubr.f32.gmra.mxu0 %v385_v43  ;;  %1536 = vmatprep.subr.mxu1 %v6043_v0  ;;  %v1027_v43 = vld [vmem:[%s6041_s1 + $0x450] sm:$0xff] }
  0xae   :  { %1840 = vmatpush2.msra.mxu0 %v974_v44  ;;  %1537 = vmatpush2.msra.mxu1 %v941_v45  ;;  %v137_v44 = vld [vmem:[#allocation2 + $0x380] sm:$0xff]  ;;  %v156_v45 = vld [vmem:[#allocation2 + $0x418] sm:$0xff] }
  0xaf   :  { %1466 = vmatprep.mubr.f32.mxu1 %v836_v46  ;;  %1841 = vmatprep.subr.mxu0 %v6043_v0  ;;  %v994_v46 = vld [vmem:[%s6041_s1 + $0x348] sm:$0xff] }
  0xb0   :  { %1346 = vmatprep.mubr.f32.mxu0 %v404_v47  ;;  %1467 = vmatmul.mubr.f32.gmra.mxu1 %v835_v48  ;;  %v153_v47 = vld [vmem:[#allocation2 + $0x400] sm:$0xff]  ;;  %v172_v48 = vld [vmem:[#allocation2 + $0x498] sm:$0xff] }
  0xb1   :  { %1538 = vmatprep.subr.mxu1 %v6043_v0  ;;  %1842 = vmatpush2.msra.mxu0 %v973_v49  ;;  %v1026_v49 = vld [vmem:[%s6041_s1 + $0x448] sm:$0xff] }
  0xb2   :  { %1347 = vmatmul.mubr.f32.gmra.mxu0 %v403_v50  ;;  %1539 = vmatpush2.msra.mxu1 %v940_v51  ;;  %v155_v50 = vld [vmem:[#allocation2 + $0x410] sm:$0xff]  ;;  %v174_v51 = vld [vmem:[#allocation2 + $0x4a8] sm:$0xff] }
  0xb3   :  { %1843 = vmatprep.subr.mxu0 %v6043_v0  ;;  %1471 = vmatprep.mubr.f32.mxu1 %v854_v52  ;;  %v993_v52 = vld [vmem:[%s6041_s1 + $0x340] sm:$0xff] }
  0xb4   :  { %1540 = vmatprep.subr.mxu1 %v6043_v0  ;;  %1844 = vmatpush2.msra.mxu0 %v972_v53  ;;  %v171_v53 = vld [vmem:[#allocation2 + $0x490] sm:$0xff] }
  0xb5   :  { %1351 = vmatprep.mubr.f32.mxu0 %v422_v54  ;;  %1472 = vmatmul.mubr.f32.gmra.mxu1 %v853_v55  ;;  %v190_v54 = vld [vmem:[#allocation2 + $0x528] sm:$0xff]  ;;  %v1025_v55 = vld [vmem:[%s6041_s1 + $0x440] sm:$0xff] }
  0xb6   :  { %1541 = vmatpush2.msra.mxu1 %v939_v56  ;;  %1352 = vmatmul.mubr.f32.gmra.mxu0 %v421_v57  ;;  %v173_v56 = vld [vmem:[#allocation2 + $0x4a0] sm:$0xff]  ;;  %v192_v57 = vld [vmem:[#allocation2 + $0x538] sm:$0xff] }
  0xb7   :  { %1845 = vmatprep.subr.mxu0 %v6043_v0  ;;  %1542 = vmatprep.subr.mxu1 %v6043_v0 }
  0xb8   :  { %1846 = vmatpush2.msra.mxu0 %v971_v58  ;;  %1476 = vmatprep.mubr.f32.mxu1 %v872_v59  ;;  %v992_v58 = vld [vmem:[%s6041_s1 + $0x338] sm:$0xff]  ;;  %v189_v59 = vld [vmem:[#allocation2 + $0x520] sm:$0xff] }
  0xb9   :  { %1543 = vmatpush2.msra.mxu1 %v938_v60  ;;  %1356 = vmatprep.mubr.f32.mxu0 %v440_v61  ;;  %v208_v60 = vld [vmem:[#allocation2 + $0x5b8] sm:$0xff] }
  0xba   :  { %1477 = vmatmul.mubr.f32.gmra.mxu1 %v871_v62  ;;  %1847 = vmatprep.subr.mxu0 %v6043_v0  ;;  %v1024_v61 = vld [vmem:[%s6041_s1 + $0x438] sm:$0xff]  ;;  %v191_v62 = vld [vmem:[#allocation2 + $0x530] sm:$0xff] }
  0xbb   :  { %1357 = vmatmul.mubr.f32.gmra.mxu0 %v439_v63  ;;  %1544 = vmatprep.subr.mxu1 %v6043_v0  ;;  %v210_v63 = vld [vmem:[#allocation2 + $0x5c8] sm:$0xff] }
  0xbc   :  { %1848 = vmatpush2.msra.mxu0 %v970_v1  ;;  %1545 = vmatpush2.msra.mxu1 %v937_v2  ;;  %v991_v1 = vld [vmem:[%s6041_s1 + $0x330] sm:$0xff] }
  0xbd   :  { %1546 = vmatprep.mubr.f32.mxu1 %v28_v3  ;;  %1849 = vmatprep.subr.mxu0 %v6043_v0  ;;  %v207_v2 = vld [vmem:[#allocation2 + $0x5b0] sm:$0xff]  ;;  %v226_v3 = vld [vmem:[#allocation2 + $0x648] sm:$0xff] }
  0xbe   :  { %1547 = vmatmul.mubr.f32.vlgmr.msra.gmra.mxu1 %v27_v4  ;;  %1850 = vmatpush2.msra.mxu0 %v969_v5  ;;  %v1023_v4 = vld [vmem:[%s6041_s1 + $0x430] sm:$0xff]  ;;  %v209_v5 = vld [vmem:[#allocation2 + $0x5c0] sm:$0xff] }
  0xbf   :  { %1851 = vmatprep.mubr.f32.mxu0 %v30_v6  ;;  %2092 = vmatprep.subr.mxu1 %v6043_v0  ;;  %v228_v6 = vld [vmem:[#allocation2 + $0x658] sm:$0xff] }
  0xc0   :  { %1852 = vmatmul.mubr.f32.vlgmr.msra.gmra.mxu0 %v29_v7  ;;  %2093 = vmatpush1.msra.mxu1 %v1000_v8  ;;  %v990_v7 = vld [vmem:[%s6041_s1 + $0x328] sm:$0xff]  ;;  %v225_v8 = vld [vmem:[#allocation2 + $0x640] sm:$0xff] }
  0xc1   :  { %2397 = vmatprep.subr.mxu0 %v6043_v0  ;;  %1551 = vmatprep.mubr.f32.mxu1 %v46_v9  ;;  %v244_v9 = vld [vmem:[#allocation2 + $0x6d8] sm:$0xff] }
  0xc2   :  { %2398 = vmatpush1.msra.mxu0 %v1032_v10  ;;  %1552 = vmatmul.mubr.f32.gmra.mxu1 %v45_v11  ;;  %v1022_v10 = vld [vmem:[%s6041_s1 + $0x428] sm:$0xff]  ;;  %v227_v11 = vld [vmem:[#allocation2 + $0x650] sm:$0xff] }
  0xc3   :  { %1856 = vmatprep.mubr.f32.mxu0 %v48_v12  ;;  %2094 = vmatprep.subr.mxu1 %v6043_v0  ;;  %v246_v12 = vld [vmem:[#allocation2 + $0x6e8] sm:$0xff] }
  0xc4   :  { %1857 = vmatmul.mubr.f32.gmra.mxu0 %v47_v13  ;;  %1556 = vmatprep.mubr.f32.mxu1 %v64_v14  ;;  %v989_v13 = vld [vmem:[%s6041_s1 + $0x320] sm:$0xff]  ;;  %v243_v14 = vld [vmem:[#allocation2 + $0x6d0] sm:$0xff] }
  0xc5   :  { %2095 = vmatpush1.msra.mxu1 %v999_v15  ;;  %1861 = vmatprep.mubr.f32.mxu0 %v66_v16  ;;  %v262_v15 = vld [vmem:[#allocation2 + $0x768] sm:$0xff]  ;;  %v1021_v16 = vld [vmem:[%s6041_s1 + $0x420] sm:$0xff] }
  0xc6   :  { %1557 = vmatmul.mubr.f32.gmra.mxu1 %v63_v17  ;;  %2399 = vmatprep.subr.mxu0 %v6043_v0  ;;  %v245_v17 = vld [vmem:[#allocation2 + $0x6e0] sm:$0xff] }
  0xc7   :  { %2400 = vmatpush1.msra.mxu0 %v1031_v18  ;;  %1561 = vmatprep.mubr.f32.mxu1 %v82_v19  ;;  %v264_v18 = vld [vmem:[#allocation2 + $0x778] sm:$0xff] }
  0xc8   :  { %1862 = vmatmul.mubr.f32.gmra.mxu0 %v65_v20  ;;  %2096 = vmatprep.subr.mxu1 %v6043_v0  ;;  %v988_v19 = vld [vmem:[%s6041_s1 + $0x318] sm:$0xff]  ;;  %v261_v20 = vld [vmem:[#allocation2 + $0x760] sm:$0xff] }
  0xc9   :  { %1866 = vmatprep.mubr.f32.mxu0 %v84_v21  ;;  %2097 = vmatpush1.msra.mxu1 %v998_v22  ;;  %v280_v21 = vld [vmem:[#allocation2 + $0x7f8] sm:$0xff] }
  0xca   :  { %1562 = vmatmul.mubr.f32.gmra.mxu1 %v81_v23  ;;  %2401 = vmatprep.subr.mxu0 %v6043_v0  ;;  %v1020_v22 = vld [vmem:[%s6041_s1 + $0x418] sm:$0xff]  ;;  %v263_v23 = vld [vmem:[#allocation2 + $0x770] sm:$0xff] }
  0xcb   :  { %1566 = vmatprep.mubr.f32.mxu1 %v100_v24  ;;  %2402 = vmatpush1.msra.mxu0 %v1030_v25  ;;  %v282_v24 = vld [vmem:[#allocation2 + $0x808] sm:$0xff]  ;;  %v987_v25 = vld [vmem:[%s6041_s1 + $0x310] sm:$0xff] }
  0xcc   :  { %1867 = vmatmul.mubr.f32.gmra.mxu0 %v83_v26  ;;  %2098 = vmatprep.subr.mxu1 %v6043_v0  ;;  %v279_v26 = vld [vmem:[#allocation2 + $0x7f0] sm:$0xff] }
  0xcd   :  { %1871 = vmatprep.mubr.f32.mxu0 %v102_v27  ;;  %2099 = vmatpush1.msra.mxu1 %v997_v28  ;;  %v298_v27 = vld [vmem:[#allocation2 + $0x888] sm:$0xff]  ;;  %v1019_v28 = vld [vmem:[%s6041_s1 + $0x410] sm:$0xff] }
  0xce   :  { %1567 = vmatmul.mubr.f32.gmra.mxu1 %v99_v29  ;;  %2403 = vmatprep.subr.mxu0 %v6043_v0  ;;  %v281_v29 = vld [vmem:[#allocation2 + $0x800] sm:$0xff] }
  0xcf   :  { %1571 = vmatprep.mubr.f32.mxu1 %v118_v30  ;;  %2404 = vmatpush1.msra.mxu0 %v1029_v31  ;;  %v300_v30 = vld [vmem:[#allocation2 + $0x898] sm:$0xff]  ;;  %v986_v31 = vld [vmem:[%s6041_s1 + $0x308] sm:$0xff] }
  0xd0   :  { %1872 = vmatmul.mubr.f32.gmra.mxu0 %v101_v32  ;;  %2100 = vmatprep.subr.mxu1 %v6043_v0  ;;  %v297_v32 = vld [vmem:[#allocation2 + $0x880] sm:$0xff] }
  0xd1   :  { %1876 = vmatprep.mubr.f32.mxu0 %v120_v33  ;;  %2101 = vmatpush1.msra.mxu1 %v996_v34  ;;  %v316_v33 = vld [vmem:[#allocation2 + $0x918] sm:$0xff]  ;;  %v1018_v34 = vld [vmem:[%s6041_s1 + $0x408] sm:$0xff] }
  0xd2   :  { %1572 = vmatmul.mubr.f32.gmra.mxu1 %v117_v35  ;;  %2405 = vmatprep.subr.mxu0 %v6043_v0  ;;  %v299_v35 = vld [vmem:[#allocation2 + $0x890] sm:$0xff] }
  0xd3   :  { %1576 = vmatprep.mubr.f32.mxu1 %v136_v36  ;;  %2406 = vmatpush1.msra.mxu0 %v1028_v37  ;;  %v318_v36 = vld [vmem:[#allocation2 + $0x928] sm:$0xff]  ;;  %v985_v37 = vld [vmem:[%s6041_s1 + $0x300] sm:$0xff] }
  0xd4   :  { %1877 = vmatmul.mubr.f32.gmra.mxu0 %v119_v38  ;;  %2102 = vmatprep.subr.mxu1 %v6043_v0  ;;  %v315_v38 = vld [vmem:[#allocation2 + $0x910] sm:$0xff] }
  0xd5   :  { %1881 = vmatprep.mubr.f32.mxu0 %v138_v39  ;;  %2103 = vmatpush1.msra.mxu1 %v995_v40  ;;  %v334_v39 = vld [vmem:[#allocation2 + $0x9a8] sm:$0xff]  ;;  %v1017_v40 = vld [vmem:[%s6041_s1 + $0x400] sm:$0xff] }
  0xd6   :  { %1577 = vmatmul.mubr.f32.gmra.mxu1 %v135_v41  ;;  %2407 = vmatprep.subr.mxu0 %v6043_v0  ;;  %v317_v41 = vld [vmem:[#allocation2 + $0x920] sm:$0xff] }
  0xd7   :  { %1581 = vmatprep.mubr.f32.mxu1 %v154_v42  ;;  %2408 = vmatpush1.msra.mxu0 %v1027_v43  ;;  %v336_v42 = vld [vmem:[#allocation2 + $0x9b8] sm:$0xff] }
  0xd8   :  { %1882 = vmatmul.mubr.f32.gmra.mxu0 %v137_v44  ;;  %2104 = vmatprep.subr.mxu1 %v6043_v0  ;;  %v1016_v43 = vld [vmem:[%s6041_s1 + $0x3f8] sm:$0xff]  ;;  %v333_v44 = vld [vmem:[#allocation2 + $0x9a0] sm:$0xff] }
  0xd9   :  { %1886 = vmatprep.mubr.f32.mxu0 %v156_v45  ;;  %2105 = vmatpush1.msra.mxu1 %v994_v46  ;;  %v352_v45 = vld [vmem:[#allocation2 + $0xa38] sm:$0xff] }
  0xda   :  { %1582 = vmatmul.mubr.f32.gmra.mxu1 %v153_v47  ;;  %2409 = vmatprep.subr.mxu0 %v6043_v0  ;;  %v1048_v46 = vld [vmem:[%s6041_s1 + $0x4f8] sm:$0xff]  ;;  %v335_v47 = vld [vmem:[#allocation2 + $0x9b0] sm:$0xff] }
  0xdb   :  { %1586 = vmatprep.mubr.f32.mxu1 %v172_v48  ;;  %2410 = vmatpush1.msra.mxu0 %v1026_v49  ;;  %v354_v48 = vld [vmem:[#allocation2 + $0xa48] sm:$0xff]  ;;  %v1015_v49 = vld [vmem:[%s6041_s1 + $0x3f0] sm:$0xff] }
  0xdc   :  { %1887 = vmatmul.mubr.f32.gmra.mxu0 %v155_v50  ;;  %2106 = vmatprep.subr.mxu1 %v6043_v0  ;;  %v351_v50 = vld [vmem:[#allocation2 + $0xa30] sm:$0xff] }
  0xdd   :  { %1891 = vmatprep.mubr.f32.mxu0 %v174_v51  ;;  %2107 = vmatpush1.msra.mxu1 %v993_v52  ;;  %v370_v51 = vld [vmem:[#allocation2 + $0xac8] sm:$0xff]  ;;  %v1047_v52 = vld [vmem:[%s6041_s1 + $0x4f0] sm:$0xff] }
  0xde   :  { %1587 = vmatmul.mubr.f32.gmra.mxu1 %v171_v53  ;;  %2411 = vmatprep.subr.mxu0 %v6043_v0  ;;  %v353_v53 = vld [vmem:[#allocation2 + $0xa40] sm:$0xff] }
  0xdf   :  { %1591 = vmatprep.mubr.f32.mxu1 %v190_v54  ;;  %2412 = vmatpush1.msra.mxu0 %v1025_v55  ;;  %v372_v54 = vld [vmem:[#allocation2 + $0xad8] sm:$0xff]  ;;  %v1014_v55 = vld [vmem:[%s6041_s1 + $0x3e8] sm:$0xff] }
  0xe0   :  { %1892 = vmatmul.mubr.f32.gmra.mxu0 %v173_v56  ;;  %2108 = vmatprep.subr.mxu1 %v6043_v0  ;;  %v369_v56 = vld [vmem:[#allocation2 + $0xac0] sm:$0xff] }
  0xe1   :  { %1896 = vmatprep.mubr.f32.mxu0 %v192_v57  ;;  %2109 = vmatpush1.msra.mxu1 %v992_v58  ;;  %v388_v57 = vld [vmem:[#allocation2 + $0xb58] sm:$0xff]  ;;  %v1046_v58 = vld [vmem:[%s6041_s1 + $0x4e8] sm:$0xff] }
  0xe2   :  { %1592 = vmatmul.mubr.f32.gmra.mxu1 %v189_v59  ;;  %2413 = vmatprep.subr.mxu0 %v6043_v0  ;;  %v371_v59 = vld [vmem:[#allocation2 + $0xad0] sm:$0xff] }
  0xe3   :  { %1596 = vmatprep.mubr.f32.mxu1 %v208_v60  ;;  %2414 = vmatpush1.msra.mxu0 %v1024_v61  ;;  %v390_v60 = vld [vmem:[#allocation2 + $0xb68] sm:$0xff]  ;;  %v1013_v61 = vld [vmem:[%s6041_s1 + $0x3e0] sm:$0xff] }
  0xe4   :  { %1897 = vmatmul.mubr.f32.gmra.mxu0 %v191_v62  ;;  %2110 = vmatprep.subr.mxu1 %v6043_v0  ;;  %v387_v62 = vld [vmem:[#allocation2 + $0xb50] sm:$0xff] }
  0xe5   :  { %1901 = vmatprep.mubr.f32.mxu0 %v210_v63  ;;  %2111 = vmatpush1.msra.mxu1 %v991_v1  ;;  %v406_v63 = vld [vmem:[#allocation2 + $0xbe8] sm:$0xff]  ;;  %v1045_v1 = vld [vmem:[%s6041_s1 + $0x4e0] sm:$0xff] }
  0xe6   :  { %1597 = vmatmul.mubr.f32.gmra.mxu1 %v207_v2  ;;  %2415 = vmatprep.subr.mxu0 %v6043_v0  ;;  %v389_v2 = vld [vmem:[#allocation2 + $0xb60] sm:$0xff] }
  0xe7   :  { %1601 = vmatprep.mubr.f32.mxu1 %v226_v3  ;;  %2416 = vmatpush1.msra.mxu0 %v1023_v4  ;;  %v408_v3 = vld [vmem:[#allocation2 + $0xbf8] sm:$0xff] }
  0xe8   :  { %1902 = vmatmul.mubr.f32.gmra.mxu0 %v209_v5  ;;  %2112 = vmatprep.subr.mxu1 %v6043_v0  ;;  %v1012_v4 = vld [vmem:[%s6041_s1 + $0x3d8] sm:$0xff]  ;;  %v405_v5 = vld [vmem:[#allocation2 + $0xbe0] sm:$0xff] }
  0xe9   :  { %1906 = vmatprep.mubr.f32.mxu0 %v228_v6  ;;  %2113 = vmatpush1.msra.mxu1 %v990_v7  ;;  %v424_v7 = vld [vmem:[#allocation2 + $0xc78] sm:$0xff] }
  0xea   :  { %1602 = vmatmul.mubr.f32.gmra.mxu1 %v225_v8  ;;  %2417 = vmatprep.subr.mxu0 %v6043_v0 }
  0xeb   :  { %1606 = vmatprep.mubr.f32.mxu1 %v244_v9  ;;  %2418 = vmatpush1.msra.mxu0 %v1022_v10  ;;  %v1044_v9 = vld [vmem:[%s6041_s1 + $0x4d8] sm:$0xff]  ;;  %v407_v10 = vld [vmem:[#allocation2 + $0xbf0] sm:$0xff] }
  0xec   :  { %1907 = vmatmul.mubr.f32.gmra.mxu0 %v227_v11  ;;  %2114 = vmatprep.subr.mxu1 %v6043_v0 }
  0xed   :  { %1911 = vmatprep.mubr.f32.mxu0 %v246_v12  ;;  %2115 = vmatpush1.msra.mxu1 %v989_v13  ;;  %v426_v12 = vld [vmem:[#allocation2 + $0xc88] sm:$0xff] }
  0xee   :  { %1607 = vmatmul.mubr.f32.gmra.mxu1 %v243_v14  ;;  %2419 = vmatprep.subr.mxu0 %v6043_v0  ;;  %v1011_v14 = vld [vmem:[%s6041_s1 + $0x3d0] sm:$0xff] }
  0xef   :  { %1611 = vmatprep.mubr.f32.mxu1 %v262_v15  ;;  %2420 = vmatpush1.msra.mxu0 %v1021_v16  ;;  %v423_v15 = vld [vmem:[#allocation2 + $0xc70] sm:$0xff] }
  0xf0   :  { %1912 = vmatmul.mubr.f32.gmra.mxu0 %v245_v17  ;;  %2116 = vmatprep.subr.mxu1 %v6043_v0  ;;  %v442_v17 = vld [vmem:[#allocation2 + $0xd08] sm:$0xff] }
  0xf1   :  { %1916 = vmatprep.mubr.f32.mxu0 %v264_v18  ;;  %2117 = vmatpush1.msra.mxu1 %v988_v19  ;;  %v1043_v19 = vld [vmem:[%s6041_s1 + $0x4d0] sm:$0xff] }
  0xf2   :  { %1612 = vmatmul.mubr.f32.gmra.mxu1 %v261_v20  ;;  %2421 = vmatprep.subr.mxu0 %v6043_v0  ;;  %v425_v20 = vld [vmem:[#allocation2 + $0xc80] sm:$0xff] }
  0xf3   :  { %1616 = vmatprep.mubr.f32.mxu1 %v280_v21  ;;  %2422 = vmatpush1.msra.mxu0 %v1020_v22  ;;  %v444_v22 = vld [vmem:[#allocation2 + $0xd18] sm:$0xff] }
  0xf4   :  { %1917 = vmatmul.mubr.f32.gmra.mxu0 %v263_v23  ;;  %2118 = vmatprep.subr.mxu1 %v6043_v0 }
  0xf5   :  { %1921 = vmatprep.mubr.f32.mxu0 %v282_v24  ;;  %2119 = vmatpush1.msra.mxu1 %v987_v25  ;;  %v1010_v24 = vld [vmem:[%s6041_s1 + $0x3c8] sm:$0xff]  ;;  %v441_v25 = vld [vmem:[#allocation2 + $0xd00] sm:$0xff] }
  0xf6   :  { %1617 = vmatmul.mubr.f32.gmra.mxu1 %v279_v26  ;;  %2423 = vmatprep.subr.mxu0 %v6043_v0  ;;  %v460_v26 = vld [vmem:[#allocation2 + $0xd98] sm:$0xff] }
  0xf7   :  { %1621 = vmatprep.mubr.f32.mxu1 %v298_v27  ;;  %2424 = vmatpush1.msra.mxu0 %v1019_v28  ;;  %v1042_v28 = vld [vmem:[%s6041_s1 + $0x4c8] sm:$0xff] }
  0xf8   :  { %1922 = vmatmul.mubr.f32.gmra.mxu0 %v281_v29  ;;  %2120 = vmatprep.subr.mxu1 %v6043_v0  ;;  %v443_v29 = vld [vmem:[#allocation2 + $0xd10] sm:$0xff] }
  0xf9   :  { %1926 = vmatprep.mubr.f32.mxu0 %v300_v30  ;;  %2121 = vmatpush1.msra.mxu1 %v986_v31  ;;  %v462_v31 = vld [vmem:[#allocation2 + $0xda8] sm:$0xff] }
  0xfa   :  { %1622 = vmatmul.mubr.f32.gmra.mxu1 %v297_v32  ;;  %2425 = vmatprep.subr.mxu0 %v6043_v0 }
  0xfb   :  { %1626 = vmatprep.mubr.f32.mxu1 %v316_v33  ;;  %2426 = vmatpush1.msra.mxu0 %v1018_v34  ;;  %v1009_v33 = vld [vmem:[%s6041_s1 + $0x3c0] sm:$0xff]  ;;  %v459_v34 = vld [vmem:[#allocation2 + $0xd90] sm:$0xff] }
  0xfc   :  { %1927 = vmatmul.mubr.f32.gmra.mxu0 %v299_v35  ;;  %2122 = vmatprep.subr.mxu1 %v6043_v0 }
  0xfd   :  { %1931 = vmatprep.mubr.f32.mxu0 %v318_v36  ;;  %2123 = vmatpush1.msra.mxu1 %v985_v37  ;;  %v478_v36 = vld [vmem:[#allocation2 + $0xe28] sm:$0xff] }
  0xfe   :  { %1627 = vmatmul.mubr.f32.gmra.mxu1 %v315_v38  ;;  %2427 = vmatprep.subr.mxu0 %v6043_v0  ;;  %v1041_v38 = vld [vmem:[%s6041_s1 + $0x4c0] sm:$0xff] }
  0xff   :  { %1631 = vmatprep.mubr.f32.mxu1 %v334_v39  ;;  %2428 = vmatpush1.msra.mxu0 %v1017_v40  ;;  %v461_v39 = vld [vmem:[#allocation2 + $0xda0] sm:$0xff]  ;;  %v480_v40 = vld [vmem:[#allocation2 + $0xe38] sm:$0xff] }
 0x100   :  { %1932 = vmatmul.mubr.f32.gmra.mxu0 %v317_v41  ;;  %2124 = vmatprep.subr.mxu1 %v6043_v0 }
 0x101   :  { %1936 = vmatprep.mubr.f32.mxu0 %v336_v42  ;;  %2125 = vmatpush2.msra.mxu1 %v1016_v43  ;;  %v1008_v43 = vld [vmem:[%s6041_s1 + $0x3b8] sm:$0xff] }
 0x102   :  { %1632 = vmatmul.mubr.f32.gmra.mxu1 %v333_v44  ;;  %2429 = vmatprep.subr.mxu0 %v6043_v0  ;;  %v477_v44 = vld [vmem:[#allocation2 + $0xe20] sm:$0xff] }
 0x103   :  { %1636 = vmatprep.mubr.f32.mxu1 %v352_v45  ;;  %2430 = vmatpush2.msra.mxu0 %v1048_v46  ;;  %v496_v45 = vld [vmem:[#allocation2 + $0xeb8] sm:$0xff] }
 0x104   :  { %1937 = vmatmul.mubr.f32.gmra.mxu0 %v335_v47  ;;  %2126 = vmatprep.subr.mxu1 %v6043_v0  ;;  %v1040_v47 = vld [vmem:[%s6041_s1 + $0x4b8] sm:$0xff] }
 0x105   :  { %1941 = vmatprep.mubr.f32.mxu0 %v354_v48  ;;  %2127 = vmatpush2.msra.mxu1 %v1015_v49  ;;  %v479_v48 = vld [vmem:[#allocation2 + $0xe30] sm:$0xff] }
 0x106   :  { %1637 = vmatmul.mubr.f32.gmra.mxu1 %v351_v50  ;;  %2431 = vmatprep.subr.mxu0 %v6043_v0  ;;  %v498_v50 = vld [vmem:[#allocation2 + $0xec8] sm:$0xff] }
 0x107   :  { %1641 = vmatprep.mubr.f32.mxu1 %v370_v51  ;;  %2432 = vmatpush2.msra.mxu0 %v1047_v52  ;;  %v1007_v52 = vld [vmem:[%s6041_s1 + $0x3b0] sm:$0xff] }
 0x108   :  { %1942 = vmatmul.mubr.f32.gmra.mxu0 %v353_v53  ;;  %2128 = vmatprep.subr.mxu1 %v6043_v0  ;;  %v495_v53 = vld [vmem:[#allocation2 + $0xeb0] sm:$0xff] }
 0x109   :  { %1946 = vmatprep.mubr.f32.mxu0 %v372_v54  ;;  %2129 = vmatpush2.msra.mxu1 %v1014_v55  ;;  %v514_v55 = vld [vmem:[#allocation2 + $0xf48] sm:$0xff] }
 0x10a   :  { %1642 = vmatmul.mubr.f32.gmra.mxu1 %v369_v56  ;;  %2433 = vmatprep.subr.mxu0 %v6043_v0 }
 0x10b   :  { %1646 = vmatprep.mubr.f32.mxu1 %v388_v57  ;;  %2434 = vmatpush2.msra.mxu0 %v1046_v58  ;;  %v1039_v57 = vld [vmem:[%s6041_s1 + $0x4b0] sm:$0xff]  ;;  %v497_v58 = vld [vmem:[#allocation2 + $0xec0] sm:$0xff] }
 0x10c   :  { %1947 = vmatmul.mubr.f32.gmra.mxu0 %v371_v59  ;;  %2130 = vmatprep.subr.mxu1 %v6043_v0  ;;  %v516_v59 = vld [vmem:[#allocation2 + $0xf58] sm:$0xff] }
 0x10d   :  { %1951 = vmatprep.mubr.f32.mxu0 %v390_v60  ;;  %2131 = vmatpush2.msra.mxu1 %v1013_v61  ;;  %v1006_v61 = vld [vmem:[%s6041_s1 + $0x3a8] sm:$0xff] }
 0x10e   :  { %1647 = vmatmul.mubr.f32.gmra.mxu1 %v387_v62  ;;  %2435 = vmatprep.subr.mxu0 %v6043_v0  ;;  %v513_v62 = vld [vmem:[#allocation2 + $0xf40] sm:$0xff] }
 0x10f   :  { %1651 = vmatprep.mubr.f32.mxu1 %v406_v63  ;;  %v4667_v6 = vpop.f32.mrf.mxu1  ;;  %2436 = vmatpush2.msra.mxu0 %v1045_v1  ;;  %v532_v1 = vld [vmem:[#allocation2 + $0xfd8] sm:$0xff] }
 0x110   :  { %1952 = vmatmul.mubr.f32.gmra.mxu0 %v389_v2  ;;  %v4669_v8 = vpop.f32.mrf.mxu0  ;;  %2132 = vmatprep.subr.mxu1 %v6043_v0 }
 0x111   :  { %1956 = vmatprep.mubr.f32.mxu0 %v408_v3  ;;  %v1365_v11 = vpop.f32.mrf.mxu1  ;;  %2133 = vmatpush2.msra.mxu1 %v1012_v4  ;;  %v1038_v3 = vld [vmem:[%s6041_s1 + $0x4a8] sm:$0xff]  ;;  %v515_v4 = vld [vmem:[#allocation2 + $0xf50] sm:$0xff] }
 0x112   :  { %1652 = vmatmul.mubr.f32.gmra.mxu1 %v405_v5  ;;  %v1245_v13 = vpop.f32.mrf.mxu0  ;;  %2437 = vmatprep.subr.mxu0 %v6043_v0  ;;  %v531_v11 = vld [vmem:[#allocation2 + $0xfd0] sm:$0xff] }
 0x113   :  { %1656 = vmatprep.mubr.f32.mxu1 %v424_v7  ;;  %v4679_v16 = vpop.f32.mrf.mxu1  ;;  %2438 = vmatpush2.msra.mxu0 %v1044_v9  ;;  %v534_v7 = vld [vmem:[#allocation2 + $0xfe8] sm:$0xff] }
 0x114   :  { %1957 = vmatmul.mubr.f32.gmra.mxu0 %v407_v10  ;;  %v4681_v18 = vpop.f32.mrf.mxu0  ;;  %2134 = vmatprep.subr.mxu1 %v6043_v0  ;;  %v1005_v10 = vld [vmem:[%s6041_s1 + $0x3a0] sm:$0xff] }
 0x115   :  { %1961 = vmatprep.mubr.f32.mxu0 %v426_v12  ;;  %v1370_v21 = vpop.f32.mrf.mxu1  ;;  %2135 = vmatpush2.msra.mxu1 %v1011_v14  ;;  %v550_v12 = vld [vmem:[#allocation2 + $0x1068] sm:$0xff] }
 0x116   :  { %1657 = vmatmul.mubr.f32.gmra.mxu1 %v423_v15  ;;  %v1250_v23 = vpop.f32.mrf.mxu0  ;;  %2439 = vmatprep.subr.mxu0 %v6043_v0  ;;  %v1037_v15 = vld [vmem:[%s6041_s1 + $0x4a0] sm:$0xff]  ;;  %v1004_v21 = vld [vmem:[%s6041_s1 + $0x398] sm:$0xff] }
 0x117   :  { %1661 = vmatprep.mubr.f32.mxu1 %v442_v17  ;;  %2440 = vmatpush2.msra.mxu0 %v1043_v19  ;;  %v533_v17 = vld [vmem:[#allocation2 + $0xfe0] sm:$0xff]  ;;  %v552_v19 = vld [vmem:[#allocation2 + $0x1078] sm:$0xff] }
 0x118   :  { %1962 = vmatmul.mubr.f32.gmra.mxu0 %v425_v20  ;;  %v4691_v27 = vpop.f32.mrf.mxu1  ;;  %2136 = vmatprep.subr.mxu1 %v6043_v0 }
 0x119   :  { %1966 = vmatprep.mubr.f32.mxu0 %v444_v22  ;;  %v4697_v30 = vpop.f32.mrf.mxu0  ;;  %2137 = vmatpush2.msra.mxu1 %v1010_v24  ;;  %v549_v22 = vld [vmem:[#allocation2 + $0x1060] sm:$0xff]  ;;  %v568_v24 = vld [vmem:[#allocation2 + $0x10f8] sm:$0xff] }
 0x11a   :  { %1662 = vmatmul.mubr.f32.gmra.mxu1 %v441_v25  ;;  %v1375_v32 = vpop.f32.mrf.mxu1  ;;  %2441 = vmatprep.subr.mxu0 %v6043_v0 }
 0x11b   :  { %1666 = vmatprep.mubr.f32.mxu1 %v460_v26  ;;  %v1255_v35 = vpop.f32.mrf.mxu0  ;;  %2442 = vmatpush2.msra.mxu0 %v1042_v28  ;;  %v1036_v26 = vld [vmem:[%s6041_s1 + $0x498] sm:$0xff]  ;;  %v551_v28 = vld [vmem:[#allocation2 + $0x1070] sm:$0xff] }
 0x11c   :  { %1967 = vmatmul.mubr.f32.gmra.mxu0 %v443_v29  ;;  %v4703_v37 = vpop.f32.mrf.mxu1  ;;  %2138 = vmatprep.subr.mxu1 %v6043_v0  ;;  %v586_v35 = vld [vmem:[#allocation2 + $0x1188] sm:$0xff] }
 0x11d   :  { %1971 = vmatprep.mubr.f32.mxu0 %v462_v31  ;;  %2139 = vmatpush2.msra.mxu1 %v1009_v33  ;;  %v570_v31 = vld [vmem:[#allocation2 + $0x1108] sm:$0xff]  ;;  %v1003_v33 = vld [vmem:[%s6041_s1 + $0x390] sm:$0xff] }
 0x11e   :  { %1667 = vmatmul.mubr.f32.gmra.mxu1 %v459_v34  ;;  %v4709_v41 = vpop.f32.mrf.mxu0  ;;  %v1380_v42 = vpop.f32.mrf.mxu1  ;;  %2443 = vmatprep.subr.mxu0 %v6043_v0  ;;  %v567_v34 = vld [vmem:[#allocation2 + $0x10f0] sm:$0xff] }
 0x11f   :  { %1671 = vmatprep.mubr.f32.mxu1 %v478_v36  ;;  %2444 = vmatpush2.msra.mxu0 %v1041_v38  ;;  %v1035_v38 = vld [vmem:[%s6041_s1 + $0x490] sm:$0xff]  ;;  %v588_v42 = vld [vmem:[#allocation2 + $0x1198] sm:$0xff] }
 0x120   :  { %1972 = vmatmul.mubr.f32.gmra.mxu0 %v461_v39  ;;  %v1260_v46 = vpop.f32.mrf.mxu0  ;;  %2140 = vmatprep.subr.mxu1 %v6043_v0  ;;  %v569_v39 = vld [vmem:[#allocation2 + $0x1100] sm:$0xff] }
 0x121   :  { %1976 = vmatprep.mubr.f32.mxu0 %v480_v40  ;;  %v4719_v49 = vpop.f32.mrf.mxu1  ;;  %2141 = vmatpush2.msra.mxu1 %v1008_v43 }
 0x122   :  { %1672 = vmatmul.mubr.f32.gmra.mxu1 %v477_v44  ;;  %v4721_v51 = vpop.f32.mrf.mxu0  ;;  %2445 = vmatprep.subr.mxu0 %v6043_v0  ;;  %v1002_v44 = vld [vmem:[%s6041_s1 + $0x388] sm:$0xff] }
 0x123   :  { %1676 = vmatprep.mubr.f32.mxu1 %v496_v45  ;;  %v1385_v54 = vpop.f32.mrf.mxu1  ;;  %2446 = vmatpush2.msra.mxu0 %v1040_v47  ;;  %v585_v45 = vld [vmem:[#allocation2 + $0x1180] sm:$0xff]  ;;  %v604_v47 = vld [vmem:[#allocation2 + $0x1218] sm:$0xff] }
 0x124   :  { %1977 = vmatmul.mubr.f32.gmra.mxu0 %v479_v48  ;;  %v1265_v56 = vpop.f32.mrf.mxu0  ;;  %2142 = vmatprep.subr.mxu1 %v6043_v0 }
 0x125   :  { %1981 = vmatprep.mubr.f32.mxu0 %v498_v50  ;;  %2143 = vmatpush2.msra.mxu1 %v1007_v52  ;;  %v1034_v50 = vld [vmem:[%s6041_s1 + $0x488] sm:$0xff]  ;;  %v587_v52 = vld [vmem:[#allocation2 + $0x1190] sm:$0xff]  ;;  %v1001_v56 = vld [vmem:[%s6041_s1 + $0x380] sm:$0xff] }
 0x126   :  { %1677 = vmatmul.mubr.f32.gmra.mxu1 %v495_v53  ;;  %v4731_v60 = vpop.f32.mrf.mxu1  ;;  %2447 = vmatprep.subr.mxu0 %v6043_v0  ;;  %v606_v53 = vld [vmem:[#allocation2 + $0x1228] sm:$0xff] }
 0x127   :  { %1681 = vmatprep.mubr.f32.mxu1 %v514_v55  ;;  %v4737_v63 = vpop.f32.mrf.mxu0  ;;  %2448 = vmatpush2.msra.mxu0 %v1039_v57  ;;  %v603_v57 = vld [vmem:[#allocation2 + $0x1210] sm:$0xff] }
 0x128   :  { %1982 = vmatmul.mubr.f32.gmra.mxu0 %v497_v58  ;;  %v1390_v2 = vpop.f32.mrf.mxu1  ;;  %2144 = vmatprep.subr.mxu1 %v6043_v0  ;;  %v622_v58 = vld [vmem:[#allocation2 + $0x12a8] sm:$0xff] }
 0x129   :  { %1986 = vmatprep.mubr.f32.mxu0 %v516_v59  ;;  %v1270_v5 = vpop.f32.mrf.mxu0  ;;  %2145 = vmatpush2.msra.mxu1 %v1006_v61  ;;  %v1033_v61 = vld [vmem:[%s6041_s1 + $0x480] sm:$0xff]  ;;  %v624_v2 = vld [vmem:[#allocation2 + $0x12b8] sm:$0xff] }
 0x12a   :  { %1682 = vmatmul.mubr.f32.gmra.mxu1 %v513_v62  ;;  %v4743_v9 = vpop.f32.mrf.mxu1  ;;  %2449 = vmatprep.subr.mxu0 %v6043_v0  ;;  %v605_v62 = vld [vmem:[#allocation2 + $0x1220] sm:$0xff] }
 0x12b   :  { %1686 = vmatprep.mubr.f32.mxu1 %v532_v1  ;;  %2450 = vmatpush2.msra.mxu0 %v1038_v3 }
 0x12c   :  { %1987 = vmatmul.mubr.f32.gmra.mxu0 %v515_v4  ;;  %v4749_v13 = vpop.f32.mrf.mxu0  ;;  %v1395_v14 = vpop.f32.mrf.mxu1  ;;  %2146 = vmatprep.subr.mxu1 %v6043_v0  ;;  %v621_v4 = vld [vmem:[#allocation2 + $0x12a0] sm:$0xff] }
 0x12d   :  { %1991 = vmatprep.mubr.f32.mxu0 %v534_v7  ;;  %2147 = vmatpush2.msra.mxu1 %v1005_v10  ;;  %v640_v7 = vld [vmem:[#allocation2 + $0x1338] sm:$0xff] }
 0x12e   :  { %1687 = vmatmul.mubr.f32.gmra.mxu1 %v531_v11  ;;  %v1275_v20 = vpop.f32.mrf.mxu0  ;;  %2451 = vmatprep.subr.mxu0 %v6043_v0  ;;  %v623_v11 = vld [vmem:[#allocation2 + $0x12b0] sm:$0xff] }
 0x12f   :  { %1691 = vmatprep.mubr.f32.mxu1 %v550_v12  ;;  %v4759_v23 = vpop.f32.mrf.mxu1  ;;  %2452 = vmatpush2.msra.mxu0 %v1037_v15  ;;  %v642_v12 = vld [vmem:[#allocation2 + $0x1348] sm:$0xff]  ;;  %v639_v15 = vld [vmem:[#allocation2 + $0x1330] sm:$0xff] }
 0x130   :  { %1992 = vmatmul.mubr.f32.gmra.mxu0 %v533_v17  ;;  %v4761_v25 = vpop.f32.mrf.mxu0  ;;  %2148 = vmatprep.subr.mxu1 %v6043_v0 }
 0x131   :  { %1996 = vmatprep.mubr.f32.mxu0 %v552_v19  ;;  %v1400_v29 = vpop.f32.mrf.mxu1  ;;  %2149 = vmatpush2.msra.mxu1 %v1004_v21  ;;  %v658_v19 = vld [vmem:[#allocation2 + $0x13c8] sm:$0xff]  ;;  %v641_v21 = vld [vmem:[#allocation2 + $0x1340] sm:$0xff] }
 0x132   :  { %1692 = vmatmul.mubr.f32.gmra.mxu1 %v549_v22  ;;  %v1280_v32 = vpop.f32.mrf.mxu0  ;;  %2453 = vmatprep.subr.mxu0 %v6043_v0  ;;  %v676_v29 = vld [vmem:[#allocation2 + $0x1458] sm:$0xff] }
 0x133   :  { %1696 = vmatprep.mubr.f32.mxu1 %v568_v24  ;;  %2454 = vmatpush2.msra.mxu0 %v1036_v26  ;;  %v660_v24 = vld [vmem:[#allocation2 + $0x13d8] sm:$0xff] }
 0x134   :  { %1997 = vmatmul.mubr.f32.gmra.mxu0 %v551_v28  ;;  %v4771_v36 = vpop.f32.mrf.mxu1  ;;  %2150 = vmatprep.subr.mxu1 %v6043_v0  ;;  %v657_v28 = vld [vmem:[#allocation2 + $0x13c0] sm:$0xff] }
 0x135   :  { %2001 = vmatprep.mubr.f32.mxu0 %v570_v31  ;;  %v4777_v40 = vpop.f32.mrf.mxu0  ;;  %2151 = vmatpush2.msra.mxu1 %v1003_v33  ;;  %v659_v33 = vld [vmem:[#allocation2 + $0x13d0] sm:$0xff] }
 0x136   :  { %1697 = vmatmul.mubr.f32.gmra.mxu1 %v567_v34  ;;  %v1405_v43 = vpop.f32.mrf.mxu1  ;;  %2455 = vmatprep.subr.mxu0 %v6043_v0  ;;  %v678_v34 = vld [vmem:[#allocation2 + $0x1468] sm:$0xff] }
 0x137   :  { %1701 = vmatprep.mubr.f32.mxu1 %v586_v35  ;;  %v1285_v46 = vpop.f32.mrf.mxu0  ;;  %2456 = vmatpush2.msra.mxu0 %v1035_v38  ;;  %v675_v38 = vld [vmem:[#allocation2 + $0x1450] sm:$0xff] }
 0x138   :  { %2002 = vmatmul.mubr.f32.gmra.mxu0 %v569_v39  ;;  %v4783_v48 = vpop.f32.mrf.mxu1  ;;  %2152 = vmatprep.subr.mxu1 %v6043_v0  ;;  %v696_v46 = vld [vmem:[#allocation2 + $0x14f8] sm:$0xff] }
 0x139   :  { %2006 = vmatprep.mubr.f32.mxu0 %v588_v42  ;;  %2153 = vmatpush2.msra.mxu1 %v1002_v44  ;;  %v694_v42 = vld [vmem:[#allocation2 + $0x14e8] sm:$0xff]  ;;  %v677_v44 = vld [vmem:[#allocation2 + $0x1460] sm:$0xff] }
 0x13a   :  { %1702 = vmatmul.mubr.f32.gmra.mxu1 %v585_v45  ;;  %v4789_v54 = vpop.f32.mrf.mxu0  ;;  %v1410_v55 = vpop.f32.mrf.mxu1  ;;  %2457 = vmatprep.subr.mxu0 %v6043_v0 }
 0x13b   :  { %1706 = vmatprep.mubr.f32.mxu1 %v604_v47  ;;  %2458 = vmatpush2.msra.mxu0 %v1034_v50  ;;  %v693_v50 = vld [vmem:[#allocation2 + $0x14e0] sm:$0xff]  ;;  %v695_v55 = vld [vmem:[#allocation2 + $0x14f0] sm:$0xff] }
 0x13c   :  { %2007 = vmatmul.mubr.f32.gmra.mxu0 %v587_v52  ;;  %v1290_v59 = vpop.f32.mrf.mxu0  ;;  %2154 = vmatprep.subr.mxu1 %v6043_v0  ;;  %v712_v52 = vld [vmem:[#allocation2 + $0x1578] sm:$0xff] }
 0x13d   :  { %2011 = vmatprep.mubr.f32.mxu0 %v606_v53  ;;  %v4799_v1 = vpop.f32.mrf.mxu1  ;;  %2155 = vmatpush2.msra.mxu1 %v1001_v56  ;;  %v711_v59 = vld [vmem:[#allocation2 + $0x1570] sm:$0xff] }
 0x13e   :  { %1707 = vmatmul.mubr.f32.gmra.mxu1 %v603_v57  ;;  %v4801_v3 = vpop.f32.mrf.mxu0  ;;  %2459 = vmatprep.subr.mxu0 %v6043_v0  ;;  %v714_v57 = vld [vmem:[#allocation2 + $0x1588] sm:$0xff] }
 0x13f   :  { %1711 = vmatprep.mubr.f32.mxu1 %v622_v58  ;;  %v1415_v5 = vpop.f32.mrf.mxu1  ;;  %2460 = vmatpush2.msra.mxu0 %v1033_v61 }
 0x140   :  { %2012 = vmatmul.mubr.f32.gmra.mxu0 %v605_v62  ;;  %v1295_v10 = vpop.f32.mrf.mxu0  ;;  %2702 = vmatprep.subr.mxu1 %v6043_v0  ;;  %v730_v62 = vld [vmem:[#allocation2 + $0x1608] sm:$0xff]  ;;  %v732_v5 = vld [vmem:[#allocation2 + $0x1618] sm:$0xff] }
 0x141   :  { %2016 = vmatprep.mubr.f32.mxu0 %v624_v2  ;;  %3007 = vmatprep.subr.mxu0 %v6043_v0 }
 0x142   :  { %1712 = vmatmul.mubr.f32.gmra.mxu1 %v621_v4  ;;  %v4806_v14 = vpop.f32.mrf.mxu1  ;;  %v713_v4 = vld [vmem:[#allocation2 + $0x1580] sm:$0xff] }
 0x143   :  { %1716 = vmatprep.mubr.f32.mxu1 %v640_v7  ;;  %v4808_v17 = vpop.f32.mrf.mxu0 }
 0x144   :  { %2017 = vmatmul.mubr.f32.gmra.mxu0 %v623_v11  ;;  %v1420_v20 = vpop.f32.mrf.mxu1  ;;  %v729_v11 = vld [vmem:[#allocation2 + $0x1600] sm:$0xff] }
 0x145   :  { %2021 = vmatprep.mubr.f32.mxu0 %v642_v12  ;;  %v1300_v22 = vpop.f32.mrf.mxu0 }
 0x146   :  { %1717 = vmatmul.mubr.f32.gmra.mxu1 %v639_v15  ;;  %v4810_v26 = vpop.f32.mrf.mxu1  ;;  %v748_v15 = vld [vmem:[#allocation2 + $0x1698] sm:$0xff] }
 0x147   :  { %1721 = vmatprep.mubr.f32.mxu1 %v658_v19  ;;  %v731_v19 = vld [vmem:[#allocation2 + $0x1610] sm:$0xff] }
 0x148   :  { %2022 = vmatmul.mubr.f32.gmra.mxu0 %v641_v21  ;;  %v4812_v31 = vpop.f32.mrf.mxu0  ;;  %v1425_v32 = vpop.f32.mrf.mxu1  ;;  %v750_v21 = vld [vmem:[#allocation2 + $0x16a8] sm:$0xff] }
 0x149   :  { %2026 = vmatprep.mubr.f32.mxu0 %v660_v24  ;;  %v747_v24 = vld [vmem:[#allocation2 + $0x1690] sm:$0xff]  ;;  %v766_v32 = vld [vmem:[#allocation2 + $0x1728] sm:$0xff] }
 0x14a   :  { %1722 = vmatmul.mubr.f32.gmra.mxu1 %v657_v28  ;;  %v1305_v35 = vpop.f32.mrf.mxu0 }
 0x14b   :  { %1726 = vmatprep.mubr.f32.mxu1 %v676_v29  ;;  %v4814_v39 = vpop.f32.mrf.mxu1  ;;  %v768_v35 = vld [vmem:[#allocation2 + $0x1738] sm:$0xff] }
 0x14c   :  { %2027 = vmatmul.mubr.f32.gmra.mxu0 %v659_v33  ;;  %v4816_v43 = vpop.f32.mrf.mxu0  ;;  %v749_v33 = vld [vmem:[#allocation2 + $0x16a0] sm:$0xff] }
 0x14d   :  { %2031 = vmatprep.mubr.f32.mxu0 %v678_v34  ;;  %v1430_v45 = vpop.f32.mrf.mxu1 }
 0x14e   :  { %1727 = vmatmul.mubr.f32.gmra.mxu1 %v675_v38  ;;  %v1310_v47 = vpop.f32.mrf.mxu0  ;;  %v765_v38 = vld [vmem:[#allocation2 + $0x1720] sm:$0xff]  ;;  %v784_v45 = vld [vmem:[#allocation2 + $0x17b8] sm:$0xff] }
 0x14f   :  { %1731 = vmatprep.mubr.f32.mxu1 %v694_v42 }
 0x150   :  { %2032 = vmatmul.mubr.f32.gmra.mxu0 %v677_v44  ;;  %v4818_v53 = vpop.f32.mrf.mxu1 }
 0x151   :  { %2036 = vmatprep.mubr.f32.mxu0 %v696_v46  ;;  %v4820_v56 = vpop.f32.mrf.mxu0  ;;  %v767_v46 = vld [vmem:[#allocation2 + $0x1730] sm:$0xff] }
 0x152   :  { %1732 = vmatmul.mubr.f32.gmra.mxu1 %v693_v50  ;;  %v1435_v58 = vpop.f32.mrf.mxu1 }
 0x153   :  { %1736 = vmatprep.mubr.f32.mxu1 %v712_v52  ;;  %v1315_v61 = vpop.f32.mrf.mxu0  ;;  %v786_v52 = vld [vmem:[#allocation2 + $0x17c8] sm:$0xff] }
 0x154   :  { %2037 = vmatmul.mubr.f32.gmra.mxu0 %v695_v55  ;;  %v4822_v2 = vpop.f32.mrf.mxu1  ;;  %v783_v55 = vld [vmem:[#allocation2 + $0x17b0] sm:$0xff]  ;;  %v785_v61 = vld [vmem:[#allocation2 + $0x17c0] sm:$0xff] }
 0x155   :  { %2041 = vmatprep.mubr.f32.mxu0 %v714_v57 }
 0x156   :  { %1737 = vmatmul.mubr.f32.gmra.mxu1 %v711_v59  ;;  %v4824_v7 = vpop.f32.mrf.mxu0  ;;  %v1440_v10 = vpop.f32.mrf.mxu1  ;;  %v802_v59 = vld [vmem:[#allocation2 + $0x1848] sm:$0xff] }
 0x157   :  { %1741 = vmatprep.mubr.f32.mxu1 %v730_v62  ;;  %v801_v10 = vld [vmem:[#allocation2 + $0x1840] sm:$0xff] }
 0x158   :  { %2042 = vmatmul.mubr.f32.gmra.mxu0 %v713_v4  ;;  %v1320_v12 = vpop.f32.mrf.mxu0  ;;  %v804_v4 = vld [vmem:[#allocation2 + $0x1858] sm:$0xff] }
 0x159   :  { %2046 = vmatprep.mubr.f32.mxu0 %v732_v5  ;;  %v4826_v20 = vpop.f32.mrf.mxu1  ;;  %v820_v12 = vld [vmem:[#allocation2 + $0x18d8] sm:$0xff] }
 0x15a   :  { %1742 = vmatmul.mubr.f32.gmra.mxu1 %v729_v11  ;;  %v4828_v22 = vpop.f32.mrf.mxu0 }
 0x15b   :  { %1746 = vmatprep.mubr.f32.mxu1 %v748_v15  ;;  %v1445_v28 = vpop.f32.mrf.mxu1  ;;  %v803_v15 = vld [vmem:[#allocation2 + $0x1850] sm:$0xff] }
 0x15c   :  { %2047 = vmatmul.mubr.f32.gmra.mxu0 %v731_v19  ;;  %v1325_v29 = vpop.f32.mrf.mxu0  ;;  %v819_v28 = vld [vmem:[#allocation2 + $0x18d0] sm:$0xff] }
 0x15d   :  { %2051 = vmatprep.mubr.f32.mxu0 %v750_v21 }
 0x15e   :  { %1747 = vmatmul.mubr.f32.gmra.mxu1 %v747_v24  ;;  %v4830_v34 = vpop.f32.mrf.mxu1  ;;  %v822_v24 = vld [vmem:[#allocation2 + $0x18e8] sm:$0xff] }
 0x15f   :  { %1751 = vmatprep.mubr.f32.mxu1 %v766_v32  ;;  %v4832_v42 = vpop.f32.mrf.mxu0  ;;  %v838_v32 = vld [vmem:[#allocation2 + $0x1968] sm:$0xff] }
 0x160   :  { %2052 = vmatmul.mubr.f32.gmra.mxu0 %v749_v33  ;;  %v1450_v44 = vpop.f32.mrf.mxu1 }
 0x161   :  { %2056 = vmatprep.mubr.f32.mxu0 %v768_v35  ;;  %v1330_v47 = vpop.f32.mrf.mxu0  ;;  %v821_v35 = vld [vmem:[#allocation2 + $0x18e0] sm:$0xff]  ;;  %v840_v44 = vld [vmem:[#allocation2 + $0x1978] sm:$0xff] }
 0x162   :  { %1752 = vmatmul.mubr.f32.gmra.mxu1 %v765_v38  ;;  %v4834_v50 = vpop.f32.mrf.mxu1 }
 0x163   :  { %1756 = vmatprep.mubr.f32.mxu1 %v784_v45 }
 0x164   :  { %2057 = vmatmul.mubr.f32.gmra.mxu0 %v767_v46  ;;  %v4836_v57 = vpop.f32.mrf.mxu0  ;;  %v1455_v58 = vpop.f32.mrf.mxu1  ;;  %v837_v46 = vld [vmem:[#allocation2 + $0x1960] sm:$0xff] }
 0x165   :  { %2061 = vmatprep.mubr.f32.mxu0 %v786_v52  ;;  %v856_v52 = vld [vmem:[#allocation2 + $0x19f8] sm:$0xff] }
 0x166   :  { %1757 = vmatmul.mubr.f32.gmra.mxu1 %v783_v55  ;;  %v1335_v62 = vpop.f32.mrf.mxu0  ;;  %v839_v55 = vld [vmem:[#allocation2 + $0x1970] sm:$0xff] }
 0x167   :  { %1761 = vmatprep.mubr.f32.mxu1 %v802_v59  ;;  %v4838_v5 = vpop.f32.mrf.mxu1  ;;  %v855_v62 = vld [vmem:[#allocation2 + $0x19f0] sm:$0xff] }
 0x168   :  { %2062 = vmatmul.mubr.f32.gmra.mxu0 %v785_v61  ;;  %v4840_v11 = vpop.f32.mrf.mxu0  ;;  %v858_v61 = vld [vmem:[#allocation2 + $0x1a08] sm:$0xff] }
 0x169   :  { %2066 = vmatprep.mubr.f32.mxu0 %v804_v4  ;;  %v1460_v19 = vpop.f32.mrf.mxu1 }
 0x16a   :  { %1762 = vmatmul.mubr.f32.gmra.mxu1 %v801_v10  ;;  %v1340_v21 = vpop.f32.mrf.mxu0  ;;  %v874_v10 = vld [vmem:[#allocation2 + $0x1a88] sm:$0xff] }
 0x16b   :  { %1766 = vmatprep.mubr.f32.mxu1 %v820_v12  ;;  %v876_v21 = vld [vmem:[#allocation2 + $0x1a98] sm:$0xff] }
 0x16c   :  { %2067 = vmatmul.mubr.f32.gmra.mxu0 %v803_v15  ;;  %v4842_v29 = vpop.f32.mrf.mxu1  ;;  %v857_v15 = vld [vmem:[#allocation2 + $0x1a00] sm:$0xff] }
 0x16d   :  { %2071 = vmatprep.mubr.f32.mxu0 %v822_v24  ;;  %v4844_v33 = vpop.f32.mrf.mxu0 }
 0x16e   :  { %1767 = vmatmul.mubr.f32.gmra.mxu1 %v819_v28  ;;  %v1465_v38 = vpop.f32.mrf.mxu1  ;;  %v873_v28 = vld [vmem:[#allocation2 + $0x1a80] sm:$0xff] }
 0x16f   :  { %v1345_v45 = vpop.f32.mrf.mxu0  ;;  %1771 = vmatprep.mubr.f32.mxu1 %v838_v32  ;;  %v875_v38 = vld [vmem:[#allocation2 + $0x1a90] sm:$0xff] }
 0x170   :  { %2072 = vmatmul.mubr.f32.gmra.mxu0 %v821_v35  ;;  %v4846_v47 = vpop.f32.mrf.mxu1  ;;  %v32_v35 = vld [vmem:[#allocation2 + $0x38] sm:$0xff]  ;;  %v34_v45 = vld [vmem:[#allocation2 + $0x48] sm:$0xff] }
 0x171   :  { %2076 = vmatprep.mubr.f32.mxu0 %v840_v44 }
 0x172   :  { %1772 = vmatmul.mubr.f32.gmra.mxu1 %v837_v46  ;;  %v4848_v58 = vpop.f32.mrf.mxu0  ;;  %v1470_v59 = vpop.f32.mrf.mxu1 }
 0x173   :  { %1776 = vmatprep.mubr.f32.mxu1 %v856_v52  ;;  %v31_v52 = vld [vmem:[#allocation2 + $0x30] sm:$0xff]  ;;  %v1064_v59 = vld [vmem:[%s6041_s1 + $0x578] sm:$0xff] }
 0x174   :  { %2077 = vmatmul.mubr.f32.gmra.mxu0 %v839_v55  ;;  %v1350_v4 = vpop.f32.mrf.mxu0 }
 0x175   :  { %v4850_v12 = vpop.f32.mrf.mxu1  ;;  %2081 = vmatprep.mubr.f32.mxu0 %v858_v61  ;;  %v50_v61 = vld [vmem:[#allocation2 + $0xc8] sm:$0xff]  ;;  %v33_v4 = vld [vmem:[#allocation2 + $0x40] sm:$0xff] }
 0x176   :  { %1777 = vmatmul.mubr.f32.gmra.mxu1 %v855_v62  ;;  %v4852_v19 = vpop.f32.mrf.mxu0 }
 0x177   :  { %v1475_v24 = vpop.f32.mrf.mxu1  ;;  %1781 = vmatprep.mubr.f32.mxu1 %v874_v10 }
 0x178   :  { %2082 = vmatmul.mubr.f32.gmra.mxu0 %v857_v15  ;;  %v1355_v32 = vpop.f32.mrf.mxu0  ;;  %v1096_v15 = vld [vmem:[%s6041_s1 + $0x678] sm:$0xff] }
 0x179   :  { %2086 = vmatprep.mubr.f32.mxu0 %v876_v21  ;;  %v52_v21 = vld [vmem:[#allocation2 + $0xd8] sm:$0xff] }
 0x17a   :  { %v4854_v44 = vpop.f32.mrf.mxu1  ;;  %1782 = vmatmul.mubr.f32.gmra.mxu1 %v873_v28  ;;  %v49_v28 = vld [vmem:[#allocation2 + $0xc0] sm:$0xff] }
 0x17b   :  { %v4856_v46 = vpop.f32.mrf.mxu0  ;;  %2156 = vmatprep.mubr.f32.mxu1 %v32_v35 }
 0x17c   :  { %2087 = vmatmul.mubr.f32.gmra.mxu0 %v875_v38  ;;  %v1480_v55 = vpop.f32.mrf.mxu1  ;;  %v68_v38 = vld [vmem:[#allocation2 + $0x158] sm:$0xff] }
 0x17d   :  { %v1360_v62 = vpop.f32.mrf.mxu0  ;;  %2461 = vmatprep.mubr.f32.mxu0 %v34_v45  ;;  %v1063_v45 = vld [vmem:[%s6041_s1 + $0x570] sm:$0xff] }
 0x17e   :  { %v1548_v10 = vpop.f32.mrf.mxu1  ;;  %2157 = vmatmul.mubr.f32.vlgmr.msra.gmra.mxu1 %v31_v52  ;;  %v51_v55 = vld [vmem:[#allocation2 + $0xd0] sm:$0xff] }
 0x17f   :  { %v1549_v24 = vadd.f32 %v1548_v10, %v4669_v8  ;;  %2703 = vmatpush1.msra.mxu1 %v1064_v59  ;;  %2161 = vmatprep.mubr.f32.mxu1 %v50_v61  ;;  %v70_v59 = vld [vmem:[#allocation2 + $0x168] sm:$0xff]  ;;  %v1095_v61 = vld [vmem:[%s6041_s1 + $0x670] sm:$0xff] }
 0x180   :  { %v1853_v32 = vpop.f32.mrf.mxu0  ;;  %2462 = vmatmul.mubr.f32.vlgmr.msra.gmra.mxu0 %v33_v4  ;;  %v1550_v35 = vpop.f32.mrf.mxu1  ;;  %2704 = vmatprep.subr.mxu1 %v6043_v0  ;;  %v67_v10 = vld [vmem:[#allocation2 + $0x150] sm:$0xff] }
 0x181   :  { %v4869_v52 = vadd.f32 %v1853_v32, %v1549_v24  ;;  %3008 = vmatpush1.msra.mxu0 %v1096_v15  ;;  %2466 = vmatprep.mubr.f32.mxu0 %v52_v21  ;;  %v86_v21 = vld [vmem:[#allocation2 + $0x1e8] sm:$0xff]  ;;  %v69_v35 = vld [vmem:[#allocation2 + $0x160] sm:$0xff] }
 0x182   :  { %v1855_v62 = vpop.f32.mrf.mxu0  ;;  %v1553_v8 = vpop.f32.mrf.mxu1  ;;  %2162 = vmatmul.mubr.f32.gmra.mxu1 %v49_v28  ;;  %3009 = vmatprep.subr.mxu0 %v6043_v0  ;;  %v1062_v28 = vld [vmem:[%s6041_s1 + $0x568] sm:$0xff] }
 0x183   :  { %v1554_v4 = vadd.f32 %v1553_v8, %v4681_v18  ;;  %2166 = vmatprep.mubr.f32.mxu1 %v68_v38  ;;  %2705 = vmatpush1.msra.mxu1 %v1063_v45  ;;  %v88_v38 = vld [vmem:[#allocation2 + $0x1f8] sm:$0xff]  ;;  %v1094_v45 = vld [vmem:[%s6041_s1 + $0x668] sm:$0xff]  ;;  %v85_v8 = vld [vmem:[#allocation2 + $0x1e0] sm:$0xff] }
 0x184   :  { %v1858_v24 = vpop.f32.mrf.mxu0  ;;  %2467 = vmatmul.mubr.f32.gmra.mxu0 %v51_v55  ;;  %v1555_v15 = vpop.f32.mrf.mxu1  ;;  %2706 = vmatprep.subr.mxu1 %v6043_v0 }
 0x185   :  { %v4880_v32 = vadd.f32 %v1858_v24, %v1554_v4  ;;  %2471 = vmatprep.mubr.f32.mxu0 %v70_v59  ;;  %3010 = vmatpush1.msra.mxu0 %v1095_v61  ;;  %v104_v24 = vld [vmem:[#allocation2 + $0x278] sm:$0xff]  ;;  %v1061_v61 = vld [vmem:[%s6041_s1 + $0x560] sm:$0xff]  ;;  %v87_v15 = vld [vmem:[#allocation2 + $0x1f0] sm:$0xff] }
 0x186   :  { %v1860_v62 = vpop.f32.mrf.mxu0  ;;  %v1558_v18 = vpop.f32.mrf.mxu1  ;;  %2167 = vmatmul.mubr.f32.gmra.mxu1 %v67_v10  ;;  %3011 = vmatprep.subr.mxu0 %v6043_v0 }
 0x187   :  { %v1559_v55 = vadd.f32 %v1558_v18, %v4697_v30  ;;  %2171 = vmatprep.mubr.f32.mxu1 %v86_v21  ;;  %2707 = vmatpush1.msra.mxu1 %v1062_v28  ;;  %v106_v21 = vld [vmem:[#allocation2 + $0x288] sm:$0xff]  ;;  %v1093_v28 = vld [vmem:[%s6041_s1 + $0x660] sm:$0xff]  ;;  %v103_v18 = vld [vmem:[#allocation2 + $0x270] sm:$0xff] }
 0x188   :  { %v1863_v4 = vpop.f32.mrf.mxu0  ;;  %2472 = vmatmul.mubr.f32.gmra.mxu0 %v69_v35  ;;  %v1560_v59 = vpop.f32.mrf.mxu1  ;;  %2708 = vmatprep.subr.mxu1 %v6043_v0 }
 0x189   :  { %v4891_v10 = vadd.f32 %v1863_v4, %v1559_v55  ;;  %2476 = vmatprep.mubr.f32.mxu0 %v88_v38  ;;  %3012 = vmatpush1.msra.mxu0 %v1094_v45  ;;  %v122_v4 = vld [vmem:[#allocation2 + $0x308] sm:$0xff]  ;;  %v1060_v45 = vld [vmem:[%s6041_s1 + $0x558] sm:$0xff]  ;;  %v105_v59 = vld [vmem:[#allocation2 + $0x280] sm:$0xff] }
 0x18a   :  { %v1865_v62 = vpop.f32.mrf.mxu0  ;;  %v1563_v30 = vpop.f32.mrf.mxu1  ;;  %2172 = vmatmul.mubr.f32.gmra.mxu1 %v85_v8  ;;  %3013 = vmatprep.subr.mxu0 %v6043_v0 }
 0x18b   :  { %v1564_v35 = vadd.f32 %v1563_v30, %v4709_v41  ;;  %2176 = vmatprep.mubr.f32.mxu1 %v104_v24  ;;  %2709 = vmatpush1.msra.mxu1 %v1061_v61  ;;  %v124_v24 = vld [vmem:[#allocation2 + $0x318] sm:$0xff]  ;;  %v121_v30 = vld [vmem:[#allocation2 + $0x300] sm:$0xff] }
 0x18c   :  { %v1868_v55 = vpop.f32.mrf.mxu0  ;;  %2477 = vmatmul.mubr.f32.gmra.mxu0 %v87_v15  ;;  %v1565_v38 = vpop.f32.mrf.mxu1  ;;  %2710 = vmatprep.subr.mxu1 %v6043_v0  ;;  %v1092_v61 = vld [vmem:[%s6041_s1 + $0x658] sm:$0xff] }
 0x18d   :  { %v4902_v8 = vadd.f32 %v1868_v55, %v1564_v35  ;;  %2481 = vmatprep.mubr.f32.mxu0 %v106_v21  ;;  %3014 = vmatpush1.msra.mxu0 %v1093_v28  ;;  %v140_v55 = vld [vmem:[#allocation2 + $0x398] sm:$0xff]  ;;  %v1059_v28 = vld [vmem:[%s6041_s1 + $0x550] sm:$0xff] }
 0x18e   :  { %v1870_v62 = vpop.f32.mrf.mxu0  ;;  %v1568_v41 = vpop.f32.mrf.mxu1  ;;  %2177 = vmatmul.mubr.f32.gmra.mxu1 %v103_v18  ;;  %3015 = vmatprep.subr.mxu0 %v6043_v0  ;;  %v123_v38 = vld [vmem:[#allocation2 + $0x310] sm:$0xff] }
 0x18f   :  { %v1569_v15 = vadd.f32 %v1568_v41, %v4721_v51  ;;  %2181 = vmatprep.mubr.f32.mxu1 %v122_v4  ;;  %2711 = vmatpush1.msra.mxu1 %v1060_v45  ;;  %v142_v4 = vld [vmem:[#allocation2 + $0x3a8] sm:$0xff]  ;;  %v1091_v45 = vld [vmem:[%s6041_s1 + $0x650] sm:$0xff] }
 0x190   :  { %v1873_v35 = vpop.f32.mrf.mxu0  ;;  %2482 = vmatmul.mubr.f32.gmra.mxu0 %v105_v59  ;;  %v1570_v21 = vpop.f32.mrf.mxu1  ;;  %2712 = vmatprep.subr.mxu1 %v6043_v0  ;;  %v139_v41 = vld [vmem:[#allocation2 + $0x390] sm:$0xff] }
 0x191   :  { %v4913_v18 = vadd.f32 %v1873_v35, %v1569_v15  ;;  %2486 = vmatprep.mubr.f32.mxu0 %v124_v24  ;;  %3016 = vmatpush1.msra.mxu0 %v1092_v61  ;;  %v158_v35 = vld [vmem:[#allocation2 + $0x428] sm:$0xff]  ;;  %v141_v21 = vld [vmem:[#allocation2 + $0x3a0] sm:$0xff] }
 0x192   :  { %v1875_v62 = vpop.f32.mrf.mxu0  ;;  %v1573_v51 = vpop.f32.mrf.mxu1  ;;  %2182 = vmatmul.mubr.f32.gmra.mxu1 %v121_v30  ;;  %3017 = vmatprep.subr.mxu0 %v6043_v0  ;;  %v1058_v61 = vld [vmem:[%s6041_s1 + $0x548] sm:$0xff] }
 0x193   :  { %v1574_v59 = vadd.f32 %v1573_v51, %v4737_v63  ;;  %2186 = vmatprep.mubr.f32.mxu1 %v140_v55  ;;  %2713 = vmatpush1.msra.mxu1 %v1059_v28  ;;  %v160_v55 = vld [vmem:[#allocation2 + $0x438] sm:$0xff]  ;;  %v1090_v28 = vld [vmem:[%s6041_s1 + $0x648] sm:$0xff]  ;;  %v157_v51 = vld [vmem:[#allocation2 + $0x420] sm:$0xff] }
 0x194   :  { %v1878_v15 = vpop.f32.mrf.mxu0  ;;  %2487 = vmatmul.mubr.f32.gmra.mxu0 %v123_v38  ;;  %v1575_v24 = vpop.f32.mrf.mxu1  ;;  %2714 = vmatprep.subr.mxu1 %v6043_v0 }
 0x195   :  { %v4924_v30 = vadd.f32 %v1878_v15, %v1574_v59  ;;  %2491 = vmatprep.mubr.f32.mxu0 %v142_v4  ;;  %3018 = vmatpush1.msra.mxu0 %v1091_v45  ;;  %v176_v15 = vld [vmem:[#allocation2 + $0x4b8] sm:$0xff]  ;;  %v1057_v45 = vld [vmem:[%s6041_s1 + $0x540] sm:$0xff]  ;;  %v159_v24 = vld [vmem:[#allocation2 + $0x430] sm:$0xff] }
 0x196   :  { %v1880_v62 = vpop.f32.mrf.mxu0  ;;  %v1578_v63 = vpop.f32.mrf.mxu1  ;;  %2187 = vmatmul.mubr.f32.gmra.mxu1 %v139_v41  ;;  %3019 = vmatprep.subr.mxu0 %v6043_v0 }
 0x197   :  { %v1579_v38 = vadd.f32 %v1578_v63, %v4749_v13  ;;  %2191 = vmatprep.mubr.f32.mxu1 %v158_v35  ;;  %2715 = vmatpush1.msra.mxu1 %v1058_v61  ;;  %v178_v35 = vld [vmem:[#allocation2 + $0x4c8] sm:$0xff]  ;;  %v1089_v61 = vld [vmem:[%s6041_s1 + $0x640] sm:$0xff]  ;;  %v175_v63 = vld [vmem:[#allocation2 + $0x4b0] sm:$0xff] }
 0x198   :  { %v1883_v59 = vpop.f32.mrf.mxu0  ;;  %2492 = vmatmul.mubr.f32.gmra.mxu0 %v141_v21  ;;  %v1580_v4 = vpop.f32.mrf.mxu1  ;;  %2716 = vmatprep.subr.mxu1 %v6043_v0 }
 0x199   :  { %v4935_v41 = vadd.f32 %v1883_v59, %v1579_v38  ;;  %2496 = vmatprep.mubr.f32.mxu0 %v160_v55  ;;  %3020 = vmatpush1.msra.mxu0 %v1090_v28  ;;  %v194_v59 = vld [vmem:[#allocation2 + $0x548] sm:$0xff]  ;;  %v1056_v28 = vld [vmem:[%s6041_s1 + $0x538] sm:$0xff]  ;;  %v177_v4 = vld [vmem:[#allocation2 + $0x4c0] sm:$0xff] }
 0x19a   :  { %v1885_v62 = vpop.f32.mrf.mxu0  ;;  %v1583_v13 = vpop.f32.mrf.mxu1  ;;  %2192 = vmatmul.mubr.f32.gmra.mxu1 %v157_v51  ;;  %3021 = vmatprep.subr.mxu0 %v6043_v0 }
 0x19b   :  { %v1584_v21 = vadd.f32 %v1583_v13, %v4761_v25  ;;  %2196 = vmatprep.mubr.f32.mxu1 %v176_v15  ;;  %2717 = vmatpush1.msra.mxu1 %v1057_v45  ;;  %v196_v15 = vld [vmem:[#allocation2 + $0x558] sm:$0xff]  ;;  %v193_v13 = vld [vmem:[#allocation2 + $0x540] sm:$0xff] }
 0x19c   :  { %v1888_v38 = vpop.f32.mrf.mxu0  ;;  %2497 = vmatmul.mubr.f32.gmra.mxu0 %v159_v24  ;;  %v1585_v55 = vpop.f32.mrf.mxu1  ;;  %2718 = vmatprep.subr.mxu1 %v6043_v0  ;;  %v1088_v45 = vld [vmem:[%s6041_s1 + $0x638] sm:$0xff] }
 0x19d   :  { %v4946_v51 = vadd.f32 %v1888_v38, %v1584_v21  ;;  %2501 = vmatprep.mubr.f32.mxu0 %v178_v35  ;;  %3022 = vmatpush1.msra.mxu0 %v1089_v61  ;;  %v212_v38 = vld [vmem:[#allocation2 + $0x5d8] sm:$0xff]  ;;  %v1055_v61 = vld [vmem:[%s6041_s1 + $0x530] sm:$0xff] }
 0x19e   :  { %v1890_v62 = vpop.f32.mrf.mxu0  ;;  %v1588_v25 = vpop.f32.mrf.mxu1  ;;  %2197 = vmatmul.mubr.f32.gmra.mxu1 %v175_v63  ;;  %3023 = vmatprep.subr.mxu0 %v6043_v0  ;;  %v195_v55 = vld [vmem:[#allocation2 + $0x550] sm:$0xff] }
 0x19f   :  { %v1589_v24 = vadd.f32 %v1588_v25, %v4777_v40  ;;  %2201 = vmatprep.mubr.f32.mxu1 %v194_v59  ;;  %2719 = vmatpush1.msra.mxu1 %v1056_v28  ;;  %v214_v59 = vld [vmem:[#allocation2 + $0x5e8] sm:$0xff]  ;;  %v1087_v28 = vld [vmem:[%s6041_s1 + $0x630] sm:$0xff] }
 0x1a0   :  { %v1893_v21 = vpop.f32.mrf.mxu0  ;;  %2502 = vmatmul.mubr.f32.gmra.mxu0 %v177_v4  ;;  %v1590_v35 = vpop.f32.mrf.mxu1  ;;  %2720 = vmatprep.subr.mxu1 %v6043_v0  ;;  %v211_v25 = vld [vmem:[#allocation2 + $0x5d0] sm:$0xff] }
 0x1a1   :  { %v4957_v63 = vadd.f32 %v1893_v21, %v1589_v24  ;;  %2506 = vmatprep.mubr.f32.mxu0 %v196_v15  ;;  %3024 = vmatpush1.msra.mxu0 %v1088_v45  ;;  %v230_v21 = vld [vmem:[#allocation2 + $0x668] sm:$0xff]  ;;  %v213_v35 = vld [vmem:[#allocation2 + $0x5e0] sm:$0xff] }
 0x1a2   :  { %v1895_v62 = vpop.f32.mrf.mxu0  ;;  %v1593_v40 = vpop.f32.mrf.mxu1  ;;  %2202 = vmatmul.mubr.f32.gmra.mxu1 %v193_v13  ;;  %3025 = vmatprep.subr.mxu0 %v6043_v0  ;;  %v1054_v45 = vld [vmem:[%s6041_s1 + $0x528] sm:$0xff] }
 0x1a3   :  { %v1594_v4 = vadd.f32 %v1593_v40, %v4789_v54  ;;  %2206 = vmatprep.mubr.f32.mxu1 %v212_v38  ;;  %2721 = vmatpush1.msra.mxu1 %v1055_v61  ;;  %v232_v38 = vld [vmem:[#allocation2 + $0x678] sm:$0xff]  ;;  %v1086_v61 = vld [vmem:[%s6041_s1 + $0x628] sm:$0xff]  ;;  %v229_v40 = vld [vmem:[#allocation2 + $0x660] sm:$0xff] }
 0x1a4   :  { %v1898_v24 = vpop.f32.mrf.mxu0  ;;  %2507 = vmatmul.mubr.f32.gmra.mxu0 %v195_v55  ;;  %v1595_v15 = vpop.f32.mrf.mxu1  ;;  %2722 = vmatprep.subr.mxu1 %v6043_v0 }
 0x1a5   :  { %v4968_v13 = vadd.f32 %v1898_v24, %v1594_v4  ;;  %2511 = vmatprep.mubr.f32.mxu0 %v214_v59  ;;  %3026 = vmatpush1.msra.mxu0 %v1087_v28  ;;  %v248_v24 = vld [vmem:[#allocation2 + $0x6f8] sm:$0xff]  ;;  %v1053_v28 = vld [vmem:[%s6041_s1 + $0x520] sm:$0xff]  ;;  %v231_v15 = vld [vmem:[#allocation2 + $0x670] sm:$0xff] }
 0x1a6   :  { %v1900_v62 = vpop.f32.mrf.mxu0  ;;  %v1598_v54 = vpop.f32.mrf.mxu1  ;;  %2207 = vmatmul.mubr.f32.gmra.mxu1 %v211_v25  ;;  %3027 = vmatprep.subr.mxu0 %v6043_v0 }
 0x1a7   :  { %v1599_v55 = vadd.f32 %v1598_v54, %v4801_v3  ;;  %2211 = vmatprep.mubr.f32.mxu1 %v230_v21  ;;  %2723 = vmatpush1.msra.mxu1 %v1054_v45  ;;  %v250_v21 = vld [vmem:[#allocation2 + $0x708] sm:$0xff]  ;;  %v1085_v45 = vld [vmem:[%s6041_s1 + $0x620] sm:$0xff]  ;;  %v247_v54 = vld [vmem:[#allocation2 + $0x6f0] sm:$0xff] }
 0x1a8   :  { %v1903_v4 = vpop.f32.mrf.mxu0  ;;  %2512 = vmatmul.mubr.f32.gmra.mxu0 %v213_v35  ;;  %v1600_v59 = vpop.f32.mrf.mxu1  ;;  %2724 = vmatprep.subr.mxu1 %v6043_v0 }
 0x1a9   :  { %v4979_v25 = vadd.f32 %v1903_v4, %v1599_v55  ;;  %2516 = vmatprep.mubr.f32.mxu0 %v232_v38  ;;  %3028 = vmatpush1.msra.mxu0 %v1086_v61  ;;  %v266_v4 = vld [vmem:[#allocation2 + $0x788] sm:$0xff]  ;;  %v1052_v61 = vld [vmem:[%s6041_s1 + $0x518] sm:$0xff]  ;;  %v249_v59 = vld [vmem:[#allocation2 + $0x700] sm:$0xff] }
 0x1aa   :  { %v1905_v62 = vpop.f32.mrf.mxu0  ;;  %v1603_v3 = vpop.f32.mrf.mxu1  ;;  %2212 = vmatmul.mubr.f32.gmra.mxu1 %v229_v40  ;;  %3029 = vmatprep.subr.mxu0 %v6043_v0 }
 0x1ab   :  { %v1604_v35 = vadd.f32 %v1603_v3, %v4808_v17  ;;  %2216 = vmatprep.mubr.f32.mxu1 %v248_v24  ;;  %2725 = vmatpush1.msra.mxu1 %v1053_v28  ;;  %v268_v24 = vld [vmem:[#allocation2 + $0x798] sm:$0xff]  ;;  %v265_v3 = vld [vmem:[#allocation2 + $0x780] sm:$0xff] }
 0x1ac   :  { %v1908_v55 = vpop.f32.mrf.mxu0  ;;  %2517 = vmatmul.mubr.f32.gmra.mxu0 %v231_v15  ;;  %v1605_v38 = vpop.f32.mrf.mxu1  ;;  %2726 = vmatprep.subr.mxu1 %v6043_v0  ;;  %v1084_v28 = vld [vmem:[%s6041_s1 + $0x618] sm:$0xff] }
 0x1ad   :  { %v4990_v40 = vadd.f32 %v1908_v55, %v1604_v35  ;;  %2521 = vmatprep.mubr.f32.mxu0 %v250_v21  ;;  %3030 = vmatpush1.msra.mxu0 %v1085_v45  ;;  %v284_v55 = vld [vmem:[#allocation2 + $0x818] sm:$0xff]  ;;  %v1051_v45 = vld [vmem:[%s6041_s1 + $0x510] sm:$0xff] }
 0x1ae   :  { %v1910_v62 = vpop.f32.mrf.mxu0  ;;  %v1608_v17 = vpop.f32.mrf.mxu1  ;;  %2217 = vmatmul.mubr.f32.gmra.mxu1 %v247_v54  ;;  %3031 = vmatprep.subr.mxu0 %v6043_v0  ;;  %v267_v38 = vld [vmem:[#allocation2 + $0x790] sm:$0xff] }
 0x1af   :  { %v1609_v15 = vadd.f32 %v1608_v17, %v4812_v31  ;;  %2221 = vmatprep.mubr.f32.mxu1 %v266_v4  ;;  %2727 = vmatpush1.msra.mxu1 %v1052_v61  ;;  %v286_v4 = vld [vmem:[#allocation2 + $0x828] sm:$0xff]  ;;  %v1083_v61 = vld [vmem:[%s6041_s1 + $0x610] sm:$0xff] }
 0x1b0   :  { %v1913_v35 = vpop.f32.mrf.mxu0  ;;  %2522 = vmatmul.mubr.f32.gmra.mxu0 %v249_v59  ;;  %v1610_v21 = vpop.f32.mrf.mxu1  ;;  %2728 = vmatprep.subr.mxu1 %v6043_v0  ;;  %v283_v17 = vld [vmem:[#allocation2 + $0x810] sm:$0xff] }
 0x1b1   :  { %v5001_v54 = vadd.f32 %v1913_v35, %v1609_v15  ;;  %2526 = vmatprep.mubr.f32.mxu0 %v268_v24  ;;  %3032 = vmatpush1.msra.mxu0 %v1084_v28  ;;  %v302_v35 = vld [vmem:[#allocation2 + $0x8a8] sm:$0xff]  ;;  %v285_v21 = vld [vmem:[#allocation2 + $0x820] sm:$0xff] }
 0x1b2   :  { %v1915_v62 = vpop.f32.mrf.mxu0  ;;  %v1613_v31 = vpop.f32.mrf.mxu1  ;;  %2222 = vmatmul.mubr.f32.gmra.mxu1 %v265_v3  ;;  %3033 = vmatprep.subr.mxu0 %v6043_v0  ;;  %v1050_v28 = vld [vmem:[%s6041_s1 + $0x508] sm:$0xff] }
 0x1b3   :  { %v1614_v59 = vadd.f32 %v1613_v31, %v4816_v43  ;;  %2226 = vmatprep.mubr.f32.mxu1 %v284_v55  ;;  %2729 = vmatpush1.msra.mxu1 %v1051_v45  ;;  %v304_v55 = vld [vmem:[#allocation2 + $0x8b8] sm:$0xff]  ;;  %v1082_v45 = vld [vmem:[%s6041_s1 + $0x608] sm:$0xff]  ;;  %v301_v31 = vld [vmem:[#allocation2 + $0x8a0] sm:$0xff] }
 0x1b4   :  { %v1918_v15 = vpop.f32.mrf.mxu0  ;;  %2527 = vmatmul.mubr.f32.gmra.mxu0 %v267_v38  ;;  %v1615_v24 = vpop.f32.mrf.mxu1  ;;  %2730 = vmatprep.subr.mxu1 %v6043_v0 }
 0x1b5   :  { %v5012_v3 = vadd.f32 %v1918_v15, %v1614_v59  ;;  %2531 = vmatprep.mubr.f32.mxu0 %v286_v4  ;;  %3034 = vmatpush1.msra.mxu0 %v1083_v61  ;;  %v320_v15 = vld [vmem:[#allocation2 + $0x938] sm:$0xff]  ;;  %v1049_v61 = vld [vmem:[%s6041_s1 + $0x500] sm:$0xff]  ;;  %v303_v24 = vld [vmem:[#allocation2 + $0x8b0] sm:$0xff] }
 0x1b6   :  { %v1920_v62 = vpop.f32.mrf.mxu0  ;;  %v1618_v43 = vpop.f32.mrf.mxu1  ;;  %2227 = vmatmul.mubr.f32.gmra.mxu1 %v283_v17  ;;  %3035 = vmatprep.subr.mxu0 %v6043_v0 }
 0x1b7   :  { %v1619_v38 = vadd.f32 %v1618_v43, %v4820_v56  ;;  %2231 = vmatprep.mubr.f32.mxu1 %v302_v35  ;;  %2731 = vmatpush1.msra.mxu1 %v1050_v28  ;;  %v322_v35 = vld [vmem:[#allocation2 + $0x948] sm:$0xff]  ;;  %v1081_v28 = vld [vmem:[%s6041_s1 + $0x600] sm:$0xff]  ;;  %v319_v43 = vld [vmem:[#allocation2 + $0x930] sm:$0xff] }
 0x1b8   :  { %v1923_v59 = vpop.f32.mrf.mxu0  ;;  %2532 = vmatmul.mubr.f32.gmra.mxu0 %v285_v21  ;;  %v1620_v4 = vpop.f32.mrf.mxu1  ;;  %2732 = vmatprep.subr.mxu1 %v6043_v0 }
 0x1b9   :  { %v5023_v17 = vadd.f32 %v1923_v59, %v1619_v38  ;;  %2536 = vmatprep.mubr.f32.mxu0 %v304_v55  ;;  %3036 = vmatpush1.msra.mxu0 %v1082_v45  ;;  %v338_v59 = vld [vmem:[#allocation2 + $0x9c8] sm:$0xff]  ;;  %v1080_v45 = vld [vmem:[%s6041_s1 + $0x5f8] sm:$0xff]  ;;  %v321_v4 = vld [vmem:[#allocation2 + $0x940] sm:$0xff] }
 0x1ba   :  { %v1925_v62 = vpop.f32.mrf.mxu0  ;;  %v1623_v56 = vpop.f32.mrf.mxu1  ;;  %2232 = vmatmul.mubr.f32.gmra.mxu1 %v301_v31  ;;  %3037 = vmatprep.subr.mxu0 %v6043_v0 }
 0x1bb   :  { %v1624_v21 = vadd.f32 %v1623_v56, %v4824_v7  ;;  %2236 = vmatprep.mubr.f32.mxu1 %v320_v15  ;;  %2733 = vmatpush1.msra.mxu1 %v1049_v61  ;;  %v340_v15 = vld [vmem:[#allocation2 + $0x9d8] sm:$0xff]  ;;  %v337_v56 = vld [vmem:[#allocation2 + $0x9c0] sm:$0xff] }
 0x1bc   :  { %v1928_v38 = vpop.f32.mrf.mxu0  ;;  %2537 = vmatmul.mubr.f32.gmra.mxu0 %v303_v24  ;;  %v1625_v55 = vpop.f32.mrf.mxu1  ;;  %2734 = vmatprep.subr.mxu1 %v6043_v0  ;;  %v1112_v61 = vld [vmem:[%s6041_s1 + $0x6f8] sm:$0xff] }
 0x1bd   :  { %v5034_v31 = vadd.f32 %v1928_v38, %v1624_v21  ;;  %2541 = vmatprep.mubr.f32.mxu0 %v322_v35  ;;  %3038 = vmatpush1.msra.mxu0 %v1081_v28  ;;  %v356_v38 = vld [vmem:[#allocation2 + $0xa58] sm:$0xff]  ;;  %v1079_v28 = vld [vmem:[%s6041_s1 + $0x5f0] sm:$0xff] }
 0x1be   :  { %v1930_v62 = vpop.f32.mrf.mxu0  ;;  %v1628_v7 = vpop.f32.mrf.mxu1  ;;  %2237 = vmatmul.mubr.f32.gmra.mxu1 %v319_v43  ;;  %3039 = vmatprep.subr.mxu0 %v6043_v0  ;;  %v339_v55 = vld [vmem:[#allocation2 + $0x9d0] sm:$0xff] }
 0x1bf   :  { %v1629_v24 = vadd.f32 %v1628_v7, %v4828_v22  ;;  %2241 = vmatprep.mubr.f32.mxu1 %v338_v59  ;;  %2735 = vmatpush2.msra.mxu1 %v1080_v45  ;;  %v358_v59 = vld [vmem:[#allocation2 + $0xa68] sm:$0xff]  ;;  %v1111_v45 = vld [vmem:[%s6041_s1 + $0x6f0] sm:$0xff] }
 0x1c0   :  { %v1933_v21 = vpop.f32.mrf.mxu0  ;;  %2542 = vmatmul.mubr.f32.gmra.mxu0 %v321_v4  ;;  %v1630_v35 = vpop.f32.mrf.mxu1  ;;  %2736 = vmatprep.subr.mxu1 %v6043_v0  ;;  %v355_v7 = vld [vmem:[#allocation2 + $0xa50] sm:$0xff] }
 0x1c1   :  { %v5045_v43 = vadd.f32 %v1933_v21, %v1629_v24  ;;  %2546 = vmatprep.mubr.f32.mxu0 %v340_v15  ;;  %3040 = vmatpush2.msra.mxu0 %v1112_v61  ;;  %v374_v21 = vld [vmem:[#allocation2 + $0xae8] sm:$0xff]  ;;  %v357_v35 = vld [vmem:[#allocation2 + $0xa60] sm:$0xff] }
 0x1c2   :  { %v1935_v62 = vpop.f32.mrf.mxu0  ;;  %v1633_v22 = vpop.f32.mrf.mxu1  ;;  %2242 = vmatmul.mubr.f32.gmra.mxu1 %v337_v56  ;;  %3041 = vmatprep.subr.mxu0 %v6043_v0  ;;  %v1078_v61 = vld [vmem:[%s6041_s1 + $0x5e8] sm:$0xff] }
 0x1c3   :  { %v1634_v4 = vadd.f32 %v1633_v22, %v4832_v42  ;;  %2246 = vmatprep.mubr.f32.mxu1 %v356_v38  ;;  %2737 = vmatpush2.msra.mxu1 %v1079_v28  ;;  %v376_v38 = vld [vmem:[#allocation2 + $0xaf8] sm:$0xff]  ;;  %v1110_v28 = vld [vmem:[%s6041_s1 + $0x6e8] sm:$0xff]  ;;  %v373_v22 = vld [vmem:[#allocation2 + $0xae0] sm:$0xff] }
 0x1c4   :  { %v1938_v24 = vpop.f32.mrf.mxu0  ;;  %2547 = vmatmul.mubr.f32.gmra.mxu0 %v339_v55  ;;  %v1635_v15 = vpop.f32.mrf.mxu1  ;;  %2738 = vmatprep.subr.mxu1 %v6043_v0 }
 0x1c5   :  { %v5056_v56 = vadd.f32 %v1938_v24, %v1634_v4  ;;  %2551 = vmatprep.mubr.f32.mxu0 %v358_v59  ;;  %3042 = vmatpush2.msra.mxu0 %v1111_v45  ;;  %v392_v24 = vld [vmem:[#allocation2 + $0xb78] sm:$0xff]  ;;  %v1077_v45 = vld [vmem:[%s6041_s1 + $0x5e0] sm:$0xff]  ;;  %v375_v15 = vld [vmem:[#allocation2 + $0xaf0] sm:$0xff] }
 0x1c6   :  { %v1940_v62 = vpop.f32.mrf.mxu0  ;;  %v1638_v42 = vpop.f32.mrf.mxu1  ;;  %2247 = vmatmul.mubr.f32.gmra.mxu1 %v355_v7  ;;  %3043 = vmatprep.subr.mxu0 %v6043_v0 }
 0x1c7   :  { %v1639_v55 = vadd.f32 %v1638_v42, %v4836_v57  ;;  %2251 = vmatprep.mubr.f32.mxu1 %v374_v21  ;;  %2739 = vmatpush2.msra.mxu1 %v1078_v61  ;;  %v394_v21 = vld [vmem:[#allocation2 + $0xb88] sm:$0xff]  ;;  %v1109_v61 = vld [vmem:[%s6041_s1 + $0x6e0] sm:$0xff]  ;;  %v391_v42 = vld [vmem:[#allocation2 + $0xb70] sm:$0xff] }
 0x1c8   :  { %v1943_v4 = vpop.f32.mrf.mxu0  ;;  %2552 = vmatmul.mubr.f32.gmra.mxu0 %v357_v35  ;;  %v1640_v59 = vpop.f32.mrf.mxu1  ;;  %2740 = vmatprep.subr.mxu1 %v6043_v0 }
 0x1c9   :  { %v5067_v7 = vadd.f32 %v1943_v4, %v1639_v55  ;;  %2556 = vmatprep.mubr.f32.mxu0 %v376_v38  ;;  %3044 = vmatpush2.msra.mxu0 %v1110_v28  ;;  %v410_v4 = vld [vmem:[#allocation2 + $0xc08] sm:$0xff]  ;;  %v1076_v28 = vld [vmem:[%s6041_s1 + $0x5d8] sm:$0xff]  ;;  %v393_v59 = vld [vmem:[#allocation2 + $0xb80] sm:$0xff] }
 0x1ca   :  { %v1945_v62 = vpop.f32.mrf.mxu0  ;;  %v1643_v57 = vpop.f32.mrf.mxu1  ;;  %2252 = vmatmul.mubr.f32.gmra.mxu1 %v373_v22  ;;  %3045 = vmatprep.subr.mxu0 %v6043_v0 }
 0x1cb   :  { %v1644_v35 = vadd.f32 %v1643_v57, %v4840_v11  ;;  %2256 = vmatprep.mubr.f32.mxu1 %v392_v24  ;;  %2741 = vmatpush2.msra.mxu1 %v1077_v45  ;;  %v412_v24 = vld [vmem:[#allocation2 + $0xc18] sm:$0xff]  ;;  %v409_v57 = vld [vmem:[#allocation2 + $0xc00] sm:$0xff] }
 0x1cc   :  { %v1948_v55 = vpop.f32.mrf.mxu0  ;;  %2557 = vmatmul.mubr.f32.gmra.mxu0 %v375_v15  ;;  %v1645_v38 = vpop.f32.mrf.mxu1  ;;  %2742 = vmatprep.subr.mxu1 %v6043_v0  ;;  %v1108_v45 = vld [vmem:[%s6041_s1 + $0x6d8] sm:$0xff] }
 0x1cd   :  { %v5078_v22 = vadd.f32 %v1948_v55, %v1644_v35  ;;  %2561 = vmatprep.mubr.f32.mxu0 %v394_v21  ;;  %3046 = vmatpush2.msra.mxu0 %v1109_v61  ;;  %v428_v55 = vld [vmem:[#allocation2 + $0xc98] sm:$0xff]  ;;  %v1075_v61 = vld [vmem:[%s6041_s1 + $0x5d0] sm:$0xff] }
 0x1ce   :  { %v1950_v62 = vpop.f32.mrf.mxu0  ;;  %v1648_v11 = vpop.f32.mrf.mxu1  ;;  %2257 = vmatmul.mubr.f32.gmra.mxu1 %v391_v42  ;;  %3047 = vmatprep.subr.mxu0 %v6043_v0  ;;  %v411_v38 = vld [vmem:[#allocation2 + $0xc10] sm:$0xff] }
 0x1cf   :  { %v1649_v15 = vadd.f32 %v1648_v11, %v4844_v33  ;;  %2261 = vmatprep.mubr.f32.mxu1 %v410_v4  ;;  %2743 = vmatpush2.msra.mxu1 %v1076_v28  ;;  %v430_v4 = vld [vmem:[#allocation2 + $0xca8] sm:$0xff]  ;;  %v1107_v28 = vld [vmem:[%s6041_s1 + $0x6d0] sm:$0xff] }
 0x1d0   :  { %v1953_v35 = vpop.f32.mrf.mxu0  ;;  %2562 = vmatmul.mubr.f32.gmra.mxu0 %v393_v59  ;;  %v1650_v21 = vpop.f32.mrf.mxu1  ;;  %2744 = vmatprep.subr.mxu1 %v6043_v0  ;;  %v427_v11 = vld [vmem:[#allocation2 + $0xc90] sm:$0xff] }
 0x1d1   :  { %v5089_v42 = vadd.f32 %v1953_v35, %v1649_v15  ;;  %2566 = vmatprep.mubr.f32.mxu0 %v412_v24  ;;  %3048 = vmatpush2.msra.mxu0 %v1108_v45  ;;  %v446_v35 = vld [vmem:[#allocation2 + $0xd28] sm:$0xff]  ;;  %v429_v21 = vld [vmem:[#allocation2 + $0xca0] sm:$0xff] }
 0x1d2   :  { %v1955_v62 = vpop.f32.mrf.mxu0  ;;  %v1653_v33 = vpop.f32.mrf.mxu1  ;;  %2262 = vmatmul.mubr.f32.gmra.mxu1 %v409_v57  ;;  %3049 = vmatprep.subr.mxu0 %v6043_v0  ;;  %v1074_v45 = vld [vmem:[%s6041_s1 + $0x5c8] sm:$0xff] }
 0x1d3   :  { %v1654_v59 = vadd.f32 %v1653_v33, %v4848_v58  ;;  %2266 = vmatprep.mubr.f32.mxu1 %v428_v55  ;;  %2745 = vmatpush2.msra.mxu1 %v1075_v61  ;;  %v448_v55 = vld [vmem:[#allocation2 + $0xd38] sm:$0xff]  ;;  %v1106_v61 = vld [vmem:[%s6041_s1 + $0x6c8] sm:$0xff]  ;;  %v445_v33 = vld [vmem:[#allocation2 + $0xd20] sm:$0xff] }
 0x1d4   :  { %v1958_v15 = vpop.f32.mrf.mxu0  ;;  %2567 = vmatmul.mubr.f32.gmra.mxu0 %v411_v38  ;;  %v1655_v24 = vpop.f32.mrf.mxu1  ;;  %2746 = vmatprep.subr.mxu1 %v6043_v0 }
 0x1d5   :  { %v5100_v57 = vadd.f32 %v1958_v15, %v1654_v59  ;;  %2571 = vmatprep.mubr.f32.mxu0 %v430_v4  ;;  %3050 = vmatpush2.msra.mxu0 %v1107_v28  ;;  %v464_v15 = vld [vmem:[#allocation2 + $0xdb8] sm:$0xff]  ;;  %v1073_v28 = vld [vmem:[%s6041_s1 + $0x5c0] sm:$0xff]  ;;  %v447_v24 = vld [vmem:[#allocation2 + $0xd30] sm:$0xff] }
 0x1d6   :  { %v1960_v62 = vpop.f32.mrf.mxu0  ;;  %v1658_v58 = vpop.f32.mrf.mxu1  ;;  %2267 = vmatmul.mubr.f32.gmra.mxu1 %v427_v11  ;;  %3051 = vmatprep.subr.mxu0 %v6043_v0 }
 0x1d7   :  { %v1659_v38 = vadd.f32 %v1658_v58, %v4852_v19  ;;  %2271 = vmatprep.mubr.f32.mxu1 %v446_v35  ;;  %2747 = vmatpush2.msra.mxu1 %v1074_v45  ;;  %v466_v35 = vld [vmem:[#allocation2 + $0xdc8] sm:$0xff]  ;;  %v1105_v45 = vld [vmem:[%s6041_s1 + $0x6c0] sm:$0xff]  ;;  %v463_v58 = vld [vmem:[#allocation2 + $0xdb0] sm:$0xff] }
 0x1d8   :  { %v1963_v59 = vpop.f32.mrf.mxu0  ;;  %2572 = vmatmul.mubr.f32.gmra.mxu0 %v429_v21  ;;  %v1660_v4 = vpop.f32.mrf.mxu1  ;;  %2748 = vmatprep.subr.mxu1 %v6043_v0 }
 0x1d9   :  { %v5111_v11 = vadd.f32 %v1963_v59, %v1659_v38  ;;  %2576 = vmatprep.mubr.f32.mxu0 %v448_v55  ;;  %3052 = vmatpush2.msra.mxu0 %v1106_v61  ;;  %v482_v59 = vld [vmem:[#allocation2 + $0xe48] sm:$0xff]  ;;  %v1072_v61 = vld [vmem:[%s6041_s1 + $0x5b8] sm:$0xff]  ;;  %v465_v4 = vld [vmem:[#allocation2 + $0xdc0] sm:$0xff] }
 0x1da   :  { %v1965_v62 = vpop.f32.mrf.mxu0  ;;  %v1663_v19 = vpop.f32.mrf.mxu1  ;;  %2272 = vmatmul.mubr.f32.gmra.mxu1 %v445_v33  ;;  %3053 = vmatprep.subr.mxu0 %v6043_v0 }
 0x1db   :  { %v1664_v21 = vadd.f32 %v1663_v19, %v4856_v46  ;;  %2276 = vmatprep.mubr.f32.mxu1 %v464_v15  ;;  %2749 = vmatpush2.msra.mxu1 %v1073_v28  ;;  %v484_v15 = vld [vmem:[#allocation2 + $0xe58] sm:$0xff]  ;;  %v481_v19 = vld [vmem:[#allocation2 + $0xe40] sm:$0xff] }
 0x1dc   :  { %v1968_v38 = vpop.f32.mrf.mxu0  ;;  %2577 = vmatmul.mubr.f32.gmra.mxu0 %v447_v24  ;;  %v1665_v55 = vpop.f32.mrf.mxu1  ;;  %2750 = vmatprep.subr.mxu1 %v6043_v0  ;;  %v1104_v28 = vld [vmem:[%s6041_s1 + $0x6b8] sm:$0xff] }
 0x1dd   :  { %v5122_v33 = vadd.f32 %v1968_v38, %v1664_v21  ;;  %2581 = vmatprep.mubr.f32.mxu0 %v466_v35  ;;  %3054 = vmatpush2.msra.mxu0 %v1105_v45  ;;  %v500_v38 = vld [vmem:[#allocation2 + $0xed8] sm:$0xff]  ;;  %v1071_v45 = vld [vmem:[%s6041_s1 + $0x5b0] sm:$0xff] }
 0x1de   :  { %v1970_v62 = vpop.f32.mrf.mxu0  ;;  %v1668_v46 = vpop.f32.mrf.mxu1  ;;  %2277 = vmatmul.mubr.f32.gmra.mxu1 %v463_v58  ;;  %3055 = vmatprep.subr.mxu0 %v6043_v0  ;;  %v483_v55 = vld [vmem:[#allocation2 + $0xe50] sm:$0xff] }
 0x1df   :  { %v1669_v24 = vadd.f32 %v1668_v46, %v4667_v6  ;;  %2281 = vmatprep.mubr.f32.mxu1 %v482_v59  ;;  %2751 = vmatpush2.msra.mxu1 %v1072_v61  ;;  %v502_v59 = vld [vmem:[#allocation2 + $0xee8] sm:$0xff]  ;;  %v1103_v61 = vld [vmem:[%s6041_s1 + $0x6b0] sm:$0xff] }
 0x1e0   :  { %v1973_v21 = vpop.f32.mrf.mxu0  ;;  %2582 = vmatmul.mubr.f32.gmra.mxu0 %v465_v4  ;;  %v1670_v35 = vpop.f32.mrf.mxu1  ;;  %2752 = vmatprep.subr.mxu1 %v6043_v0  ;;  %v499_v46 = vld [vmem:[#allocation2 + $0xed0] sm:$0xff] }
 0x1e1   :  { %v5133_v58 = vadd.f32 %v1973_v21, %v1669_v24  ;;  %2586 = vmatprep.mubr.f32.mxu0 %v484_v15  ;;  %3056 = vmatpush2.msra.mxu0 %v1104_v28  ;;  %v518_v21 = vld [vmem:[#allocation2 + $0xf68] sm:$0xff]  ;;  %v501_v35 = vld [vmem:[#allocation2 + $0xee0] sm:$0xff] }
 0x1e2   :  { %v1975_v62 = vpop.f32.mrf.mxu0  ;;  %v1673_v6 = vpop.f32.mrf.mxu1  ;;  %2282 = vmatmul.mubr.f32.gmra.mxu1 %v481_v19  ;;  %3057 = vmatprep.subr.mxu0 %v6043_v0  ;;  %v1070_v28 = vld [vmem:[%s6041_s1 + $0x5a8] sm:$0xff] }
 0x1e3   :  { %v1674_v4 = vadd.f32 %v1673_v6, %v4679_v16  ;;  %2286 = vmatprep.mubr.f32.mxu1 %v500_v38  ;;  %2753 = vmatpush2.msra.mxu1 %v1071_v45  ;;  %v520_v38 = vld [vmem:[#allocation2 + $0xf78] sm:$0xff]  ;;  %v1102_v45 = vld [vmem:[%s6041_s1 + $0x6a8] sm:$0xff]  ;;  %v517_v6 = vld [vmem:[#allocation2 + $0xf60] sm:$0xff] }
 0x1e4   :  { %v1978_v24 = vpop.f32.mrf.mxu0  ;;  %2587 = vmatmul.mubr.f32.gmra.mxu0 %v483_v55  ;;  %v1675_v15 = vpop.f32.mrf.mxu1  ;;  %2754 = vmatprep.subr.mxu1 %v6043_v0 }
 0x1e5   :  { %v5144_v19 = vadd.f32 %v1978_v24, %v1674_v4  ;;  %2591 = vmatprep.mubr.f32.mxu0 %v502_v59  ;;  %3058 = vmatpush2.msra.mxu0 %v1103_v61  ;;  %v536_v24 = vld [vmem:[#allocation2 + $0xff8] sm:$0xff]  ;;  %v1069_v61 = vld [vmem:[%s6041_s1 + $0x5a0] sm:$0xff]  ;;  %v519_v15 = vld [vmem:[#allocation2 + $0xf70] sm:$0xff] }
 0x1e6   :  { %v1980_v62 = vpop.f32.mrf.mxu0  ;;  %v1678_v16 = vpop.f32.mrf.mxu1  ;;  %2287 = vmatmul.mubr.f32.gmra.mxu1 %v499_v46  ;;  %3059 = vmatprep.subr.mxu0 %v6043_v0 }
 0x1e7   :  { %v1679_v55 = vadd.f32 %v1678_v16, %v4691_v27  ;;  %2291 = vmatprep.mubr.f32.mxu1 %v518_v21  ;;  %2755 = vmatpush2.msra.mxu1 %v1070_v28  ;;  %v538_v21 = vld [vmem:[#allocation2 + $0x1008] sm:$0xff]  ;;  %v1101_v28 = vld [vmem:[%s6041_s1 + $0x6a0] sm:$0xff]  ;;  %v535_v16 = vld [vmem:[#allocation2 + $0xff0] sm:$0xff] }
 0x1e8   :  { %v1983_v4 = vpop.f32.mrf.mxu0  ;;  %2592 = vmatmul.mubr.f32.gmra.mxu0 %v501_v35  ;;  %v1680_v59 = vpop.f32.mrf.mxu1  ;;  %2756 = vmatprep.subr.mxu1 %v6043_v0 }
 0x1e9   :  { %v5155_v46 = vadd.f32 %v1983_v4, %v1679_v55  ;;  %2596 = vmatprep.mubr.f32.mxu0 %v520_v38  ;;  %3060 = vmatpush2.msra.mxu0 %v1102_v45  ;;  %v554_v4 = vld [vmem:[#allocation2 + $0x1088] sm:$0xff]  ;;  %v1068_v45 = vld [vmem:[%s6041_s1 + $0x598] sm:$0xff]  ;;  %v537_v59 = vld [vmem:[#allocation2 + $0x1000] sm:$0xff] }
 0x1ea   :  { %v1985_v62 = vpop.f32.mrf.mxu0  ;;  %v1683_v27 = vpop.f32.mrf.mxu1  ;;  %2292 = vmatmul.mubr.f32.gmra.mxu1 %v517_v6  ;;  %3061 = vmatprep.subr.mxu0 %v6043_v0 }
 0x1eb   :  { %v1684_v35 = vadd.f32 %v1683_v27, %v4703_v37  ;;  %2296 = vmatprep.mubr.f32.mxu1 %v536_v24  ;;  %2757 = vmatpush2.msra.mxu1 %v1069_v61  ;;  %v556_v24 = vld [vmem:[#allocation2 + $0x1098] sm:$0xff]  ;;  %v553_v27 = vld [vmem:[#allocation2 + $0x1080] sm:$0xff] }
 0x1ec   :  { %v1988_v55 = vpop.f32.mrf.mxu0  ;;  %2597 = vmatmul.mubr.f32.gmra.mxu0 %v519_v15  ;;  %v1685_v38 = vpop.f32.mrf.mxu1  ;;  %2758 = vmatprep.subr.mxu1 %v6043_v0  ;;  %v1100_v61 = vld [vmem:[%s6041_s1 + $0x698] sm:$0xff] }
 0x1ed   :  { %v5166_v6 = vadd.f32 %v1988_v55, %v1684_v35  ;;  %2601 = vmatprep.mubr.f32.mxu0 %v538_v21  ;;  %3062 = vmatpush2.msra.mxu0 %v1101_v28  ;;  %v572_v55 = vld [vmem:[#allocation2 + $0x1118] sm:$0xff]  ;;  %v1067_v28 = vld [vmem:[%s6041_s1 + $0x590] sm:$0xff] }
 0x1ee   :  { %v1990_v62 = vpop.f32.mrf.mxu0  ;;  %v1688_v37 = vpop.f32.mrf.mxu1  ;;  %2297 = vmatmul.mubr.f32.gmra.mxu1 %v535_v16  ;;  %3063 = vmatprep.subr.mxu0 %v6043_v0  ;;  %v555_v38 = vld [vmem:[#allocation2 + $0x1090] sm:$0xff] }
 0x1ef   :  { %v1689_v15 = vadd.f32 %v1688_v37, %v4719_v49  ;;  %2301 = vmatprep.mubr.f32.mxu1 %v554_v4  ;;  %2759 = vmatpush2.msra.mxu1 %v1068_v45  ;;  %v574_v4 = vld [vmem:[#allocation2 + $0x1128] sm:$0xff]  ;;  %v1099_v45 = vld [vmem:[%s6041_s1 + $0x690] sm:$0xff] }
 0x1f0   :  { %v1993_v35 = vpop.f32.mrf.mxu0  ;;  %2602 = vmatmul.mubr.f32.gmra.mxu0 %v537_v59  ;;  %v1690_v21 = vpop.f32.mrf.mxu1  ;;  %2760 = vmatprep.subr.mxu1 %v6043_v0  ;;  %v571_v37 = vld [vmem:[#allocation2 + $0x1110] sm:$0xff] }
 0x1f1   :  { %v5177_v16 = vadd.f32 %v1993_v35, %v1689_v15  ;;  %2606 = vmatprep.mubr.f32.mxu0 %v556_v24  ;;  %3064 = vmatpush2.msra.mxu0 %v1100_v61  ;;  %v590_v35 = vld [vmem:[#allocation2 + $0x11a8] sm:$0xff]  ;;  %v573_v21 = vld [vmem:[#allocation2 + $0x1120] sm:$0xff] }
 0x1f2   :  { %v1995_v62 = vpop.f32.mrf.mxu0  ;;  %v1693_v49 = vpop.f32.mrf.mxu1  ;;  %2302 = vmatmul.mubr.f32.gmra.mxu1 %v553_v27  ;;  %3065 = vmatprep.subr.mxu0 %v6043_v0  ;;  %v1066_v61 = vld [vmem:[%s6041_s1 + $0x588] sm:$0xff] }
 0x1f3   :  { %v1694_v59 = vadd.f32 %v1693_v49, %v4731_v60  ;;  %2306 = vmatprep.mubr.f32.mxu1 %v572_v55  ;;  %2761 = vmatpush2.msra.mxu1 %v1067_v28  ;;  %v592_v55 = vld [vmem:[#allocation2 + $0x11b8] sm:$0xff]  ;;  %v1098_v28 = vld [vmem:[%s6041_s1 + $0x688] sm:$0xff]  ;;  %v589_v49 = vld [vmem:[#allocation2 + $0x11a0] sm:$0xff] }
 0x1f4   :  { %v1998_v15 = vpop.f32.mrf.mxu0  ;;  %2607 = vmatmul.mubr.f32.gmra.mxu0 %v555_v38  ;;  %v1695_v24 = vpop.f32.mrf.mxu1  ;;  %2762 = vmatprep.subr.mxu1 %v6043_v0 }
 0x1f5   :  { %v5188_v27 = vadd.f32 %v1998_v15, %v1694_v59  ;;  %2611 = vmatprep.mubr.f32.mxu0 %v574_v4  ;;  %3066 = vmatpush2.msra.mxu0 %v1099_v45  ;;  %v608_v15 = vld [vmem:[#allocation2 + $0x1238] sm:$0xff]  ;;  %v1065_v45 = vld [vmem:[%s6041_s1 + $0x580] sm:$0xff]  ;;  %v591_v24 = vld [vmem:[#allocation2 + $0x11b0] sm:$0xff] }
 0x1f6   :  { %v2000_v62 = vpop.f32.mrf.mxu0  ;;  %v1698_v60 = vpop.f32.mrf.mxu1  ;;  %2307 = vmatmul.mubr.f32.gmra.mxu1 %v571_v37  ;;  %3067 = vmatprep.subr.mxu0 %v6043_v0 }
 0x1f7   :  { %v1699_v38 = vadd.f32 %v1698_v60, %v4743_v9  ;;  %2311 = vmatprep.mubr.f32.mxu1 %v590_v35  ;;  %2763 = vmatpush2.msra.mxu1 %v1066_v61  ;;  %v610_v35 = vld [vmem:[#allocation2 + $0x1248] sm:$0xff]  ;;  %v1097_v61 = vld [vmem:[%s6041_s1 + $0x680] sm:$0xff]  ;;  %v607_v60 = vld [vmem:[#allocation2 + $0x1230] sm:$0xff] }
 0x1f8   :  { %v2003_v59 = vpop.f32.mrf.mxu0  ;;  %2612 = vmatmul.mubr.f32.gmra.mxu0 %v573_v21  ;;  %v1700_v4 = vpop.f32.mrf.mxu1  ;;  %2764 = vmatprep.subr.mxu1 %v6043_v0 }
 0x1f9   :  { %v5199_v37 = vadd.f32 %v2003_v59, %v1699_v38  ;;  %2616 = vmatprep.mubr.f32.mxu0 %v592_v55  ;;  %3068 = vmatpush2.msra.mxu0 %v1098_v28  ;;  %v626_v59 = vld [vmem:[#allocation2 + $0x12c8] sm:$0xff] }
 0x1fa   :  { %v2005_v62 = vpop.f32.mrf.mxu0  ;;  %v1703_v9 = vpop.f32.mrf.mxu1  ;;  %2312 = vmatmul.mubr.f32.gmra.mxu1 %v589_v49  ;;  %3069 = vmatprep.subr.mxu0 %v6043_v0  ;;  %v609_v49 = vld [vmem:[#allocation2 + $0x1240] sm:$0xff] }
 0x1fb   :  { %6045 = vst [vmem:[#allocation5_spill] sm:$0xff] %v5199_v37  ;;  %v1704_v21 = vadd.f32 %v1703_v9, %v4759_v23  ;;  %2316 = vmatprep.mubr.f32.mxu1 %v608_v15  ;;  %2765 = vmatpush2.msra.mxu1 %v1065_v45  ;;  %v628_v37 = vld [vmem:[#allocation2 + $0x12d8] sm:$0xff]  ;;  %v625_v15 = vld [vmem:[#allocation2 + $0x12c0] sm:$0xff] }
 0x1fc   :  { %v2008_v38 = vpop.f32.mrf.mxu0  ;;  %2617 = vmatmul.mubr.f32.gmra.mxu0 %v591_v24  ;;  %v1705_v55 = vpop.f32.mrf.mxu1  ;;  %3312 = vmatprep.subr.mxu1 %v6043_v0  ;;  %v644_v9 = vld [vmem:[#allocation2 + $0x1358] sm:$0xff] }
 0x1fd   :  { %v5207_v28 = vadd.f32 %v2008_v38, %v1704_v21  ;;  %2621 = vmatprep.mubr.f32.mxu0 %v610_v35  ;;  %3070 = vmatpush2.msra.mxu0 %v1097_v61  ;;  %v627_v35 = vld [vmem:[#allocation2 + $0x12d0] sm:$0xff]  ;;  %v646_v38 = vld [vmem:[#allocation2 + $0x1368] sm:$0xff] }
 0x1fe   :  { %v2010_v4 = vpop.f32.mrf.mxu0  ;;  %v1708_v62 = vpop.f32.mrf.mxu1  ;;  %2317 = vmatmul.mubr.f32.gmra.mxu1 %v607_v60  ;;  %3617 = vmatprep.subr.mxu0 %v6043_v0 }
 0x1ff   :  { %v1709_v23 = vadd.f32 %v1708_v62, %v4771_v36  ;;  %2321 = vmatprep.mubr.f32.mxu1 %v626_v59  ;;  %v643_v4 = vld [vmem:[#allocation2 + $0x1350] sm:$0xff]  ;;  %v662_v59 = vld [vmem:[#allocation2 + $0x13e8] sm:$0xff] }
 0x200   :  { %v2013_v45 = vpop.f32.mrf.mxu0  ;;  %2622 = vmatmul.mubr.f32.gmra.mxu0 %v609_v49  ;;  %v1710_v24 = vpop.f32.mrf.mxu1  ;;  %v645_v49 = vld [vmem:[#allocation2 + $0x1360] sm:$0xff] }
 0x201   :  { %v5211_v55 = vadd.f32 %v2013_v45, %v1709_v23  ;;  %2626 = vmatprep.mubr.f32.mxu0 %v628_v37  ;;  %v664_v37 = vld [vmem:[#allocation2 + $0x13f8] sm:$0xff] }
 0x202   :  { %v2015_v21 = vpop.f32.mrf.mxu0  ;;  %v1713_v61 = vpop.f32.mrf.mxu1  ;;  %2322 = vmatmul.mubr.f32.gmra.mxu1 %v625_v15  ;;  %v661_v15 = vld [vmem:[#allocation2 + $0x13e0] sm:$0xff] }
 0x203   :  { %v1714_v60 = vadd.f32 %v1713_v61, %v4783_v48  ;;  %2326 = vmatprep.mubr.f32.mxu1 %v644_v9  ;;  %v680_v9 = vld [vmem:[#allocation2 + $0x1478] sm:$0xff] }
 0x204   :  { %v2018_v0 = vpop.f32.mrf.mxu0  ;;  %2627 = vmatmul.mubr.f32.gmra.mxu0 %v627_v35  ;;  %v1715_v36 = vpop.f32.mrf.mxu1  ;;  %v663_v35 = vld [vmem:[#allocation2 + $0x13f0] sm:$0xff] }
 0x205   :  { %v5214_v62 = vadd.f32 %v2018_v0, %v1714_v60  ;;  %2631 = vmatprep.mubr.f32.mxu0 %v646_v38  ;;  %v682_v38 = vld [vmem:[#allocation2 + $0x1488] sm:$0xff] }
 0x206   :  { %v2020_v23 = vpop.f32.mrf.mxu0  ;;  %v1718_v45 = vpop.f32.mrf.mxu1  ;;  %2327 = vmatmul.mubr.f32.gmra.mxu1 %v643_v4  ;;  %v679_v4 = vld [vmem:[#allocation2 + $0x1470] sm:$0xff] }
 0x207   :  { %v1719_v24 = vadd.f32 %v1718_v45, %v4799_v1  ;;  %2331 = vmatprep.mubr.f32.mxu1 %v662_v59  ;;  %v698_v59 = vld [vmem:[#allocation2 + $0x1508] sm:$0xff] }
 0x208   :  { %v2023_v21 = vpop.f32.mrf.mxu0  ;;  %2632 = vmatmul.mubr.f32.gmra.mxu0 %v645_v49  ;;  %v1720_v48 = vpop.f32.mrf.mxu1  ;;  %v681_v49 = vld [vmem:[#allocation2 + $0x1480] sm:$0xff] }
 0x209   :  { %v5217_v61 = vadd.f32 %v2023_v21, %v1719_v24  ;;  %2636 = vmatprep.mubr.f32.mxu0 %v664_v37  ;;  %v700_v37 = vld [vmem:[#allocation2 + $0x1518] sm:$0xff] }
 0x20a   :  { %v2025_v0 = vpop.f32.mrf.mxu0  ;;  %v1723_v60 = vpop.f32.mrf.mxu1  ;;  %2332 = vmatmul.mubr.f32.gmra.mxu1 %v661_v15  ;;  %v697_v15 = vld [vmem:[#allocation2 + $0x1500] sm:$0xff] }
 0x20b   :  { %v1724_v36 = vadd.f32 %v1723_v60, %v4806_v14  ;;  %2336 = vmatprep.mubr.f32.mxu1 %v680_v9  ;;  %v716_v9 = vld [vmem:[#allocation2 + $0x1598] sm:$0xff] }
 0x20c   :  { %v2028_v23 = vpop.f32.mrf.mxu0  ;;  %2637 = vmatmul.mubr.f32.gmra.mxu0 %v663_v35  ;;  %v1725_v1 = vpop.f32.mrf.mxu1  ;;  %v699_v35 = vld [vmem:[#allocation2 + $0x1510] sm:$0xff] }
 0x20d   :  { %v5220_v45 = vadd.f32 %v2028_v23, %v1724_v36  ;;  %2641 = vmatprep.mubr.f32.mxu0 %v682_v38  ;;  %v718_v38 = vld [vmem:[#allocation2 + $0x15a8] sm:$0xff] }
 0x20e   :  { %v2030_v24 = vpop.f32.mrf.mxu0  ;;  %v1728_v21 = vpop.f32.mrf.mxu1  ;;  %2337 = vmatmul.mubr.f32.gmra.mxu1 %v679_v4  ;;  %v715_v4 = vld [vmem:[#allocation2 + $0x1590] sm:$0xff] }
 0x20f   :  { %v1729_v48 = vadd.f32 %v1728_v21, %v4810_v26  ;;  %2341 = vmatprep.mubr.f32.mxu1 %v698_v59  ;;  %v734_v59 = vld [vmem:[#allocation2 + $0x1628] sm:$0xff] }
 0x210   :  { %v2033_v0 = vpop.f32.mrf.mxu0  ;;  %2642 = vmatmul.mubr.f32.gmra.mxu0 %v681_v49  ;;  %v1730_v14 = vpop.f32.mrf.mxu1  ;;  %v717_v49 = vld [vmem:[#allocation2 + $0x15a0] sm:$0xff] }
 0x211   :  { %v5223_v60 = vadd.f32 %v2033_v0, %v1729_v48  ;;  %2646 = vmatprep.mubr.f32.mxu0 %v700_v37  ;;  %v736_v37 = vld [vmem:[#allocation2 + $0x1638] sm:$0xff] }
 0x212   :  { %v2035_v36 = vpop.f32.mrf.mxu0  ;;  %v1733_v23 = vpop.f32.mrf.mxu1  ;;  %2342 = vmatmul.mubr.f32.gmra.mxu1 %v697_v15  ;;  %v733_v15 = vld [vmem:[#allocation2 + $0x1620] sm:$0xff] }
 0x213   :  { %v1734_v1 = vadd.f32 %v1733_v23, %v4814_v39  ;;  %2346 = vmatprep.mubr.f32.mxu1 %v716_v9  ;;  %v752_v9 = vld [vmem:[#allocation2 + $0x16b8] sm:$0xff] }
 0x214   :  { %v2038_v24 = vpop.f32.mrf.mxu0  ;;  %2647 = vmatmul.mubr.f32.gmra.mxu0 %v699_v35  ;;  %v1735_v26 = vpop.f32.mrf.mxu1  ;;  %v735_v35 = vld [vmem:[#allocation2 + $0x1630] sm:$0xff] }
 0x215   :  { %v5226_v21 = vadd.f32 %v2038_v24, %v1734_v1  ;;  %2651 = vmatprep.mubr.f32.mxu0 %v718_v38  ;;  %v754_v38 = vld [vmem:[#allocation2 + $0x16c8] sm:$0xff] }
 0x216   :  { %v2040_v48 = vpop.f32.mrf.mxu0  ;;  %v1738_v0 = vpop.f32.mrf.mxu1  ;;  %2347 = vmatmul.mubr.f32.gmra.mxu1 %v715_v4  ;;  %v751_v4 = vld [vmem:[#allocation2 + $0x16b0] sm:$0xff] }
 0x217   :  { %v1739_v14 = vadd.f32 %v1738_v0, %v4818_v53  ;;  %2351 = vmatprep.mubr.f32.mxu1 %v734_v59  ;;  %v770_v59 = vld [vmem:[#allocation2 + $0x1748] sm:$0xff] }
 0x218   :  { %v2043_v36 = vpop.f32.mrf.mxu0  ;;  %2652 = vmatmul.mubr.f32.gmra.mxu0 %v717_v49  ;;  %v1740_v39 = vpop.f32.mrf.mxu1  ;;  %v753_v49 = vld [vmem:[#allocation2 + $0x16c0] sm:$0xff] }
 0x219   :  { %v5229_v23 = vadd.f32 %v2043_v36, %v1739_v14  ;;  %2656 = vmatprep.mubr.f32.mxu0 %v736_v37  ;;  %v772_v37 = vld [vmem:[#allocation2 + $0x1758] sm:$0xff] }
 0x21a   :  { %v2045_v1 = vpop.f32.mrf.mxu0  ;;  %v1743_v24 = vpop.f32.mrf.mxu1  ;;  %2352 = vmatmul.mubr.f32.gmra.mxu1 %v733_v15  ;;  %v769_v15 = vld [vmem:[#allocation2 + $0x1740] sm:$0xff] }
 0x21b   :  { %v1744_v26 = vadd.f32 %v1743_v24, %v4822_v2  ;;  %2356 = vmatprep.mubr.f32.mxu1 %v752_v9  ;;  %v788_v9 = vld [vmem:[#allocation2 + $0x17d8] sm:$0xff] }
 0x21c   :  { %v2048_v48 = vpop.f32.mrf.mxu0  ;;  %2657 = vmatmul.mubr.f32.gmra.mxu0 %v735_v35  ;;  %v1745_v53 = vpop.f32.mrf.mxu1  ;;  %v771_v35 = vld [vmem:[#allocation2 + $0x1750] sm:$0xff] }
 0x21d   :  { %v5232_v0 = vadd.f32 %v2048_v48, %v1744_v26  ;;  %2661 = vmatprep.mubr.f32.mxu0 %v754_v38  ;;  %v790_v38 = vld [vmem:[#allocation2 + $0x17e8] sm:$0xff] }
 0x21e   :  { %v2050_v14 = vpop.f32.mrf.mxu0  ;;  %v1748_v36 = vpop.f32.mrf.mxu1  ;;  %2357 = vmatmul.mubr.f32.gmra.mxu1 %v751_v4  ;;  %v787_v4 = vld [vmem:[#allocation2 + $0x17d0] sm:$0xff] }
 0x21f   :  { %v1749_v39 = vadd.f32 %v1748_v36, %v4826_v20  ;;  %2361 = vmatprep.mubr.f32.mxu1 %v770_v59  ;;  %v806_v59 = vld [vmem:[#allocation2 + $0x1868] sm:$0xff] }
 0x220   :  { %v2053_v1 = vpop.f32.mrf.mxu0  ;;  %2662 = vmatmul.mubr.f32.gmra.mxu0 %v753_v49  ;;  %v1750_v2 = vpop.f32.mrf.mxu1  ;;  %v789_v49 = vld [vmem:[#allocation2 + $0x17e0] sm:$0xff] }
 0x221   :  { %v5235_v24 = vadd.f32 %v2053_v1, %v1749_v39  ;;  %2666 = vmatprep.mubr.f32.mxu0 %v772_v37  ;;  %v808_v37 = vld [vmem:[#allocation2 + $0x1878] sm:$0xff] }
 0x222   :  { %v2055_v26 = vpop.f32.mrf.mxu0  ;;  %v1753_v48 = vpop.f32.mrf.mxu1  ;;  %2362 = vmatmul.mubr.f32.gmra.mxu1 %v769_v15  ;;  %v805_v15 = vld [vmem:[#allocation2 + $0x1860] sm:$0xff] }
 0x223   :  { %v1754_v53 = vadd.f32 %v1753_v48, %v4830_v34  ;;  %2366 = vmatprep.mubr.f32.mxu1 %v788_v9  ;;  %v824_v9 = vld [vmem:[#allocation2 + $0x18f8] sm:$0xff] }
 0x224   :  { %v2058_v14 = vpop.f32.mrf.mxu0  ;;  %2667 = vmatmul.mubr.f32.gmra.mxu0 %v771_v35  ;;  %v1755_v20 = vpop.f32.mrf.mxu1  ;;  %v807_v35 = vld [vmem:[#allocation2 + $0x1870] sm:$0xff] }
 0x225   :  { %v5238_v36 = vadd.f32 %v2058_v14, %v1754_v53  ;;  %2671 = vmatprep.mubr.f32.mxu0 %v790_v38  ;;  %v826_v38 = vld [vmem:[#allocation2 + $0x1908] sm:$0xff] }
 0x226   :  { %v2060_v39 = vpop.f32.mrf.mxu0  ;;  %v1758_v1 = vpop.f32.mrf.mxu1  ;;  %2367 = vmatmul.mubr.f32.gmra.mxu1 %v787_v4  ;;  %v823_v4 = vld [vmem:[#allocation2 + $0x18f0] sm:$0xff] }
 0x227   :  { %v1759_v2 = vadd.f32 %v1758_v1, %v4834_v50  ;;  %2371 = vmatprep.mubr.f32.mxu1 %v806_v59  ;;  %v842_v59 = vld [vmem:[#allocation2 + $0x1988] sm:$0xff] }
 0x228   :  { %v2063_v26 = vpop.f32.mrf.mxu0  ;;  %2672 = vmatmul.mubr.f32.gmra.mxu0 %v789_v49  ;;  %v1760_v34 = vpop.f32.mrf.mxu1  ;;  %v825_v49 = vld [vmem:[#allocation2 + $0x1900] sm:$0xff] }
 0x229   :  { %v5241_v48 = vadd.f32 %v2063_v26, %v1759_v2  ;;  %2676 = vmatprep.mubr.f32.mxu0 %v808_v37  ;;  %v844_v37 = vld [vmem:[#allocation2 + $0x1998] sm:$0xff] }
 0x22a   :  { %v2065_v53 = vpop.f32.mrf.mxu0  ;;  %v1763_v14 = vpop.f32.mrf.mxu1  ;;  %2372 = vmatmul.mubr.f32.gmra.mxu1 %v805_v15  ;;  %v841_v15 = vld [vmem:[#allocation2 + $0x1980] sm:$0xff] }
 0x22b   :  { %v1764_v20 = vadd.f32 %v1763_v14, %v4838_v5  ;;  %2376 = vmatprep.mubr.f32.mxu1 %v824_v9  ;;  %v860_v9 = vld [vmem:[#allocation2 + $0x1a18] sm:$0xff] }
 0x22c   :  { %v2068_v39 = vpop.f32.mrf.mxu0  ;;  %2677 = vmatmul.mubr.f32.gmra.mxu0 %v807_v35  ;;  %v1765_v50 = vpop.f32.mrf.mxu1  ;;  %v843_v35 = vld [vmem:[#allocation2 + $0x1990] sm:$0xff] }
 0x22d   :  { %v5244_v1 = vadd.f32 %v2068_v39, %v1764_v20  ;;  %2681 = vmatprep.mubr.f32.mxu0 %v826_v38  ;;  %v862_v38 = vld [vmem:[#allocation2 + $0x1a28] sm:$0xff] }
 0x22e   :  { %v2070_v2 = vpop.f32.mrf.mxu0  ;;  %v1768_v26 = vpop.f32.mrf.mxu1  ;;  %2377 = vmatmul.mubr.f32.gmra.mxu1 %v823_v4  ;;  %v859_v4 = vld [vmem:[#allocation2 + $0x1a10] sm:$0xff] }
 0x22f   :  { %v1769_v34 = vadd.f32 %v1768_v26, %v4842_v29  ;;  %2381 = vmatprep.mubr.f32.mxu1 %v842_v59  ;;  %v878_v59 = vld [vmem:[#allocation2 + $0x1aa8] sm:$0xff] }
 0x230   :  { %v2073_v53 = vpop.f32.mrf.mxu0  ;;  %2682 = vmatmul.mubr.f32.gmra.mxu0 %v825_v49  ;;  %v1770_v5 = vpop.f32.mrf.mxu1  ;;  %v861_v49 = vld [vmem:[#allocation2 + $0x1a20] sm:$0xff] }
 0x231   :  { %v5247_v14 = vadd.f32 %v2073_v53, %v1769_v34  ;;  %2686 = vmatprep.mubr.f32.mxu0 %v844_v37  ;;  %v880_v37 = vld [vmem:[#allocation2 + $0x1ab8] sm:$0xff] }
 0x232   :  { %v2075_v20 = vpop.f32.mrf.mxu0  ;;  %v1773_v39 = vpop.f32.mrf.mxu1  ;;  %2382 = vmatmul.mubr.f32.gmra.mxu1 %v841_v15  ;;  %v877_v15 = vld [vmem:[#allocation2 + $0x1aa0] sm:$0xff] }
 0x233   :  { %v1774_v50 = vadd.f32 %v1773_v39, %v4846_v47  ;;  %2386 = vmatprep.mubr.f32.mxu1 %v860_v9  ;;  %v36_v9 = vld [vmem:[#allocation2 + $0x58] sm:$0xff] }
 0x234   :  { %v2078_v2 = vpop.f32.mrf.mxu0  ;;  %2687 = vmatmul.mubr.f32.gmra.mxu0 %v843_v35  ;;  %v1775_v29 = vpop.f32.mrf.mxu1  ;;  %v879_v35 = vld [vmem:[#allocation2 + $0x1ab0] sm:$0xff] }
 0x235   :  { %v5250_v26 = vadd.f32 %v2078_v2, %v1774_v50  ;;  %2691 = vmatprep.mubr.f32.mxu0 %v862_v38  ;;  %v38_v38 = vld [vmem:[#allocation2 + $0x68] sm:$0xff] }
 0x236   :  { %v2080_v34 = vpop.f32.mrf.mxu0  ;;  %v1778_v53 = vpop.f32.mrf.mxu1  ;;  %2387 = vmatmul.mubr.f32.gmra.mxu1 %v859_v4  ;;  %v35_v4 = vld [vmem:[#allocation2 + $0x50] sm:$0xff] }
 0x237   :  { %v1779_v5 = vadd.f32 %v1778_v53, %v4850_v12  ;;  %2391 = vmatprep.mubr.f32.mxu1 %v878_v59  ;;  %v1128_v59 = vld [vmem:[%s6041_s1 + $0x778] sm:$0xff] }
 0x238   :  { %v2083_v20 = vpop.f32.mrf.mxu0  ;;  %2692 = vmatmul.mubr.f32.gmra.mxu0 %v861_v49  ;;  %v1780_v47 = vpop.f32.mrf.mxu1  ;;  %v54_v49 = vld [vmem:[#allocation2 + $0xe8] sm:$0xff] }
 0x239   :  { %v5253_v39 = vadd.f32 %v2083_v20, %v1779_v5  ;;  %2696 = vmatprep.mubr.f32.mxu0 %v880_v37  ;;  %v37_v37 = vld [vmem:[#allocation2 + $0x60] sm:$0xff] }
 0x23a   :  { %v2085_v50 = vpop.f32.mrf.mxu0  ;;  %v1783_v2 = vpop.f32.mrf.mxu1  ;;  %2392 = vmatmul.mubr.f32.gmra.mxu1 %v877_v15  ;;  %v56_v15 = vld [vmem:[#allocation2 + $0xf8] sm:$0xff] }
 0x23b   :  { %v1784_v29 = vadd.f32 %v1783_v2, %v4854_v44  ;;  %2766 = vmatprep.mubr.f32.mxu1 %v36_v9  ;;  %v1160_v44 = vld [vmem:[%s6041_s1 + $0x878] sm:$0xff]  ;;  %v53_v9 = vld [vmem:[#allocation2 + $0xe0] sm:$0xff]  ;;  %v6046_v2 = vmov 0.0  }
 0x23c   :  { %v2088_v34 = vpop.f32.mrf.mxu0  ;;  %2697 = vmatmul.mubr.f32.gmra.mxu0 %v879_v35  ;;  %v1785_v12 = vpop.f32.mrf.mxu1 }
 0x23d   :  { %v5259_v53 = vadd.f32 %v2088_v34, %v1784_v29  ;;  %3071 = vmatprep.mubr.f32.mxu0 %v38_v38  ;;  %v72_v38 = vld [vmem:[#allocation2 + $0x178] sm:$0xff]  ;;  %v1127_v29 = vld [vmem:[%s6041_s1 + $0x770] sm:$0xff] }
 0x23e   :  { %v2090_v5 = vpop.f32.mrf.mxu0  ;;  %v2158_v20 = vpop.f32.mrf.mxu1  ;;  %2767 = vmatmul.mubr.f32.vlgmr.msra.gmra.mxu1 %v35_v4  ;;  %v55_v34 = vld [vmem:[#allocation2 + $0xf0] sm:$0xff] }
 0x23f   :  { %v2159_v47 = vadd.f32 %v2158_v20, %v4869_v52  ;;  %3313 = vmatpush1.msra.mxu1 %v1128_v59  ;;  %2771 = vmatprep.mubr.f32.mxu1 %v54_v49  ;;  %v74_v59 = vld [vmem:[#allocation2 + $0x188] sm:$0xff]  ;;  %v1159_v49 = vld [vmem:[%s6041_s1 + $0x870] sm:$0xff] }
 0x240   :  { %v2463_v35 = vpop.f32.mrf.mxu0  ;;  %3072 = vmatmul.mubr.f32.vlgmr.msra.gmra.mxu0 %v37_v37  ;;  %v2160_v50 = vpop.f32.mrf.mxu1  ;;  %3314 = vmatprep.subr.mxu1 %v6046_v2  ;;  %v71_v5 = vld [vmem:[#allocation2 + $0x170] sm:$0xff] }
 0x241   :  { %v5269_v4 = vadd.f32 %v2463_v35, %v2159_v47  ;;  %3618 = vmatpush1.msra.mxu0 %v1160_v44  ;;  %3076 = vmatprep.mubr.f32.mxu0 %v56_v15  ;;  %v90_v15 = vld [vmem:[#allocation2 + $0x208] sm:$0xff]  ;;  %v73_v35 = vld [vmem:[#allocation2 + $0x180] sm:$0xff] }
 0x242   :  { %v2465_v12 = vpop.f32.mrf.mxu0  ;;  %v2163_v52 = vpop.f32.mrf.mxu1  ;;  %2772 = vmatmul.mubr.f32.gmra.mxu1 %v53_v9  ;;  %3619 = vmatprep.subr.mxu0 %v6046_v2  ;;  %v1126_v47 = vld [vmem:[%s6041_s1 + $0x768] sm:$0xff] }
 0x243   :  { %v2164_v37 = vadd.f32 %v2163_v52, %v4880_v32  ;;  %2776 = vmatprep.mubr.f32.mxu1 %v72_v38  ;;  %3315 = vmatpush1.msra.mxu1 %v1127_v29  ;;  %v92_v38 = vld [vmem:[#allocation2 + $0x218] sm:$0xff]  ;;  %v1158_v29 = vld [vmem:[%s6041_s1 + $0x868] sm:$0xff]  ;;  %v89_v12 = vld [vmem:[#allocation2 + $0x200] sm:$0xff] }
 0x244   :  { %v2468_v20 = vpop.f32.mrf.mxu0  ;;  %3077 = vmatmul.mubr.f32.gmra.mxu0 %v55_v34  ;;  %v2165_v44 = vpop.f32.mrf.mxu1  ;;  %3316 = vmatprep.subr.mxu1 %v6046_v2 }
 0x245   :  { %v5280_v9 = vadd.f32 %v2468_v20, %v2164_v37  ;;  %3081 = vmatprep.mubr.f32.mxu0 %v74_v59  ;;  %3620 = vmatpush1.msra.mxu0 %v1159_v49  ;;  %v108_v37 = vld [vmem:[#allocation2 + $0x298] sm:$0xff]  ;;  %v1125_v49 = vld [vmem:[%s6041_s1 + $0x760] sm:$0xff]  ;;  %v91_v20 = vld [vmem:[#allocation2 + $0x210] sm:$0xff] }
 0x246   :  { %v2470_v50 = vpop.f32.mrf.mxu0  ;;  %v2168_v32 = vpop.f32.mrf.mxu1  ;;  %2777 = vmatmul.mubr.f32.gmra.mxu1 %v71_v5  ;;  %3621 = vmatprep.subr.mxu0 %v6046_v2 }
 0x247   :  { %v2169_v34 = vadd.f32 %v2168_v32, %v4891_v10  ;;  %2781 = vmatprep.mubr.f32.mxu1 %v90_v15  ;;  %3317 = vmatpush1.msra.mxu1 %v1126_v47  ;;  %v110_v15 = vld [vmem:[#allocation2 + $0x2a8] sm:$0xff]  ;;  %v1157_v47 = vld [vmem:[%s6041_s1 + $0x860] sm:$0xff]  ;;  %v107_v50 = vld [vmem:[#allocation2 + $0x290] sm:$0xff] }
 0x248   :  { %v2473_v52 = vpop.f32.mrf.mxu0  ;;  %3082 = vmatmul.mubr.f32.gmra.mxu0 %v73_v35  ;;  %v2170_v59 = vpop.f32.mrf.mxu1  ;;  %3318 = vmatprep.subr.mxu1 %v6046_v2 }
 0x249   :  { %v5291_v5 = vadd.f32 %v2473_v52, %v2169_v34  ;;  %3086 = vmatprep.mubr.f32.mxu0 %v92_v38  ;;  %3622 = vmatpush1.msra.mxu0 %v1158_v29  ;;  %v126_v34 = vld [vmem:[#allocation2 + $0x328] sm:$0xff]  ;;  %v1124_v29 = vld [vmem:[%s6041_s1 + $0x758] sm:$0xff]  ;;  %v109_v52 = vld [vmem:[#allocation2 + $0x2a0] sm:$0xff] }
 0x24a   :  { %v2475_v44 = vpop.f32.mrf.mxu0  ;;  %v2173_v10 = vpop.f32.mrf.mxu1  ;;  %2782 = vmatmul.mubr.f32.gmra.mxu1 %v89_v12  ;;  %3623 = vmatprep.subr.mxu0 %v6046_v2 }
 0x24b   :  { %v2174_v35 = vadd.f32 %v2173_v10, %v4902_v8  ;;  %2786 = vmatprep.mubr.f32.mxu1 %v108_v37  ;;  %3319 = vmatpush1.msra.mxu1 %v1125_v49  ;;  %v128_v37 = vld [vmem:[#allocation2 + $0x338] sm:$0xff]  ;;  %v125_v44 = vld [vmem:[#allocation2 + $0x320] sm:$0xff] }
 0x24c   :  { %v2478_v32 = vpop.f32.mrf.mxu0  ;;  %3087 = vmatmul.mubr.f32.gmra.mxu0 %v91_v20  ;;  %v2175_v38 = vpop.f32.mrf.mxu1  ;;  %3320 = vmatprep.subr.mxu1 %v6046_v2  ;;  %v1156_v49 = vld [vmem:[%s6041_s1 + $0x858] sm:$0xff] }
 0x24d   :  { %v5302_v12 = vadd.f32 %v2478_v32, %v2174_v35  ;;  %3091 = vmatprep.mubr.f32.mxu0 %v110_v15  ;;  %3624 = vmatpush1.msra.mxu0 %v1157_v47  ;;  %v144_v35 = vld [vmem:[#allocation2 + $0x3b8] sm:$0xff]  ;;  %v1123_v47 = vld [vmem:[%s6041_s1 + $0x750] sm:$0xff] }
 0x24e   :  { %v2480_v59 = vpop.f32.mrf.mxu0  ;;  %v2178_v8 = vpop.f32.mrf.mxu1  ;;  %2787 = vmatmul.mubr.f32.gmra.mxu1 %v107_v50  ;;  %3625 = vmatprep.subr.mxu0 %v6046_v2  ;;  %v127_v32 = vld [vmem:[#allocation2 + $0x330] sm:$0xff] }
 0x24f   :  { %v2179_v20 = vadd.f32 %v2178_v8, %v4913_v18  ;;  %2791 = vmatprep.mubr.f32.mxu1 %v126_v34  ;;  %3321 = vmatpush1.msra.mxu1 %v1124_v29  ;;  %v146_v34 = vld [vmem:[#allocation2 + $0x3c8] sm:$0xff]  ;;  %v1155_v29 = vld [vmem:[%s6041_s1 + $0x850] sm:$0xff] }
 0x250   :  { %v2483_v10 = vpop.f32.mrf.mxu0  ;;  %3092 = vmatmul.mubr.f32.gmra.mxu0 %v109_v52  ;;  %v2180_v15 = vpop.f32.mrf.mxu1  ;;  %3322 = vmatprep.subr.mxu1 %v6046_v2  ;;  %v143_v59 = vld [vmem:[#allocation2 + $0x3b0] sm:$0xff] }
 0x251   :  { %v5313_v50 = vadd.f32 %v2483_v10, %v2179_v20  ;;  %3096 = vmatprep.mubr.f32.mxu0 %v128_v37  ;;  %3626 = vmatpush1.msra.mxu0 %v1156_v49  ;;  %v162_v20 = vld [vmem:[#allocation2 + $0x448] sm:$0xff]  ;;  %v145_v10 = vld [vmem:[#allocation2 + $0x3c0] sm:$0xff] }
 0x252   :  { %v2485_v38 = vpop.f32.mrf.mxu0  ;;  %v2183_v18 = vpop.f32.mrf.mxu1  ;;  %2792 = vmatmul.mubr.f32.gmra.mxu1 %v125_v44  ;;  %3627 = vmatprep.subr.mxu0 %v6046_v2  ;;  %v1122_v49 = vld [vmem:[%s6041_s1 + $0x748] sm:$0xff] }
 0x253   :  { %v2184_v52 = vadd.f32 %v2183_v18, %v4924_v30  ;;  %2796 = vmatprep.mubr.f32.mxu1 %v144_v35  ;;  %3323 = vmatpush1.msra.mxu1 %v1123_v47  ;;  %v164_v35 = vld [vmem:[#allocation2 + $0x458] sm:$0xff]  ;;  %v1154_v47 = vld [vmem:[%s6041_s1 + $0x848] sm:$0xff]  ;;  %v161_v38 = vld [vmem:[#allocation2 + $0x440] sm:$0xff] }
 0x254   :  { %v2488_v8 = vpop.f32.mrf.mxu0  ;;  %3097 = vmatmul.mubr.f32.gmra.mxu0 %v127_v32  ;;  %v2185_v37 = vpop.f32.mrf.mxu1  ;;  %3324 = vmatprep.subr.mxu1 %v6046_v2 }
 0x255   :  { %v5324_v44 = vadd.f32 %v2488_v8, %v2184_v52  ;;  %3101 = vmatprep.mubr.f32.mxu0 %v146_v34  ;;  %3628 = vmatpush1.msra.mxu0 %v1155_v29  ;;  %v180_v52 = vld [vmem:[#allocation2 + $0x4d8] sm:$0xff]  ;;  %v1121_v29 = vld [vmem:[%s6041_s1 + $0x740] sm:$0xff]  ;;  %v163_v8 = vld [vmem:[#allocation2 + $0x450] sm:$0xff] }
 0x256   :  { %v2490_v15 = vpop.f32.mrf.mxu0  ;;  %v2188_v30 = vpop.f32.mrf.mxu1  ;;  %2797 = vmatmul.mubr.f32.gmra.mxu1 %v143_v59  ;;  %3629 = vmatprep.subr.mxu0 %v6046_v2 }
 0x257   :  { %v2189_v32 = vadd.f32 %v2188_v30, %v4935_v41  ;;  %2801 = vmatprep.mubr.f32.mxu1 %v162_v20  ;;  %3325 = vmatpush1.msra.mxu1 %v1122_v49  ;;  %v182_v20 = vld [vmem:[#allocation2 + $0x4e8] sm:$0xff]  ;;  %v1153_v49 = vld [vmem:[%s6041_s1 + $0x840] sm:$0xff]  ;;  %v179_v15 = vld [vmem:[#allocation2 + $0x4d0] sm:$0xff] }
 0x258   :  { %v2493_v18 = vpop.f32.mrf.mxu0  ;;  %3102 = vmatmul.mubr.f32.gmra.mxu0 %v145_v10  ;;  %v2190_v34 = vpop.f32.mrf.mxu1  ;;  %3326 = vmatprep.subr.mxu1 %v6046_v2 }
 0x259   :  { %v5335_v59 = vadd.f32 %v2493_v18, %v2189_v32  ;;  %3106 = vmatprep.mubr.f32.mxu0 %v164_v35  ;;  %3630 = vmatpush1.msra.mxu0 %v1154_v47  ;;  %v198_v32 = vld [vmem:[#allocation2 + $0x568] sm:$0xff]  ;;  %v1120_v47 = vld [vmem:[%s6041_s1 + $0x738] sm:$0xff]  ;;  %v181_v18 = vld [vmem:[#allocation2 + $0x4e0] sm:$0xff] }
 0x25a   :  { %v2495_v37 = vpop.f32.mrf.mxu0  ;;  %v2193_v41 = vpop.f32.mrf.mxu1  ;;  %2802 = vmatmul.mubr.f32.gmra.mxu1 %v161_v38  ;;  %3631 = vmatprep.subr.mxu0 %v6046_v2 }
 0x25b   :  { %v2194_v10 = vadd.f32 %v2193_v41, %v4946_v51  ;;  %2806 = vmatprep.mubr.f32.mxu1 %v180_v52  ;;  %3327 = vmatpush1.msra.mxu1 %v1121_v29  ;;  %v200_v52 = vld [vmem:[#allocation2 + $0x578] sm:$0xff]  ;;  %v197_v37 = vld [vmem:[#allocation2 + $0x560] sm:$0xff] }
 0x25c   :  { %v2498_v30 = vpop.f32.mrf.mxu0  ;;  %3107 = vmatmul.mubr.f32.gmra.mxu0 %v163_v8  ;;  %v2195_v35 = vpop.f32.mrf.mxu1  ;;  %3328 = vmatprep.subr.mxu1 %v6046_v2  ;;  %v1152_v29 = vld [vmem:[%s6041_s1 + $0x838] sm:$0xff] }
 0x25d   :  { %v5346_v38 = vadd.f32 %v2498_v30, %v2194_v10  ;;  %3111 = vmatprep.mubr.f32.mxu0 %v182_v20  ;;  %3632 = vmatpush1.msra.mxu0 %v1153_v49  ;;  %v216_v10 = vld [vmem:[#allocation2 + $0x5f8] sm:$0xff]  ;;  %v1119_v49 = vld [vmem:[%s6041_s1 + $0x730] sm:$0xff] }
 0x25e   :  { %v2500_v34 = vpop.f32.mrf.mxu0  ;;  %v2198_v51 = vpop.f32.mrf.mxu1  ;;  %2807 = vmatmul.mubr.f32.gmra.mxu1 %v179_v15  ;;  %3633 = vmatprep.subr.mxu0 %v6046_v2  ;;  %v199_v30 = vld [vmem:[#allocation2 + $0x570] sm:$0xff] }
 0x25f   :  { %v2199_v8 = vadd.f32 %v2198_v51, %v4957_v63  ;;  %2811 = vmatprep.mubr.f32.mxu1 %v198_v32  ;;  %3329 = vmatpush1.msra.mxu1 %v1120_v47  ;;  %v218_v32 = vld [vmem:[#allocation2 + $0x608] sm:$0xff]  ;;  %v1151_v47 = vld [vmem:[%s6041_s1 + $0x830] sm:$0xff] }
 0x260   :  { %v2503_v41 = vpop.f32.mrf.mxu0  ;;  %3112 = vmatmul.mubr.f32.gmra.mxu0 %v181_v18  ;;  %v2200_v20 = vpop.f32.mrf.mxu1  ;;  %3330 = vmatprep.subr.mxu1 %v6046_v2  ;;  %v215_v34 = vld [vmem:[#allocation2 + $0x5f0] sm:$0xff] }
 0x261   :  { %v5357_v15 = vadd.f32 %v2503_v41, %v2199_v8  ;;  %3116 = vmatprep.mubr.f32.mxu0 %v200_v52  ;;  %3634 = vmatpush1.msra.mxu0 %v1152_v29  ;;  %v234_v8 = vld [vmem:[#allocation2 + $0x688] sm:$0xff]  ;;  %v217_v41 = vld [vmem:[#allocation2 + $0x600] sm:$0xff] }
 0x262   :  { %v2505_v35 = vpop.f32.mrf.mxu0  ;;  %v2203_v63 = vpop.f32.mrf.mxu1  ;;  %2812 = vmatmul.mubr.f32.gmra.mxu1 %v197_v37  ;;  %3635 = vmatprep.subr.mxu0 %v6046_v2  ;;  %v1118_v29 = vld [vmem:[%s6041_s1 + $0x728] sm:$0xff] }
 0x263   :  { %v2204_v18 = vadd.f32 %v2203_v63, %v4968_v13  ;;  %2816 = vmatprep.mubr.f32.mxu1 %v216_v10  ;;  %3331 = vmatpush1.msra.mxu1 %v1119_v49  ;;  %v236_v10 = vld [vmem:[#allocation2 + $0x698] sm:$0xff]  ;;  %v1150_v49 = vld [vmem:[%s6041_s1 + $0x828] sm:$0xff]  ;;  %v233_v35 = vld [vmem:[#allocation2 + $0x680] sm:$0xff] }
 0x264   :  { %v2508_v51 = vpop.f32.mrf.mxu0  ;;  %3117 = vmatmul.mubr.f32.gmra.mxu0 %v199_v30  ;;  %v2205_v52 = vpop.f32.mrf.mxu1  ;;  %3332 = vmatprep.subr.mxu1 %v6046_v2 }
 0x265   :  { %v5368_v37 = vadd.f32 %v2508_v51, %v2204_v18  ;;  %3121 = vmatprep.mubr.f32.mxu0 %v218_v32  ;;  %3636 = vmatpush1.msra.mxu0 %v1151_v47  ;;  %v252_v18 = vld [vmem:[#allocation2 + $0x718] sm:$0xff]  ;;  %v1117_v47 = vld [vmem:[%s6041_s1 + $0x720] sm:$0xff]  ;;  %v235_v51 = vld [vmem:[#allocation2 + $0x690] sm:$0xff] }
 0x266   :  { %v2510_v20 = vpop.f32.mrf.mxu0  ;;  %v2208_v13 = vpop.f32.mrf.mxu1  ;;  %2817 = vmatmul.mubr.f32.gmra.mxu1 %v215_v34  ;;  %3637 = vmatprep.subr.mxu0 %v6046_v2 }
 0x267   :  { %v2209_v30 = vadd.f32 %v2208_v13, %v4979_v25  ;;  %2821 = vmatprep.mubr.f32.mxu1 %v234_v8  ;;  %3333 = vmatpush1.msra.mxu1 %v1118_v29  ;;  %v254_v8 = vld [vmem:[#allocation2 + $0x728] sm:$0xff]  ;;  %v1149_v29 = vld [vmem:[%s6041_s1 + $0x820] sm:$0xff]  ;;  %v251_v20 = vld [vmem:[#allocation2 + $0x710] sm:$0xff] }
 0x268   :  { %v2513_v63 = vpop.f32.mrf.mxu0  ;;  %3122 = vmatmul.mubr.f32.gmra.mxu0 %v217_v41  ;;  %v2210_v32 = vpop.f32.mrf.mxu1  ;;  %3334 = vmatprep.subr.mxu1 %v6046_v2 }
 0x269   :  { %v5379_v34 = vadd.f32 %v2513_v63, %v2209_v30  ;;  %3126 = vmatprep.mubr.f32.mxu0 %v236_v10  ;;  %3638 = vmatpush1.msra.mxu0 %v1150_v49  ;;  %v270_v30 = vld [vmem:[#allocation2 + $0x7a8] sm:$0xff]  ;;  %v1116_v49 = vld [vmem:[%s6041_s1 + $0x718] sm:$0xff]  ;;  %v253_v63 = vld [vmem:[#allocation2 + $0x720] sm:$0xff] }
 0x26a   :  { %v2515_v52 = vpop.f32.mrf.mxu0  ;;  %v2213_v25 = vpop.f32.mrf.mxu1  ;;  %2822 = vmatmul.mubr.f32.gmra.mxu1 %v233_v35  ;;  %3639 = vmatprep.subr.mxu0 %v6046_v2 }
 0x26b   :  { %v2214_v41 = vadd.f32 %v2213_v25, %v4990_v40  ;;  %2826 = vmatprep.mubr.f32.mxu1 %v252_v18  ;;  %3335 = vmatpush1.msra.mxu1 %v1117_v47  ;;  %v272_v18 = vld [vmem:[#allocation2 + $0x7b8] sm:$0xff]  ;;  %v269_v52 = vld [vmem:[#allocation2 + $0x7a0] sm:$0xff] }
 0x26c   :  { %v2518_v13 = vpop.f32.mrf.mxu0  ;;  %3127 = vmatmul.mubr.f32.gmra.mxu0 %v235_v51  ;;  %v2215_v10 = vpop.f32.mrf.mxu1  ;;  %3336 = vmatprep.subr.mxu1 %v6046_v2  ;;  %v1148_v47 = vld [vmem:[%s6041_s1 + $0x818] sm:$0xff] }
 0x26d   :  { %v5390_v35 = vadd.f32 %v2518_v13, %v2214_v41  ;;  %3131 = vmatprep.mubr.f32.mxu0 %v254_v8  ;;  %3640 = vmatpush1.msra.mxu0 %v1149_v29  ;;  %v288_v41 = vld [vmem:[#allocation2 + $0x838] sm:$0xff]  ;;  %v1115_v29 = vld [vmem:[%s6041_s1 + $0x710] sm:$0xff] }
 0x26e   :  { %v2520_v32 = vpop.f32.mrf.mxu0  ;;  %v2218_v40 = vpop.f32.mrf.mxu1  ;;  %2827 = vmatmul.mubr.f32.gmra.mxu1 %v251_v20  ;;  %3641 = vmatprep.subr.mxu0 %v6046_v2  ;;  %v271_v13 = vld [vmem:[#allocation2 + $0x7b0] sm:$0xff] }
 0x26f   :  { %v2219_v51 = vadd.f32 %v2218_v40, %v5001_v54  ;;  %2831 = vmatprep.mubr.f32.mxu1 %v270_v30  ;;  %3337 = vmatpush1.msra.mxu1 %v1116_v49  ;;  %v290_v30 = vld [vmem:[#allocation2 + $0x848] sm:$0xff]  ;;  %v1147_v49 = vld [vmem:[%s6041_s1 + $0x810] sm:$0xff] }
 0x270   :  { %v2523_v25 = vpop.f32.mrf.mxu0  ;;  %3132 = vmatmul.mubr.f32.gmra.mxu0 %v253_v63  ;;  %v2220_v8 = vpop.f32.mrf.mxu1  ;;  %3338 = vmatprep.subr.mxu1 %v6046_v2  ;;  %v287_v32 = vld [vmem:[#allocation2 + $0x830] sm:$0xff] }
 0x271   :  { %v5401_v20 = vadd.f32 %v2523_v25, %v2219_v51  ;;  %3136 = vmatprep.mubr.f32.mxu0 %v272_v18  ;;  %3642 = vmatpush1.msra.mxu0 %v1148_v47  ;;  %v306_v51 = vld [vmem:[#allocation2 + $0x8c8] sm:$0xff]  ;;  %v289_v25 = vld [vmem:[#allocation2 + $0x840] sm:$0xff] }
 0x272   :  { %v2525_v10 = vpop.f32.mrf.mxu0  ;;  %v2223_v54 = vpop.f32.mrf.mxu1  ;;  %2832 = vmatmul.mubr.f32.gmra.mxu1 %v269_v52  ;;  %3643 = vmatprep.subr.mxu0 %v6046_v2  ;;  %v1114_v47 = vld [vmem:[%s6041_s1 + $0x708] sm:$0xff] }
 0x273   :  { %v2224_v63 = vadd.f32 %v2223_v54, %v5012_v3  ;;  %2836 = vmatprep.mubr.f32.mxu1 %v288_v41  ;;  %3339 = vmatpush1.msra.mxu1 %v1115_v29  ;;  %v308_v41 = vld [vmem:[#allocation2 + $0x8d8] sm:$0xff]  ;;  %v1146_v29 = vld [vmem:[%s6041_s1 + $0x808] sm:$0xff]  ;;  %v305_v10 = vld [vmem:[#allocation2 + $0x8c0] sm:$0xff] }
 0x274   :  { %v2528_v40 = vpop.f32.mrf.mxu0  ;;  %3137 = vmatmul.mubr.f32.gmra.mxu0 %v271_v13  ;;  %v2225_v18 = vpop.f32.mrf.mxu1  ;;  %3340 = vmatprep.subr.mxu1 %v6046_v2 }
 0x275   :  { %v5412_v52 = vadd.f32 %v2528_v40, %v2224_v63  ;;  %3141 = vmatprep.mubr.f32.mxu0 %v290_v30  ;;  %3644 = vmatpush1.msra.mxu0 %v1147_v49  ;;  %v324_v63 = vld [vmem:[#allocation2 + $0x958] sm:$0xff]  ;;  %v1113_v49 = vld [vmem:[%s6041_s1 + $0x700] sm:$0xff]  ;;  %v307_v40 = vld [vmem:[#allocation2 + $0x8d0] sm:$0xff] }
 0x276   :  { %v2530_v8 = vpop.f32.mrf.mxu0  ;;  %v2228_v3 = vpop.f32.mrf.mxu1  ;;  %2837 = vmatmul.mubr.f32.gmra.mxu1 %v287_v32  ;;  %3645 = vmatprep.subr.mxu0 %v6046_v2 }
 0x277   :  { %v2229_v13 = vadd.f32 %v2228_v3, %v5023_v17  ;;  %2841 = vmatprep.mubr.f32.mxu1 %v306_v51  ;;  %3341 = vmatpush1.msra.mxu1 %v1114_v47  ;;  %v326_v51 = vld [vmem:[#allocation2 + $0x968] sm:$0xff]  ;;  %v1145_v47 = vld [vmem:[%s6041_s1 + $0x800] sm:$0xff]  ;;  %v323_v8 = vld [vmem:[#allocation2 + $0x950] sm:$0xff] }
 0x278   :  { %v2533_v54 = vpop.f32.mrf.mxu0  ;;  %3142 = vmatmul.mubr.f32.gmra.mxu0 %v289_v25  ;;  %v2230_v30 = vpop.f32.mrf.mxu1  ;;  %3342 = vmatprep.subr.mxu1 %v6046_v2 }
 0x279   :  { %v5423_v32 = vadd.f32 %v2533_v54, %v2229_v13  ;;  %3146 = vmatprep.mubr.f32.mxu0 %v308_v41  ;;  %3646 = vmatpush1.msra.mxu0 %v1146_v29  ;;  %v342_v13 = vld [vmem:[#allocation2 + $0x9e8] sm:$0xff]  ;;  %v1144_v29 = vld [vmem:[%s6041_s1 + $0x7f8] sm:$0xff]  ;;  %v325_v54 = vld [vmem:[#allocation2 + $0x960] sm:$0xff] }
 0x27a   :  { %v2535_v18 = vpop.f32.mrf.mxu0  ;;  %v2233_v17 = vpop.f32.mrf.mxu1  ;;  %2842 = vmatmul.mubr.f32.gmra.mxu1 %v305_v10  ;;  %3647 = vmatprep.subr.mxu0 %v6046_v2 }
 0x27b   :  { %v2234_v25 = vadd.f32 %v2233_v17, %v5034_v31  ;;  %2846 = vmatprep.mubr.f32.mxu1 %v324_v63  ;;  %3343 = vmatpush1.msra.mxu1 %v1113_v49  ;;  %v344_v63 = vld [vmem:[#allocation2 + $0x9f8] sm:$0xff]  ;;  %v341_v18 = vld [vmem:[#allocation2 + $0x9e0] sm:$0xff] }
 0x27c   :  { %v2538_v3 = vpop.f32.mrf.mxu0  ;;  %3147 = vmatmul.mubr.f32.gmra.mxu0 %v307_v40  ;;  %v2235_v41 = vpop.f32.mrf.mxu1  ;;  %3344 = vmatprep.subr.mxu1 %v6046_v2  ;;  %v1176_v49 = vld [vmem:[%s6041_s1 + $0x8f8] sm:$0xff] }
 0x27d   :  { %v5434_v10 = vadd.f32 %v2538_v3, %v2234_v25  ;;  %3151 = vmatprep.mubr.f32.mxu0 %v326_v51  ;;  %3648 = vmatpush1.msra.mxu0 %v1145_v47  ;;  %v360_v25 = vld [vmem:[#allocation2 + $0xa78] sm:$0xff]  ;;  %v1143_v47 = vld [vmem:[%s6041_s1 + $0x7f0] sm:$0xff] }
 0x27e   :  { %v2540_v30 = vpop.f32.mrf.mxu0  ;;  %v2238_v31 = vpop.f32.mrf.mxu1  ;;  %2847 = vmatmul.mubr.f32.gmra.mxu1 %v323_v8  ;;  %3649 = vmatprep.subr.mxu0 %v6046_v2  ;;  %v343_v3 = vld [vmem:[#allocation2 + $0x9f0] sm:$0xff] }
 0x27f   :  { %v2239_v40 = vadd.f32 %v2238_v31, %v5045_v43  ;;  %2851 = vmatprep.mubr.f32.mxu1 %v342_v13  ;;  %3345 = vmatpush2.msra.mxu1 %v1144_v29  ;;  %v362_v13 = vld [vmem:[#allocation2 + $0xa88] sm:$0xff]  ;;  %v1175_v29 = vld [vmem:[%s6041_s1 + $0x8f0] sm:$0xff] }
 0x280   :  { %v2543_v17 = vpop.f32.mrf.mxu0  ;;  %3152 = vmatmul.mubr.f32.gmra.mxu0 %v325_v54  ;;  %v2240_v51 = vpop.f32.mrf.mxu1  ;;  %3346 = vmatprep.subr.mxu1 %v6046_v2  ;;  %v359_v30 = vld [vmem:[#allocation2 + $0xa70] sm:$0xff] }
 0x281   :  { %v5445_v8 = vadd.f32 %v2543_v17, %v2239_v40  ;;  %3156 = vmatprep.mubr.f32.mxu0 %v344_v63  ;;  %3650 = vmatpush2.msra.mxu0 %v1176_v49  ;;  %v378_v40 = vld [vmem:[#allocation2 + $0xb08] sm:$0xff]  ;;  %v361_v17 = vld [vmem:[#allocation2 + $0xa80] sm:$0xff] }
 0x282   :  { %v2545_v41 = vpop.f32.mrf.mxu0  ;;  %v2243_v43 = vpop.f32.mrf.mxu1  ;;  %2852 = vmatmul.mubr.f32.gmra.mxu1 %v341_v18  ;;  %3651 = vmatprep.subr.mxu0 %v6046_v2  ;;  %v1142_v49 = vld [vmem:[%s6041_s1 + $0x7e8] sm:$0xff] }
 0x283   :  { %v2244_v54 = vadd.f32 %v2243_v43, %v5056_v56  ;;  %2856 = vmatprep.mubr.f32.mxu1 %v360_v25  ;;  %3347 = vmatpush2.msra.mxu1 %v1143_v47  ;;  %v380_v25 = vld [vmem:[#allocation2 + $0xb18] sm:$0xff]  ;;  %v1174_v47 = vld [vmem:[%s6041_s1 + $0x8e8] sm:$0xff]  ;;  %v377_v41 = vld [vmem:[#allocation2 + $0xb00] sm:$0xff] }
 0x284   :  { %v2548_v31 = vpop.f32.mrf.mxu0  ;;  %3157 = vmatmul.mubr.f32.gmra.mxu0 %v343_v3  ;;  %v2245_v63 = vpop.f32.mrf.mxu1  ;;  %3348 = vmatprep.subr.mxu1 %v6046_v2 }
 0x285   :  { %v5456_v18 = vadd.f32 %v2548_v31, %v2244_v54  ;;  %3161 = vmatprep.mubr.f32.mxu0 %v362_v13  ;;  %3652 = vmatpush2.msra.mxu0 %v1175_v29  ;;  %v396_v54 = vld [vmem:[#allocation2 + $0xb98] sm:$0xff]  ;;  %v1141_v29 = vld [vmem:[%s6041_s1 + $0x7e0] sm:$0xff]  ;;  %v379_v31 = vld [vmem:[#allocation2 + $0xb10] sm:$0xff] }
 0x286   :  { %v2550_v51 = vpop.f32.mrf.mxu0  ;;  %v2248_v56 = vpop.f32.mrf.mxu1  ;;  %2857 = vmatmul.mubr.f32.gmra.mxu1 %v359_v30  ;;  %3653 = vmatprep.subr.mxu0 %v6046_v2 }
 0x287   :  { %v2249_v3 = vadd.f32 %v2248_v56, %v5067_v7  ;;  %2861 = vmatprep.mubr.f32.mxu1 %v378_v40  ;;  %3349 = vmatpush2.msra.mxu1 %v1142_v49  ;;  %v398_v40 = vld [vmem:[#allocation2 + $0xba8] sm:$0xff]  ;;  %v1173_v49 = vld [vmem:[%s6041_s1 + $0x8e0] sm:$0xff]  ;;  %v395_v51 = vld [vmem:[#allocation2 + $0xb90] sm:$0xff] }
 0x288   :  { %v2553_v43 = vpop.f32.mrf.mxu0  ;;  %3162 = vmatmul.mubr.f32.gmra.mxu0 %v361_v17  ;;  %v2250_v13 = vpop.f32.mrf.mxu1  ;;  %3350 = vmatprep.subr.mxu1 %v6046_v2 }
 0x289   :  { %v5467_v30 = vadd.f32 %v2553_v43, %v2249_v3  ;;  %3166 = vmatprep.mubr.f32.mxu0 %v380_v25  ;;  %3654 = vmatpush2.msra.mxu0 %v1174_v47  ;;  %v414_v3 = vld [vmem:[#allocation2 + $0xc28] sm:$0xff]  ;;  %v1140_v47 = vld [vmem:[%s6041_s1 + $0x7d8] sm:$0xff]  ;;  %v397_v43 = vld [vmem:[#allocation2 + $0xba0] sm:$0xff] }
 0x28a   :  { %v2555_v63 = vpop.f32.mrf.mxu0  ;;  %v2253_v7 = vpop.f32.mrf.mxu1  ;;  %2862 = vmatmul.mubr.f32.gmra.mxu1 %v377_v41  ;;  %3655 = vmatprep.subr.mxu0 %v6046_v2 }
 0x28b   :  { %v2254_v17 = vadd.f32 %v2253_v7, %v5078_v22  ;;  %2866 = vmatprep.mubr.f32.mxu1 %v396_v54  ;;  %3351 = vmatpush2.msra.mxu1 %v1141_v29  ;;  %v416_v54 = vld [vmem:[#allocation2 + $0xc38] sm:$0xff]  ;;  %v413_v63 = vld [vmem:[#allocation2 + $0xc20] sm:$0xff] }
 0x28c   :  { %v2558_v56 = vpop.f32.mrf.mxu0  ;;  %3167 = vmatmul.mubr.f32.gmra.mxu0 %v379_v31  ;;  %v2255_v25 = vpop.f32.mrf.mxu1  ;;  %3352 = vmatprep.subr.mxu1 %v6046_v2  ;;  %v1172_v29 = vld [vmem:[%s6041_s1 + $0x8d8] sm:$0xff] }
 0x28d   :  { %v5478_v41 = vadd.f32 %v2558_v56, %v2254_v17  ;;  %3171 = vmatprep.mubr.f32.mxu0 %v398_v40  ;;  %3656 = vmatpush2.msra.mxu0 %v1173_v49  ;;  %v432_v17 = vld [vmem:[#allocation2 + $0xcb8] sm:$0xff]  ;;  %v1139_v49 = vld [vmem:[%s6041_s1 + $0x7d0] sm:$0xff] }
 0x28e   :  { %v2560_v13 = vpop.f32.mrf.mxu0  ;;  %v2258_v22 = vpop.f32.mrf.mxu1  ;;  %2867 = vmatmul.mubr.f32.gmra.mxu1 %v395_v51  ;;  %3657 = vmatprep.subr.mxu0 %v6046_v2  ;;  %v415_v56 = vld [vmem:[#allocation2 + $0xc30] sm:$0xff] }
 0x28f   :  { %v2259_v31 = vadd.f32 %v2258_v22, %v5089_v42  ;;  %2871 = vmatprep.mubr.f32.mxu1 %v414_v3  ;;  %3353 = vmatpush2.msra.mxu1 %v1140_v47  ;;  %v434_v3 = vld [vmem:[#allocation2 + $0xcc8] sm:$0xff]  ;;  %v1171_v47 = vld [vmem:[%s6041_s1 + $0x8d0] sm:$0xff] }
 0x290   :  { %v2563_v7 = vpop.f32.mrf.mxu0  ;;  %3172 = vmatmul.mubr.f32.gmra.mxu0 %v397_v43  ;;  %v2260_v40 = vpop.f32.mrf.mxu1  ;;  %3354 = vmatprep.subr.mxu1 %v6046_v2  ;;  %v431_v13 = vld [vmem:[#allocation2 + $0xcb0] sm:$0xff] }
 0x291   :  { %v5489_v51 = vadd.f32 %v2563_v7, %v2259_v31  ;;  %3176 = vmatprep.mubr.f32.mxu0 %v416_v54  ;;  %3658 = vmatpush2.msra.mxu0 %v1172_v29  ;;  %v450_v31 = vld [vmem:[#allocation2 + $0xd48] sm:$0xff]  ;;  %v433_v7 = vld [vmem:[#allocation2 + $0xcc0] sm:$0xff] }
 0x292   :  { %v2565_v25 = vpop.f32.mrf.mxu0  ;;  %v2263_v42 = vpop.f32.mrf.mxu1  ;;  %2872 = vmatmul.mubr.f32.gmra.mxu1 %v413_v63  ;;  %3659 = vmatprep.subr.mxu0 %v6046_v2  ;;  %v1138_v29 = vld [vmem:[%s6041_s1 + $0x7c8] sm:$0xff] }
 0x293   :  { %v2264_v43 = vadd.f32 %v2263_v42, %v5100_v57  ;;  %2876 = vmatprep.mubr.f32.mxu1 %v432_v17  ;;  %3355 = vmatpush2.msra.mxu1 %v1139_v49  ;;  %v452_v17 = vld [vmem:[#allocation2 + $0xd58] sm:$0xff]  ;;  %v1170_v49 = vld [vmem:[%s6041_s1 + $0x8c8] sm:$0xff]  ;;  %v449_v25 = vld [vmem:[#allocation2 + $0xd40] sm:$0xff] }
 0x294   :  { %v2568_v22 = vpop.f32.mrf.mxu0  ;;  %3177 = vmatmul.mubr.f32.gmra.mxu0 %v415_v56  ;;  %v2265_v54 = vpop.f32.mrf.mxu1  ;;  %3356 = vmatprep.subr.mxu1 %v6046_v2 }
 0x295   :  { %v5500_v63 = vadd.f32 %v2568_v22, %v2264_v43  ;;  %3181 = vmatprep.mubr.f32.mxu0 %v434_v3  ;;  %3660 = vmatpush2.msra.mxu0 %v1171_v47  ;;  %v468_v43 = vld [vmem:[#allocation2 + $0xdd8] sm:$0xff]  ;;  %v1137_v47 = vld [vmem:[%s6041_s1 + $0x7c0] sm:$0xff]  ;;  %v451_v22 = vld [vmem:[#allocation2 + $0xd50] sm:$0xff] }
 0x296   :  { %v2570_v40 = vpop.f32.mrf.mxu0  ;;  %v2268_v57 = vpop.f32.mrf.mxu1  ;;  %2877 = vmatmul.mubr.f32.gmra.mxu1 %v431_v13  ;;  %3661 = vmatprep.subr.mxu0 %v6046_v2 }
 0x297   :  { %v2269_v56 = vadd.f32 %v2268_v57, %v5111_v11  ;;  %2881 = vmatprep.mubr.f32.mxu1 %v450_v31  ;;  %3357 = vmatpush2.msra.mxu1 %v1138_v29  ;;  %v470_v31 = vld [vmem:[#allocation2 + $0xde8] sm:$0xff]  ;;  %v1169_v29 = vld [vmem:[%s6041_s1 + $0x8c0] sm:$0xff]  ;;  %v467_v40 = vld [vmem:[#allocation2 + $0xdd0] sm:$0xff] }
 0x298   :  { %v2573_v42 = vpop.f32.mrf.mxu0  ;;  %3182 = vmatmul.mubr.f32.gmra.mxu0 %v433_v7  ;;  %v2270_v3 = vpop.f32.mrf.mxu1  ;;  %3358 = vmatprep.subr.mxu1 %v6046_v2 }
 0x299   :  { %v5511_v13 = vadd.f32 %v2573_v42, %v2269_v56  ;;  %3186 = vmatprep.mubr.f32.mxu0 %v452_v17  ;;  %3662 = vmatpush2.msra.mxu0 %v1170_v49  ;;  %v486_v56 = vld [vmem:[#allocation2 + $0xe68] sm:$0xff]  ;;  %v1136_v49 = vld [vmem:[%s6041_s1 + $0x7b8] sm:$0xff]  ;;  %v469_v42 = vld [vmem:[#allocation2 + $0xde0] sm:$0xff] }
 0x29a   :  { %v2575_v54 = vpop.f32.mrf.mxu0  ;;  %v2273_v11 = vpop.f32.mrf.mxu1  ;;  %2882 = vmatmul.mubr.f32.gmra.mxu1 %v449_v25  ;;  %3663 = vmatprep.subr.mxu0 %v6046_v2 }
 0x29b   :  { %v2274_v7 = vadd.f32 %v2273_v11, %v5122_v33  ;;  %2886 = vmatprep.mubr.f32.mxu1 %v468_v43  ;;  %3359 = vmatpush2.msra.mxu1 %v1137_v47  ;;  %v488_v43 = vld [vmem:[#allocation2 + $0xe78] sm:$0xff]  ;;  %v485_v54 = vld [vmem:[#allocation2 + $0xe60] sm:$0xff] }
 0x29c   :  { %v2578_v57 = vpop.f32.mrf.mxu0  ;;  %3187 = vmatmul.mubr.f32.gmra.mxu0 %v451_v22  ;;  %v2275_v17 = vpop.f32.mrf.mxu1  ;;  %3360 = vmatprep.subr.mxu1 %v6046_v2  ;;  %v1168_v47 = vld [vmem:[%s6041_s1 + $0x8b8] sm:$0xff] }
 0x29d   :  { %v5522_v25 = vadd.f32 %v2578_v57, %v2274_v7  ;;  %3191 = vmatprep.mubr.f32.mxu0 %v470_v31  ;;  %3664 = vmatpush2.msra.mxu0 %v1169_v29  ;;  %v504_v7 = vld [vmem:[#allocation2 + $0xef8] sm:$0xff]  ;;  %v1135_v29 = vld [vmem:[%s6041_s1 + $0x7b0] sm:$0xff] }
 0x29e   :  { %v2580_v3 = vpop.f32.mrf.mxu0  ;;  %v2278_v33 = vpop.f32.mrf.mxu1  ;;  %2887 = vmatmul.mubr.f32.gmra.mxu1 %v467_v40  ;;  %3665 = vmatprep.subr.mxu0 %v6046_v2  ;;  %v487_v57 = vld [vmem:[#allocation2 + $0xe70] sm:$0xff] }
 0x29f   :  { %v2279_v22 = vadd.f32 %v2278_v33, %v5133_v58  ;;  %2891 = vmatprep.mubr.f32.mxu1 %v486_v56  ;;  %3361 = vmatpush2.msra.mxu1 %v1136_v49  ;;  %v506_v56 = vld [vmem:[#allocation2 + $0xf08] sm:$0xff]  ;;  %v1167_v49 = vld [vmem:[%s6041_s1 + $0x8b0] sm:$0xff] }
 0x2a0   :  { %v2583_v11 = vpop.f32.mrf.mxu0  ;;  %3192 = vmatmul.mubr.f32.gmra.mxu0 %v469_v42  ;;  %v2280_v31 = vpop.f32.mrf.mxu1  ;;  %3362 = vmatprep.subr.mxu1 %v6046_v2  ;;  %v503_v3 = vld [vmem:[#allocation2 + $0xef0] sm:$0xff] }
 0x2a1   :  { %v5533_v40 = vadd.f32 %v2583_v11, %v2279_v22  ;;  %3196 = vmatprep.mubr.f32.mxu0 %v488_v43  ;;  %3666 = vmatpush2.msra.mxu0 %v1168_v47  ;;  %v522_v22 = vld [vmem:[#allocation2 + $0xf88] sm:$0xff]  ;;  %v505_v11 = vld [vmem:[#allocation2 + $0xf00] sm:$0xff] }
 0x2a2   :  { %v2585_v17 = vpop.f32.mrf.mxu0  ;;  %v2283_v58 = vpop.f32.mrf.mxu1  ;;  %2892 = vmatmul.mubr.f32.gmra.mxu1 %v485_v54  ;;  %3667 = vmatprep.subr.mxu0 %v6046_v2  ;;  %v1134_v47 = vld [vmem:[%s6041_s1 + $0x7a8] sm:$0xff] }
 0x2a3   :  { %v2284_v42 = vadd.f32 %v2283_v58, %v5144_v19  ;;  %2896 = vmatprep.mubr.f32.mxu1 %v504_v7  ;;  %3363 = vmatpush2.msra.mxu1 %v1135_v29  ;;  %v524_v7 = vld [vmem:[#allocation2 + $0xf98] sm:$0xff]  ;;  %v1166_v29 = vld [vmem:[%s6041_s1 + $0x8a8] sm:$0xff]  ;;  %v521_v17 = vld [vmem:[#allocation2 + $0xf80] sm:$0xff] }
 0x2a4   :  { %v2588_v33 = vpop.f32.mrf.mxu0  ;;  %3197 = vmatmul.mubr.f32.gmra.mxu0 %v487_v57  ;;  %v2285_v43 = vpop.f32.mrf.mxu1  ;;  %3364 = vmatprep.subr.mxu1 %v6046_v2 }
 0x2a5   :  { %v5544_v54 = vadd.f32 %v2588_v33, %v2284_v42  ;;  %3201 = vmatprep.mubr.f32.mxu0 %v506_v56  ;;  %3668 = vmatpush2.msra.mxu0 %v1167_v49  ;;  %v540_v42 = vld [vmem:[#allocation2 + $0x1018] sm:$0xff]  ;;  %v1133_v49 = vld [vmem:[%s6041_s1 + $0x7a0] sm:$0xff]  ;;  %v523_v33 = vld [vmem:[#allocation2 + $0xf90] sm:$0xff] }
 0x2a6   :  { %v2590_v31 = vpop.f32.mrf.mxu0  ;;  %v2288_v19 = vpop.f32.mrf.mxu1  ;;  %2897 = vmatmul.mubr.f32.gmra.mxu1 %v503_v3  ;;  %3669 = vmatprep.subr.mxu0 %v6046_v2 }
 0x2a7   :  { %v2289_v57 = vadd.f32 %v2288_v19, %v5155_v46  ;;  %2901 = vmatprep.mubr.f32.mxu1 %v522_v22  ;;  %3365 = vmatpush2.msra.mxu1 %v1134_v47  ;;  %v542_v22 = vld [vmem:[#allocation2 + $0x1028] sm:$0xff]  ;;  %v1165_v47 = vld [vmem:[%s6041_s1 + $0x8a0] sm:$0xff]  ;;  %v539_v31 = vld [vmem:[#allocation2 + $0x1010] sm:$0xff] }
 0x2a8   :  { %v2593_v58 = vpop.f32.mrf.mxu0  ;;  %3202 = vmatmul.mubr.f32.gmra.mxu0 %v505_v11  ;;  %v2290_v56 = vpop.f32.mrf.mxu1  ;;  %3366 = vmatprep.subr.mxu1 %v6046_v2 }
 0x2a9   :  { %v5555_v3 = vadd.f32 %v2593_v58, %v2289_v57  ;;  %3206 = vmatprep.mubr.f32.mxu0 %v524_v7  ;;  %3670 = vmatpush2.msra.mxu0 %v1166_v29  ;;  %v558_v57 = vld [vmem:[#allocation2 + $0x10a8] sm:$0xff]  ;;  %v1132_v29 = vld [vmem:[%s6041_s1 + $0x798] sm:$0xff]  ;;  %v541_v58 = vld [vmem:[#allocation2 + $0x1020] sm:$0xff] }
 0x2aa   :  { %v2595_v43 = vpop.f32.mrf.mxu0  ;;  %v2293_v46 = vpop.f32.mrf.mxu1  ;;  %2902 = vmatmul.mubr.f32.gmra.mxu1 %v521_v17  ;;  %3671 = vmatprep.subr.mxu0 %v6046_v2 }
 0x2ab   :  { %v2294_v11 = vadd.f32 %v2293_v46, %v5166_v6  ;;  %2906 = vmatprep.mubr.f32.mxu1 %v540_v42  ;;  %3367 = vmatpush2.msra.mxu1 %v1133_v49  ;;  %v560_v42 = vld [vmem:[#allocation2 + $0x10b8] sm:$0xff]  ;;  %v557_v43 = vld [vmem:[#allocation2 + $0x10a0] sm:$0xff] }
 0x2ac   :  { %v2598_v19 = vpop.f32.mrf.mxu0  ;;  %3207 = vmatmul.mubr.f32.gmra.mxu0 %v523_v33  ;;  %v2295_v7 = vpop.f32.mrf.mxu1  ;;  %3368 = vmatprep.subr.mxu1 %v6046_v2  ;;  %v1164_v49 = vld [vmem:[%s6041_s1 + $0x898] sm:$0xff] }
 0x2ad   :  { %v5566_v17 = vadd.f32 %v2598_v19, %v2294_v11  ;;  %3211 = vmatprep.mubr.f32.mxu0 %v542_v22  ;;  %3672 = vmatpush2.msra.mxu0 %v1165_v47  ;;  %v576_v11 = vld [vmem:[#allocation2 + $0x1138] sm:$0xff]  ;;  %v1131_v47 = vld [vmem:[%s6041_s1 + $0x790] sm:$0xff] }
 0x2ae   :  { %v2600_v56 = vpop.f32.mrf.mxu0  ;;  %v2298_v6 = vpop.f32.mrf.mxu1  ;;  %2907 = vmatmul.mubr.f32.gmra.mxu1 %v539_v31  ;;  %3673 = vmatprep.subr.mxu0 %v6046_v2  ;;  %v559_v19 = vld [vmem:[#allocation2 + $0x10b0] sm:$0xff] }
 0x2af   :  { %v2299_v33 = vadd.f32 %v2298_v6, %v5177_v16  ;;  %2911 = vmatprep.mubr.f32.mxu1 %v558_v57  ;;  %3369 = vmatpush2.msra.mxu1 %v1132_v29  ;;  %v578_v57 = vld [vmem:[#allocation2 + $0x1148] sm:$0xff]  ;;  %v1163_v29 = vld [vmem:[%s6041_s1 + $0x890] sm:$0xff] }
 0x2b0   :  { %v2603_v46 = vpop.f32.mrf.mxu0  ;;  %3212 = vmatmul.mubr.f32.gmra.mxu0 %v541_v58  ;;  %v2300_v22 = vpop.f32.mrf.mxu1  ;;  %3370 = vmatprep.subr.mxu1 %v6046_v2  ;;  %v575_v56 = vld [vmem:[#allocation2 + $0x1130] sm:$0xff] }
 0x2b1   :  { %v5577_v31 = vadd.f32 %v2603_v46, %v2299_v33  ;;  %3216 = vmatprep.mubr.f32.mxu0 %v560_v42  ;;  %3674 = vmatpush2.msra.mxu0 %v1164_v49  ;;  %v594_v33 = vld [vmem:[#allocation2 + $0x11c8] sm:$0xff]  ;;  %v577_v46 = vld [vmem:[#allocation2 + $0x1140] sm:$0xff] }
 0x2b2   :  { %v2605_v7 = vpop.f32.mrf.mxu0  ;;  %v2303_v16 = vpop.f32.mrf.mxu1  ;;  %2912 = vmatmul.mubr.f32.gmra.mxu1 %v557_v43  ;;  %3675 = vmatprep.subr.mxu0 %v6046_v2  ;;  %v1130_v49 = vld [vmem:[%s6041_s1 + $0x788] sm:$0xff] }
 0x2b3   :  { %v2304_v58 = vadd.f32 %v2303_v16, %v5188_v27  ;;  %2916 = vmatprep.mubr.f32.mxu1 %v576_v11  ;;  %3371 = vmatpush2.msra.mxu1 %v1131_v47  ;;  %v596_v11 = vld [vmem:[#allocation2 + $0x11d8] sm:$0xff]  ;;  %v1162_v47 = vld [vmem:[%s6041_s1 + $0x888] sm:$0xff]  ;;  %v593_v16 = vld [vmem:[#allocation2 + $0x11c0] sm:$0xff] }
 0x2b4   :  { %v2608_v6 = vpop.f32.mrf.mxu0  ;;  %3217 = vmatmul.mubr.f32.gmra.mxu0 %v559_v19  ;;  %v2305_v42 = vpop.f32.mrf.mxu1  ;;  %3372 = vmatprep.subr.mxu1 %v6046_v2  ;;  %v6047_v19 = vld [vmem:[#allocation5_spill] sm:$0xff] }
 0x2b5   :  { %v5588_v43 = vadd.f32 %v2608_v6, %v2304_v58  ;;  %3221 = vmatprep.mubr.f32.mxu0 %v578_v57  ;;  %3676 = vmatpush2.msra.mxu0 %v1163_v29  ;;  %v612_v6 = vld [vmem:[#allocation2 + $0x1258] sm:$0xff]  ;;  %v1129_v29 = vld [vmem:[%s6041_s1 + $0x780] sm:$0xff]  ;;  %v595_v42 = vld [vmem:[#allocation2 + $0x11d0] sm:$0xff] }
 0x2b6   :  { %v2610_v22 = vpop.f32.mrf.mxu0  ;;  %v2308_v27 = vpop.f32.mrf.mxu1  ;;  %2917 = vmatmul.mubr.f32.gmra.mxu1 %v575_v56  ;;  %3677 = vmatprep.subr.mxu0 %v6046_v2 }
 0x2b7   :  { %v2309_v7 = vadd.f32 %v2308_v27, %v6047_v19  ;;  %2921 = vmatprep.mubr.f32.mxu1 %v594_v33  ;;  %3373 = vmatpush2.msra.mxu1 %v1130_v49  ;;  %v614_v33 = vld [vmem:[#allocation2 + $0x1268] sm:$0xff]  ;;  %v1161_v49 = vld [vmem:[%s6041_s1 + $0x880] sm:$0xff]  ;;  %v611_v19 = vld [vmem:[#allocation2 + $0x1250] sm:$0xff] }
 0x2b8   :  { %v2613_v58 = vpop.f32.mrf.mxu0  ;;  %3222 = vmatmul.mubr.f32.gmra.mxu0 %v577_v46  ;;  %v2310_v57 = vpop.f32.mrf.mxu1  ;;  %3374 = vmatprep.subr.mxu1 %v6046_v2 }
 0x2b9   :  { %v5599_v56 = vadd.f32 %v2613_v58, %v2309_v7  ;;  %3226 = vmatprep.mubr.f32.mxu0 %v596_v11  ;;  %3678 = vmatpush2.msra.mxu0 %v1162_v47  ;;  %v630_v58 = vld [vmem:[#allocation2 + $0x12e8] sm:$0xff] }
 0x2ba   :  { %v2615_v22 = vpop.f32.mrf.mxu0  ;;  %v2313_v27 = vpop.f32.mrf.mxu1  ;;  %2922 = vmatmul.mubr.f32.gmra.mxu1 %v593_v16  ;;  %3679 = vmatprep.subr.mxu0 %v6046_v2  ;;  %v613_v16 = vld [vmem:[#allocation2 + $0x1260] sm:$0xff] }
 0x2bb   :  { %6048 = vst [vmem:[#allocation5_spill] sm:$0xff] %v5599_v56  ;;  %v2314_v46 = vadd.f32 %v2313_v27, %v5207_v28  ;;  %2926 = vmatprep.mubr.f32.mxu1 %v612_v6  ;;  %3375 = vmatpush2.msra.mxu1 %v1129_v29  ;;  %v632_v22 = vld [vmem:[#allocation2 + $0x12f8] sm:$0xff]  ;;  %v629_v28 = vld [vmem:[#allocation2 + $0x12e0] sm:$0xff] }
 0x2bc   :  { %v2618_v7 = vpop.f32.mrf.mxu0  ;;  %3227 = vmatmul.mubr.f32.gmra.mxu0 %v595_v42  ;;  %v2315_v11 = vpop.f32.mrf.mxu1  ;;  %v648_v27 = vld [vmem:[#allocation2 + $0x1378] sm:$0xff] }
 0x2bd   :  { %v5606_v47 = vadd.f32 %v2618_v7, %v2314_v46  ;;  %3231 = vmatprep.mubr.f32.mxu0 %v614_v33  ;;  %3680 = vmatpush2.msra.mxu0 %v1161_v49  ;;  %v631_v46 = vld [vmem:[#allocation2 + $0x12f0] sm:$0xff]  ;;  %v650_v49 = vld [vmem:[#allocation2 + $0x1388] sm:$0xff] }
 0x2be   :  { %v2620_v57 = vpop.f32.mrf.mxu0  ;;  %v2318_v2 = vpop.f32.mrf.mxu1  ;;  %2927 = vmatmul.mubr.f32.gmra.mxu1 %v611_v19  ;;  %v647_v19 = vld [vmem:[#allocation2 + $0x1370] sm:$0xff] }
 0x2bf   :  { %v2319_v56 = vadd.f32 %v2318_v2, %v5211_v55  ;;  %2931 = vmatprep.mubr.f32.mxu1 %v630_v58  ;;  %v666_v58 = vld [vmem:[#allocation2 + $0x1408] sm:$0xff] }
 0x2c0   :  { %v2623_v6 = vpop.f32.mrf.mxu0  ;;  %3232 = vmatmul.mubr.f32.gmra.mxu0 %v613_v16  ;;  %v2320_v29 = vpop.f32.mrf.mxu1  ;;  %v649_v16 = vld [vmem:[#allocation2 + $0x1380] sm:$0xff] }
 0x2c1   :  { %v5609_v42 = vadd.f32 %v2623_v6, %v2319_v56  ;;  %3236 = vmatprep.mubr.f32.mxu0 %v632_v22  ;;  %v668_v22 = vld [vmem:[#allocation2 + $0x1418] sm:$0xff] }
 0x2c2   :  { %v2625_v7 = vpop.f32.mrf.mxu0  ;;  %v2323_v33 = vpop.f32.mrf.mxu1  ;;  %2932 = vmatmul.mubr.f32.gmra.mxu1 %v629_v28  ;;  %v665_v28 = vld [vmem:[#allocation2 + $0x1400] sm:$0xff] }
 0x2c3   :  { %v2324_v11 = vadd.f32 %v2323_v33, %v5214_v62  ;;  %2936 = vmatprep.mubr.f32.mxu1 %v648_v27  ;;  %v684_v27 = vld [vmem:[#allocation2 + $0x1498] sm:$0xff] }
 0x2c4   :  { %v2628_v57 = vpop.f32.mrf.mxu0  ;;  %3237 = vmatmul.mubr.f32.gmra.mxu0 %v631_v46  ;;  %v2325_v55 = vpop.f32.mrf.mxu1  ;;  %v667_v46 = vld [vmem:[#allocation2 + $0x1410] sm:$0xff] }
 0x2c5   :  { %v5612_v2 = vadd.f32 %v2628_v57, %v2324_v11  ;;  %3241 = vmatprep.mubr.f32.mxu0 %v650_v49  ;;  %v686_v49 = vld [vmem:[#allocation2 + $0x14a8] sm:$0xff] }
 0x2c6   :  { %v2630_v56 = vpop.f32.mrf.mxu0  ;;  %v2328_v6 = vpop.f32.mrf.mxu1  ;;  %2937 = vmatmul.mubr.f32.gmra.mxu1 %v647_v19  ;;  %v683_v19 = vld [vmem:[#allocation2 + $0x1490] sm:$0xff] }
 0x2c7   :  { %v2329_v29 = vadd.f32 %v2328_v6, %v5217_v61  ;;  %2941 = vmatprep.mubr.f32.mxu1 %v666_v58  ;;  %v702_v58 = vld [vmem:[#allocation2 + $0x1528] sm:$0xff] }
 0x2c8   :  { %v2633_v7 = vpop.f32.mrf.mxu0  ;;  %3242 = vmatmul.mubr.f32.gmra.mxu0 %v649_v16  ;;  %v2330_v62 = vpop.f32.mrf.mxu1  ;;  %v685_v16 = vld [vmem:[#allocation2 + $0x14a0] sm:$0xff] }
 0x2c9   :  { %v5615_v33 = vadd.f32 %v2633_v7, %v2329_v29  ;;  %3246 = vmatprep.mubr.f32.mxu0 %v668_v22  ;;  %v704_v22 = vld [vmem:[#allocation2 + $0x1538] sm:$0xff] }
 0x2ca   :  { %v2635_v11 = vpop.f32.mrf.mxu0  ;;  %v2333_v57 = vpop.f32.mrf.mxu1  ;;  %2942 = vmatmul.mubr.f32.gmra.mxu1 %v665_v28  ;;  %v701_v28 = vld [vmem:[#allocation2 + $0x1520] sm:$0xff] }
 0x2cb   :  { %v2334_v55 = vadd.f32 %v2333_v57, %v5220_v45  ;;  %2946 = vmatprep.mubr.f32.mxu1 %v684_v27  ;;  %v720_v27 = vld [vmem:[#allocation2 + $0x15b8] sm:$0xff] }
 0x2cc   :  { %v2638_v56 = vpop.f32.mrf.mxu0  ;;  %3247 = vmatmul.mubr.f32.gmra.mxu0 %v667_v46  ;;  %v2335_v61 = vpop.f32.mrf.mxu1  ;;  %v703_v46 = vld [vmem:[#allocation2 + $0x1530] sm:$0xff] }
 0x2cd   :  { %v5618_v6 = vadd.f32 %v2638_v56, %v2334_v55  ;;  %3251 = vmatprep.mubr.f32.mxu0 %v686_v49  ;;  %v722_v49 = vld [vmem:[#allocation2 + $0x15c8] sm:$0xff] }
 0x2ce   :  { %v2640_v29 = vpop.f32.mrf.mxu0  ;;  %v2338_v7 = vpop.f32.mrf.mxu1  ;;  %2947 = vmatmul.mubr.f32.gmra.mxu1 %v683_v19  ;;  %v719_v19 = vld [vmem:[#allocation2 + $0x15b0] sm:$0xff] }
 0x2cf   :  { %v2339_v62 = vadd.f32 %v2338_v7, %v5223_v60  ;;  %2951 = vmatprep.mubr.f32.mxu1 %v702_v58  ;;  %v738_v58 = vld [vmem:[#allocation2 + $0x1648] sm:$0xff] }
 0x2d0   :  { %v2643_v11 = vpop.f32.mrf.mxu0  ;;  %3252 = vmatmul.mubr.f32.gmra.mxu0 %v685_v16  ;;  %v2340_v45 = vpop.f32.mrf.mxu1  ;;  %v721_v16 = vld [vmem:[#allocation2 + $0x15c0] sm:$0xff] }
 0x2d1   :  { %v5621_v57 = vadd.f32 %v2643_v11, %v2339_v62  ;;  %3256 = vmatprep.mubr.f32.mxu0 %v704_v22  ;;  %v740_v22 = vld [vmem:[#allocation2 + $0x1658] sm:$0xff] }
 0x2d2   :  { %v2645_v55 = vpop.f32.mrf.mxu0  ;;  %v2343_v56 = vpop.f32.mrf.mxu1  ;;  %2952 = vmatmul.mubr.f32.gmra.mxu1 %v701_v28  ;;  %v737_v28 = vld [vmem:[#allocation2 + $0x1640] sm:$0xff] }
 0x2d3   :  { %v2344_v61 = vadd.f32 %v2343_v56, %v5226_v21  ;;  %2956 = vmatprep.mubr.f32.mxu1 %v720_v27  ;;  %v756_v27 = vld [vmem:[#allocation2 + $0x16d8] sm:$0xff] }
 0x2d4   :  { %v2648_v29 = vpop.f32.mrf.mxu0  ;;  %3257 = vmatmul.mubr.f32.gmra.mxu0 %v703_v46  ;;  %v2345_v60 = vpop.f32.mrf.mxu1  ;;  %v739_v46 = vld [vmem:[#allocation2 + $0x1650] sm:$0xff] }
 0x2d5   :  { %v5624_v7 = vadd.f32 %v2648_v29, %v2344_v61  ;;  %3261 = vmatprep.mubr.f32.mxu0 %v722_v49  ;;  %v758_v49 = vld [vmem:[#allocation2 + $0x16e8] sm:$0xff] }
 0x2d6   :  { %v2650_v62 = vpop.f32.mrf.mxu0  ;;  %v2348_v11 = vpop.f32.mrf.mxu1  ;;  %2957 = vmatmul.mubr.f32.gmra.mxu1 %v719_v19  ;;  %v755_v19 = vld [vmem:[#allocation2 + $0x16d0] sm:$0xff] }
 0x2d7   :  { %v2349_v45 = vadd.f32 %v2348_v11, %v5229_v23  ;;  %2961 = vmatprep.mubr.f32.mxu1 %v738_v58  ;;  %v774_v58 = vld [vmem:[#allocation2 + $0x1768] sm:$0xff] }
 0x2d8   :  { %v2653_v55 = vpop.f32.mrf.mxu0  ;;  %3262 = vmatmul.mubr.f32.gmra.mxu0 %v721_v16  ;;  %v2350_v21 = vpop.f32.mrf.mxu1  ;;  %v757_v16 = vld [vmem:[#allocation2 + $0x16e0] sm:$0xff] }
 0x2d9   :  { %v5627_v56 = vadd.f32 %v2653_v55, %v2349_v45  ;;  %3266 = vmatprep.mubr.f32.mxu0 %v740_v22  ;;  %v776_v22 = vld [vmem:[#allocation2 + $0x1778] sm:$0xff] }
 0x2da   :  { %v2655_v61 = vpop.f32.mrf.mxu0  ;;  %v2353_v29 = vpop.f32.mrf.mxu1  ;;  %2962 = vmatmul.mubr.f32.gmra.mxu1 %v737_v28  ;;  %v773_v28 = vld [vmem:[#allocation2 + $0x1760] sm:$0xff] }
 0x2db   :  { %v2354_v60 = vadd.f32 %v2353_v29, %v5232_v0  ;;  %2966 = vmatprep.mubr.f32.mxu1 %v756_v27  ;;  %v792_v27 = vld [vmem:[#allocation2 + $0x17f8] sm:$0xff] }
 0x2dc   :  { %v2658_v62 = vpop.f32.mrf.mxu0  ;;  %3267 = vmatmul.mubr.f32.gmra.mxu0 %v739_v46  ;;  %v2355_v23 = vpop.f32.mrf.mxu1  ;;  %v775_v46 = vld [vmem:[#allocation2 + $0x1770] sm:$0xff] }
 0x2dd   :  { %v5630_v11 = vadd.f32 %v2658_v62, %v2354_v60  ;;  %3271 = vmatprep.mubr.f32.mxu0 %v758_v49  ;;  %v794_v49 = vld [vmem:[#allocation2 + $0x1808] sm:$0xff] }
 0x2de   :  { %v2660_v45 = vpop.f32.mrf.mxu0  ;;  %v2358_v55 = vpop.f32.mrf.mxu1  ;;  %2967 = vmatmul.mubr.f32.gmra.mxu1 %v755_v19  ;;  %v791_v19 = vld [vmem:[#allocation2 + $0x17f0] sm:$0xff] }
 0x2df   :  { %v2359_v21 = vadd.f32 %v2358_v55, %v5235_v24  ;;  %2971 = vmatprep.mubr.f32.mxu1 %v774_v58  ;;  %v810_v58 = vld [vmem:[#allocation2 + $0x1888] sm:$0xff] }
 0x2e0   :  { %v2663_v61 = vpop.f32.mrf.mxu0  ;;  %3272 = vmatmul.mubr.f32.gmra.mxu0 %v757_v16  ;;  %v2360_v0 = vpop.f32.mrf.mxu1  ;;  %v793_v16 = vld [vmem:[#allocation2 + $0x1800] sm:$0xff] }
 0x2e1   :  { %v5633_v29 = vadd.f32 %v2663_v61, %v2359_v21  ;;  %3276 = vmatprep.mubr.f32.mxu0 %v776_v22  ;;  %v812_v22 = vld [vmem:[#allocation2 + $0x1898] sm:$0xff] }
 0x2e2   :  { %v2665_v60 = vpop.f32.mrf.mxu0  ;;  %v2363_v62 = vpop.f32.mrf.mxu1  ;;  %2972 = vmatmul.mubr.f32.gmra.mxu1 %v773_v28  ;;  %v809_v28 = vld [vmem:[#allocation2 + $0x1880] sm:$0xff] }
 0x2e3   :  { %v2364_v23 = vadd.f32 %v2363_v62, %v5238_v36  ;;  %2976 = vmatprep.mubr.f32.mxu1 %v792_v27  ;;  %v828_v27 = vld [vmem:[#allocation2 + $0x1918] sm:$0xff] }
 0x2e4   :  { %v2668_v45 = vpop.f32.mrf.mxu0  ;;  %3277 = vmatmul.mubr.f32.gmra.mxu0 %v775_v46  ;;  %v2365_v24 = vpop.f32.mrf.mxu1  ;;  %v811_v46 = vld [vmem:[#allocation2 + $0x1890] sm:$0xff] }
 0x2e5   :  { %v5636_v55 = vadd.f32 %v2668_v45, %v2364_v23  ;;  %3281 = vmatprep.mubr.f32.mxu0 %v794_v49  ;;  %v830_v49 = vld [vmem:[#allocation2 + $0x1928] sm:$0xff] }
 0x2e6   :  { %v2670_v21 = vpop.f32.mrf.mxu0  ;;  %v2368_v61 = vpop.f32.mrf.mxu1  ;;  %2977 = vmatmul.mubr.f32.gmra.mxu1 %v791_v19  ;;  %v827_v19 = vld [vmem:[#allocation2 + $0x1910] sm:$0xff] }
 0x2e7   :  { %v2369_v0 = vadd.f32 %v2368_v61, %v5241_v48  ;;  %2981 = vmatprep.mubr.f32.mxu1 %v810_v58  ;;  %v846_v58 = vld [vmem:[#allocation2 + $0x19a8] sm:$0xff] }
 0x2e8   :  { %v2673_v60 = vpop.f32.mrf.mxu0  ;;  %3282 = vmatmul.mubr.f32.gmra.mxu0 %v793_v16  ;;  %v2370_v36 = vpop.f32.mrf.mxu1  ;;  %v829_v16 = vld [vmem:[#allocation2 + $0x1920] sm:$0xff] }
 0x2e9   :  { %v5639_v62 = vadd.f32 %v2673_v60, %v2369_v0  ;;  %3286 = vmatprep.mubr.f32.mxu0 %v812_v22  ;;  %v848_v22 = vld [vmem:[#allocation2 + $0x19b8] sm:$0xff] }
 0x2ea   :  { %v2675_v23 = vpop.f32.mrf.mxu0  ;;  %v2373_v45 = vpop.f32.mrf.mxu1  ;;  %2982 = vmatmul.mubr.f32.gmra.mxu1 %v809_v28  ;;  %v845_v28 = vld [vmem:[#allocation2 + $0x19a0] sm:$0xff] }
 0x2eb   :  { %v2374_v24 = vadd.f32 %v2373_v45, %v5244_v1  ;;  %2986 = vmatprep.mubr.f32.mxu1 %v828_v27  ;;  %v864_v27 = vld [vmem:[#allocation2 + $0x1a38] sm:$0xff] }
 0x2ec   :  { %v2678_v21 = vpop.f32.mrf.mxu0  ;;  %3287 = vmatmul.mubr.f32.gmra.mxu0 %v811_v46  ;;  %v2375_v48 = vpop.f32.mrf.mxu1  ;;  %v847_v46 = vld [vmem:[#allocation2 + $0x19b0] sm:$0xff] }
 0x2ed   :  { %v5642_v61 = vadd.f32 %v2678_v21, %v2374_v24  ;;  %3291 = vmatprep.mubr.f32.mxu0 %v830_v49  ;;  %v866_v49 = vld [vmem:[#allocation2 + $0x1a48] sm:$0xff] }
 0x2ee   :  { %v2680_v0 = vpop.f32.mrf.mxu0  ;;  %v2378_v60 = vpop.f32.mrf.mxu1  ;;  %2987 = vmatmul.mubr.f32.gmra.mxu1 %v827_v19  ;;  %v863_v19 = vld [vmem:[#allocation2 + $0x1a30] sm:$0xff] }
 0x2ef   :  { %v2379_v36 = vadd.f32 %v2378_v60, %v5247_v14  ;;  %2991 = vmatprep.mubr.f32.mxu1 %v846_v58  ;;  %v882_v58 = vld [vmem:[#allocation2 + $0x1ac8] sm:$0xff] }
 0x2f0   :  { %v2683_v23 = vpop.f32.mrf.mxu0  ;;  %3292 = vmatmul.mubr.f32.gmra.mxu0 %v829_v16  ;;  %v2380_v1 = vpop.f32.mrf.mxu1  ;;  %v865_v16 = vld [vmem:[#allocation2 + $0x1a40] sm:$0xff] }
 0x2f1   :  { %v5645_v45 = vadd.f32 %v2683_v23, %v2379_v36  ;;  %3296 = vmatprep.mubr.f32.mxu0 %v848_v22  ;;  %v884_v22 = vld [vmem:[#allocation2 + $0x1ad8] sm:$0xff] }
 0x2f2   :  { %v2685_v24 = vpop.f32.mrf.mxu0  ;;  %v2383_v21 = vpop.f32.mrf.mxu1  ;;  %2992 = vmatmul.mubr.f32.gmra.mxu1 %v845_v28  ;;  %v881_v28 = vld [vmem:[#allocation2 + $0x1ac0] sm:$0xff] }
 0x2f3   :  { %v2384_v48 = vadd.f32 %v2383_v21, %v5250_v26  ;;  %2996 = vmatprep.mubr.f32.mxu1 %v864_v27  ;;  %v40_v27 = vld [vmem:[#allocation2 + $0x78] sm:$0xff] }
 0x2f4   :  { %v2688_v0 = vpop.f32.mrf.mxu0  ;;  %3297 = vmatmul.mubr.f32.gmra.mxu0 %v847_v46  ;;  %v2385_v14 = vpop.f32.mrf.mxu1  ;;  %v883_v46 = vld [vmem:[#allocation2 + $0x1ad0] sm:$0xff] }
 0x2f5   :  { %v5648_v60 = vadd.f32 %v2688_v0, %v2384_v48  ;;  %3301 = vmatprep.mubr.f32.mxu0 %v866_v49  ;;  %v42_v49 = vld [vmem:[#allocation2 + $0x88] sm:$0xff] }
 0x2f6   :  { %v2690_v36 = vpop.f32.mrf.mxu0  ;;  %v2388_v23 = vpop.f32.mrf.mxu1  ;;  %2997 = vmatmul.mubr.f32.gmra.mxu1 %v863_v19  ;;  %v39_v19 = vld [vmem:[#allocation2 + $0x70] sm:$0xff] }
 0x2f7   :  { %v2389_v1 = vadd.f32 %v2388_v23, %v5253_v39  ;;  %3001 = vmatprep.mubr.f32.mxu1 %v882_v58  ;;  %v58_v58 = vld [vmem:[#allocation2 + $0x108] sm:$0xff] }
 0x2f8   :  { %v2693_v24 = vpop.f32.mrf.mxu0  ;;  %3302 = vmatmul.mubr.f32.gmra.mxu0 %v865_v16  ;;  %v2390_v26 = vpop.f32.mrf.mxu1  ;;  %v41_v16 = vld [vmem:[#allocation2 + $0x80] sm:$0xff] }
 0x2f9   :  { %v5651_v21 = vadd.f32 %v2693_v24, %v2389_v1  ;;  %3306 = vmatprep.mubr.f32.mxu0 %v884_v22  ;;  %v60_v22 = vld [vmem:[#allocation2 + $0x118] sm:$0xff] }
 0x2fa   :  { %v2695_v48 = vpop.f32.mrf.mxu0  ;;  %v2393_v0 = vpop.f32.mrf.mxu1  ;;  %3002 = vmatmul.mubr.f32.gmra.mxu1 %v881_v28  ;;  %v57_v28 = vld [vmem:[#allocation2 + $0x100] sm:$0xff] }
 0x2fb   :  { %v2394_v14 = vadd.f32 %v2393_v0, %v5259_v53  ;;  %3376 = vmatprep.mubr.f32.mxu1 %v40_v27  ;;  %v76_v27 = vld [vmem:[#allocation2 + $0x198] sm:$0xff] }
 0x2fc   :  { %v2698_v36 = vpop.f32.mrf.mxu0  ;;  %3307 = vmatmul.mubr.f32.gmra.mxu0 %v883_v46  ;;  %v2395_v39 = vpop.f32.mrf.mxu1  ;;  %v59_v46 = vld [vmem:[#allocation2 + $0x110] sm:$0xff] }
 0x2fd   :  { %v5654_v23 = vadd.f32 %v2698_v36, %v2394_v14  ;;  %3681 = vmatprep.mubr.f32.mxu0 %v42_v49  ;;  %v78_v49 = vld [vmem:[#allocation2 + $0x1a8] sm:$0xff] }
 0x2fe   :  { %v2700_v1 = vpop.f32.mrf.mxu0  ;;  %v2768_v24 = vpop.f32.mrf.mxu1  ;;  %3377 = vmatmul.mubr.f32.vlgmr.msra.gmra.mxu1 %v39_v19  ;;  %v75_v19 = vld [vmem:[#allocation2 + $0x190] sm:$0xff] }
 0x2ff   :  { %v2769_v26 = vadd.f32 %v2768_v24, %v5269_v4  ;;  %3381 = vmatprep.mubr.f32.mxu1 %v58_v58  ;;  %v94_v58 = vld [vmem:[#allocation2 + $0x228] sm:$0xff] }
 0x300   :  { %v3073_v48 = vpop.f32.mrf.mxu0  ;;  %3682 = vmatmul.mubr.f32.vlgmr.msra.gmra.mxu0 %v41_v16  ;;  %v2770_v53 = vpop.f32.mrf.mxu1  ;;  %v77_v16 = vld [vmem:[#allocation2 + $0x1a0] sm:$0xff] }
 0x301   :  { %v5657_v0 = vadd.f32 %v3073_v48, %v2769_v26  ;;  %3686 = vmatprep.mubr.f32.mxu0 %v60_v22  ;;  %v96_v22 = vld [vmem:[#allocation2 + $0x238] sm:$0xff] }
 0x302   :  { %v3075_v14 = vpop.f32.mrf.mxu0  ;;  %v2773_v36 = vpop.f32.mrf.mxu1  ;;  %3382 = vmatmul.mubr.f32.gmra.mxu1 %v57_v28  ;;  %v93_v28 = vld [vmem:[#allocation2 + $0x220] sm:$0xff] }
 0x303   :  { %v2774_v39 = vadd.f32 %v2773_v36, %v5280_v9  ;;  %3386 = vmatprep.mubr.f32.mxu1 %v76_v27  ;;  %v112_v27 = vld [vmem:[#allocation2 + $0x2b8] sm:$0xff] }
 0x304   :  { %v3078_v1 = vpop.f32.mrf.mxu0  ;;  %3687 = vmatmul.mubr.f32.gmra.mxu0 %v59_v46  ;;  %v2775_v4 = vpop.f32.mrf.mxu1  ;;  %v95_v46 = vld [vmem:[#allocation2 + $0x230] sm:$0xff] }
 0x305   :  { %v5660_v24 = vadd.f32 %v3078_v1, %v2774_v39  ;;  %3691 = vmatprep.mubr.f32.mxu0 %v78_v49  ;;  %v114_v49 = vld [vmem:[#allocation2 + $0x2c8] sm:$0xff] }
 0x306   :  { %v3080_v26 = vpop.f32.mrf.mxu0  ;;  %v2778_v48 = vpop.f32.mrf.mxu1  ;;  %3387 = vmatmul.mubr.f32.gmra.mxu1 %v75_v19  ;;  %v111_v19 = vld [vmem:[#allocation2 + $0x2b0] sm:$0xff] }
 0x307   :  { %v2779_v53 = vadd.f32 %v2778_v48, %v5291_v5  ;;  %3391 = vmatprep.mubr.f32.mxu1 %v94_v58  ;;  %v130_v58 = vld [vmem:[#allocation2 + $0x348] sm:$0xff] }
 0x308   :  { %v3083_v14 = vpop.f32.mrf.mxu0  ;;  %3692 = vmatmul.mubr.f32.gmra.mxu0 %v77_v16  ;;  %v2780_v9 = vpop.f32.mrf.mxu1  ;;  %v113_v16 = vld [vmem:[#allocation2 + $0x2c0] sm:$0xff] }
 0x309   :  { %v5663_v36 = vadd.f32 %v3083_v14, %v2779_v53  ;;  %3696 = vmatprep.mubr.f32.mxu0 %v96_v22  ;;  %v132_v22 = vld [vmem:[#allocation2 + $0x358] sm:$0xff] }
 0x30a   :  { %v3085_v39 = vpop.f32.mrf.mxu0  ;;  %v2783_v1 = vpop.f32.mrf.mxu1  ;;  %3392 = vmatmul.mubr.f32.gmra.mxu1 %v93_v28  ;;  %v129_v28 = vld [vmem:[#allocation2 + $0x340] sm:$0xff] }
 0x30b   :  { %v2784_v4 = vadd.f32 %v2783_v1, %v5302_v12  ;;  %3396 = vmatprep.mubr.f32.mxu1 %v112_v27  ;;  %v148_v27 = vld [vmem:[#allocation2 + $0x3d8] sm:$0xff] }
 0x30c   :  { %v3088_v26 = vpop.f32.mrf.mxu0  ;;  %3697 = vmatmul.mubr.f32.gmra.mxu0 %v95_v46  ;;  %v2785_v5 = vpop.f32.mrf.mxu1  ;;  %v131_v46 = vld [vmem:[#allocation2 + $0x350] sm:$0xff] }
 0x30d   :  { %v5666_v48 = vadd.f32 %v3088_v26, %v2784_v4  ;;  %3701 = vmatprep.mubr.f32.mxu0 %v114_v49  ;;  %v150_v49 = vld [vmem:[#allocation2 + $0x3e8] sm:$0xff] }
 0x30e   :  { %v3090_v53 = vpop.f32.mrf.mxu0  ;;  %v2788_v14 = vpop.f32.mrf.mxu1  ;;  %3397 = vmatmul.mubr.f32.gmra.mxu1 %v111_v19  ;;  %v147_v19 = vld [vmem:[#allocation2 + $0x3d0] sm:$0xff] }
 0x30f   :  { %v2789_v9 = vadd.f32 %v2788_v14, %v5313_v50  ;;  %3401 = vmatprep.mubr.f32.mxu1 %v130_v58  ;;  %v166_v58 = vld [vmem:[#allocation2 + $0x468] sm:$0xff] }
 0x310   :  { %v3093_v39 = vpop.f32.mrf.mxu0  ;;  %3702 = vmatmul.mubr.f32.gmra.mxu0 %v113_v16  ;;  %v2790_v12 = vpop.f32.mrf.mxu1  ;;  %v149_v16 = vld [vmem:[#allocation2 + $0x3e0] sm:$0xff] }
 0x311   :  { %v5669_v1 = vadd.f32 %v3093_v39, %v2789_v9  ;;  %3706 = vmatprep.mubr.f32.mxu0 %v132_v22  ;;  %v168_v22 = vld [vmem:[#allocation2 + $0x478] sm:$0xff] }
 0x312   :  { %v3095_v4 = vpop.f32.mrf.mxu0  ;;  %v2793_v26 = vpop.f32.mrf.mxu1  ;;  %3402 = vmatmul.mubr.f32.gmra.mxu1 %v129_v28  ;;  %v165_v28 = vld [vmem:[#allocation2 + $0x460] sm:$0xff] }
 0x313   :  { %v2794_v5 = vadd.f32 %v2793_v26, %v5324_v44  ;;  %3406 = vmatprep.mubr.f32.mxu1 %v148_v27  ;;  %v184_v27 = vld [vmem:[#allocation2 + $0x4f8] sm:$0xff] }
 0x314   :  { %v3098_v53 = vpop.f32.mrf.mxu0  ;;  %3707 = vmatmul.mubr.f32.gmra.mxu0 %v131_v46  ;;  %v2795_v50 = vpop.f32.mrf.mxu1  ;;  %v167_v46 = vld [vmem:[#allocation2 + $0x470] sm:$0xff] }
 0x315   :  { %v5672_v14 = vadd.f32 %v3098_v53, %v2794_v5  ;;  %3711 = vmatprep.mubr.f32.mxu0 %v150_v49  ;;  %v186_v49 = vld [vmem:[#allocation2 + $0x508] sm:$0xff] }
 0x316   :  { %v3100_v9 = vpop.f32.mrf.mxu0  ;;  %v2798_v39 = vpop.f32.mrf.mxu1  ;;  %3407 = vmatmul.mubr.f32.gmra.mxu1 %v147_v19  ;;  %v183_v19 = vld [vmem:[#allocation2 + $0x4f0] sm:$0xff] }
 0x317   :  { %v2799_v12 = vadd.f32 %v2798_v39, %v5335_v59  ;;  %3411 = vmatprep.mubr.f32.mxu1 %v166_v58  ;;  %v202_v58 = vld [vmem:[#allocation2 + $0x588] sm:$0xff] }
 0x318   :  { %v3103_v4 = vpop.f32.mrf.mxu0  ;;  %3712 = vmatmul.mubr.f32.gmra.mxu0 %v149_v16  ;;  %v2800_v44 = vpop.f32.mrf.mxu1  ;;  %v185_v16 = vld [vmem:[#allocation2 + $0x500] sm:$0xff] }
 0x319   :  { %v5675_v26 = vadd.f32 %v3103_v4, %v2799_v12  ;;  %3716 = vmatprep.mubr.f32.mxu0 %v168_v22  ;;  %v204_v22 = vld [vmem:[#allocation2 + $0x598] sm:$0xff] }
 0x31a   :  { %v3105_v5 = vpop.f32.mrf.mxu0  ;;  %v2803_v53 = vpop.f32.mrf.mxu1  ;;  %3412 = vmatmul.mubr.f32.gmra.mxu1 %v165_v28  ;;  %v201_v28 = vld [vmem:[#allocation2 + $0x580] sm:$0xff] }
 0x31b   :  { %v2804_v50 = vadd.f32 %v2803_v53, %v5346_v38  ;;  %3416 = vmatprep.mubr.f32.mxu1 %v184_v27  ;;  %v220_v27 = vld [vmem:[#allocation2 + $0x618] sm:$0xff] }
 0x31c   :  { %v3108_v9 = vpop.f32.mrf.mxu0  ;;  %3717 = vmatmul.mubr.f32.gmra.mxu0 %v167_v46  ;;  %v2805_v59 = vpop.f32.mrf.mxu1  ;;  %v203_v46 = vld [vmem:[#allocation2 + $0x590] sm:$0xff] }
 0x31d   :  { %v5678_v39 = vadd.f32 %v3108_v9, %v2804_v50  ;;  %3721 = vmatprep.mubr.f32.mxu0 %v186_v49  ;;  %v222_v49 = vld [vmem:[#allocation2 + $0x628] sm:$0xff] }
 0x31e   :  { %v3110_v12 = vpop.f32.mrf.mxu0  ;;  %v2808_v4 = vpop.f32.mrf.mxu1  ;;  %3417 = vmatmul.mubr.f32.gmra.mxu1 %v183_v19  ;;  %v219_v19 = vld [vmem:[#allocation2 + $0x610] sm:$0xff] }
 0x31f   :  { %v2809_v44 = vadd.f32 %v2808_v4, %v5357_v15  ;;  %3421 = vmatprep.mubr.f32.mxu1 %v202_v58  ;;  %v238_v58 = vld [vmem:[#allocation2 + $0x6a8] sm:$0xff] }
 0x320   :  { %v3113_v5 = vpop.f32.mrf.mxu0  ;;  %3722 = vmatmul.mubr.f32.gmra.mxu0 %v185_v16  ;;  %v2810_v38 = vpop.f32.mrf.mxu1  ;;  %v221_v16 = vld [vmem:[#allocation2 + $0x620] sm:$0xff] }
 0x321   :  { %v5681_v53 = vadd.f32 %v3113_v5, %v2809_v44  ;;  %3726 = vmatprep.mubr.f32.mxu0 %v204_v22  ;;  %v240_v22 = vld [vmem:[#allocation2 + $0x6b8] sm:$0xff] }
 0x322   :  { %v3115_v50 = vpop.f32.mrf.mxu0  ;;  %v2813_v9 = vpop.f32.mrf.mxu1  ;;  %3422 = vmatmul.mubr.f32.gmra.mxu1 %v201_v28  ;;  %v237_v28 = vld [vmem:[#allocation2 + $0x6a0] sm:$0xff] }
 0x323   :  { %v2814_v59 = vadd.f32 %v2813_v9, %v5368_v37  ;;  %3426 = vmatprep.mubr.f32.mxu1 %v220_v27  ;;  %v256_v27 = vld [vmem:[#allocation2 + $0x738] sm:$0xff] }
 0x324   :  { %v3118_v12 = vpop.f32.mrf.mxu0  ;;  %3727 = vmatmul.mubr.f32.gmra.mxu0 %v203_v46  ;;  %v2815_v15 = vpop.f32.mrf.mxu1  ;;  %v239_v46 = vld [vmem:[#allocation2 + $0x6b0] sm:$0xff] }
 0x325   :  { %v5684_v4 = vadd.f32 %v3118_v12, %v2814_v59  ;;  %3731 = vmatprep.mubr.f32.mxu0 %v222_v49  ;;  %v258_v49 = vld [vmem:[#allocation2 + $0x748] sm:$0xff] }
 0x326   :  { %v3120_v44 = vpop.f32.mrf.mxu0  ;;  %v2818_v5 = vpop.f32.mrf.mxu1  ;;  %3427 = vmatmul.mubr.f32.gmra.mxu1 %v219_v19  ;;  %v255_v19 = vld [vmem:[#allocation2 + $0x730] sm:$0xff] }
 0x327   :  { %v2819_v38 = vadd.f32 %v2818_v5, %v5379_v34  ;;  %3431 = vmatprep.mubr.f32.mxu1 %v238_v58  ;;  %v274_v58 = vld [vmem:[#allocation2 + $0x7c8] sm:$0xff] }
 0x328   :  { %v3123_v50 = vpop.f32.mrf.mxu0  ;;  %3732 = vmatmul.mubr.f32.gmra.mxu0 %v221_v16  ;;  %v2820_v37 = vpop.f32.mrf.mxu1  ;;  %v257_v16 = vld [vmem:[#allocation2 + $0x740] sm:$0xff] }
 0x329   :  { %v5687_v9 = vadd.f32 %v3123_v50, %v2819_v38  ;;  %3736 = vmatprep.mubr.f32.mxu0 %v240_v22  ;;  %v276_v22 = vld [vmem:[#allocation2 + $0x7d8] sm:$0xff] }
 0x32a   :  { %v3125_v59 = vpop.f32.mrf.mxu0  ;;  %v2823_v12 = vpop.f32.mrf.mxu1  ;;  %3432 = vmatmul.mubr.f32.gmra.mxu1 %v237_v28  ;;  %v273_v28 = vld [vmem:[#allocation2 + $0x7c0] sm:$0xff] }
 0x32b   :  { %v2824_v15 = vadd.f32 %v2823_v12, %v5390_v35  ;;  %3436 = vmatprep.mubr.f32.mxu1 %v256_v27  ;;  %v292_v27 = vld [vmem:[#allocation2 + $0x858] sm:$0xff] }
 0x32c   :  { %v3128_v44 = vpop.f32.mrf.mxu0  ;;  %3737 = vmatmul.mubr.f32.gmra.mxu0 %v239_v46  ;;  %v2825_v34 = vpop.f32.mrf.mxu1  ;;  %v275_v46 = vld [vmem:[#allocation2 + $0x7d0] sm:$0xff] }
 0x32d   :  { %v5690_v5 = vadd.f32 %v3128_v44, %v2824_v15  ;;  %3741 = vmatprep.mubr.f32.mxu0 %v258_v49  ;;  %v294_v49 = vld [vmem:[#allocation2 + $0x868] sm:$0xff] }
 0x32e   :  { %v3130_v38 = vpop.f32.mrf.mxu0  ;;  %v2828_v50 = vpop.f32.mrf.mxu1  ;;  %3437 = vmatmul.mubr.f32.gmra.mxu1 %v255_v19  ;;  %v291_v19 = vld [vmem:[#allocation2 + $0x850] sm:$0xff] }
 0x32f   :  { %v2829_v37 = vadd.f32 %v2828_v50, %v5401_v20  ;;  %3441 = vmatprep.mubr.f32.mxu1 %v274_v58  ;;  %v310_v58 = vld [vmem:[#allocation2 + $0x8e8] sm:$0xff] }
 0x330   :  { %v3133_v59 = vpop.f32.mrf.mxu0  ;;  %3742 = vmatmul.mubr.f32.gmra.mxu0 %v257_v16  ;;  %v2830_v35 = vpop.f32.mrf.mxu1  ;;  %v293_v16 = vld [vmem:[#allocation2 + $0x860] sm:$0xff] }
 0x331   :  { %v5693_v12 = vadd.f32 %v3133_v59, %v2829_v37  ;;  %3746 = vmatprep.mubr.f32.mxu0 %v276_v22  ;;  %v312_v22 = vld [vmem:[#allocation2 + $0x8f8] sm:$0xff] }
 0x332   :  { %v3135_v15 = vpop.f32.mrf.mxu0  ;;  %v2833_v44 = vpop.f32.mrf.mxu1  ;;  %3442 = vmatmul.mubr.f32.gmra.mxu1 %v273_v28  ;;  %v309_v28 = vld [vmem:[#allocation2 + $0x8e0] sm:$0xff] }
 0x333   :  { %v2834_v34 = vadd.f32 %v2833_v44, %v5412_v52  ;;  %3446 = vmatprep.mubr.f32.mxu1 %v292_v27  ;;  %v328_v27 = vld [vmem:[#allocation2 + $0x978] sm:$0xff] }
 0x334   :  { %v3138_v38 = vpop.f32.mrf.mxu0  ;;  %3747 = vmatmul.mubr.f32.gmra.mxu0 %v275_v46  ;;  %v2835_v20 = vpop.f32.mrf.mxu1  ;;  %v311_v46 = vld [vmem:[#allocation2 + $0x8f0] sm:$0xff] }
 0x335   :  { %v5696_v50 = vadd.f32 %v3138_v38, %v2834_v34  ;;  %3751 = vmatprep.mubr.f32.mxu0 %v294_v49  ;;  %v330_v49 = vld [vmem:[#allocation2 + $0x988] sm:$0xff] }
 0x336   :  { %v3140_v37 = vpop.f32.mrf.mxu0  ;;  %v2838_v59 = vpop.f32.mrf.mxu1  ;;  %3447 = vmatmul.mubr.f32.gmra.mxu1 %v291_v19  ;;  %v327_v19 = vld [vmem:[#allocation2 + $0x970] sm:$0xff] }
 0x337   :  { %v2839_v35 = vadd.f32 %v2838_v59, %v5423_v32  ;;  %3451 = vmatprep.mubr.f32.mxu1 %v310_v58  ;;  %v346_v58 = vld [vmem:[#allocation2 + $0xa08] sm:$0xff] }
 0x338   :  { %v3143_v15 = vpop.f32.mrf.mxu0  ;;  %3752 = vmatmul.mubr.f32.gmra.mxu0 %v293_v16  ;;  %v2840_v52 = vpop.f32.mrf.mxu1  ;;  %v329_v16 = vld [vmem:[#allocation2 + $0x980] sm:$0xff] }
 0x339   :  { %v5699_v44 = vadd.f32 %v3143_v15, %v2839_v35  ;;  %3756 = vmatprep.mubr.f32.mxu0 %v312_v22  ;;  %v348_v22 = vld [vmem:[#allocation2 + $0xa18] sm:$0xff] }
 0x33a   :  { %v3145_v34 = vpop.f32.mrf.mxu0  ;;  %v2843_v38 = vpop.f32.mrf.mxu1  ;;  %3452 = vmatmul.mubr.f32.gmra.mxu1 %v309_v28  ;;  %v345_v28 = vld [vmem:[#allocation2 + $0xa00] sm:$0xff] }
 0x33b   :  { %v2844_v20 = vadd.f32 %v2843_v38, %v5434_v10  ;;  %3456 = vmatprep.mubr.f32.mxu1 %v328_v27  ;;  %v364_v27 = vld [vmem:[#allocation2 + $0xa98] sm:$0xff] }
 0x33c   :  { %v3148_v37 = vpop.f32.mrf.mxu0  ;;  %3757 = vmatmul.mubr.f32.gmra.mxu0 %v311_v46  ;;  %v2845_v32 = vpop.f32.mrf.mxu1  ;;  %v347_v46 = vld [vmem:[#allocation2 + $0xa10] sm:$0xff] }
 0x33d   :  { %v5702_v59 = vadd.f32 %v3148_v37, %v2844_v20  ;;  %3761 = vmatprep.mubr.f32.mxu0 %v330_v49  ;;  %v366_v49 = vld [vmem:[#allocation2 + $0xaa8] sm:$0xff] }
 0x33e   :  { %v3150_v35 = vpop.f32.mrf.mxu0  ;;  %v2848_v15 = vpop.f32.mrf.mxu1  ;;  %3457 = vmatmul.mubr.f32.gmra.mxu1 %v327_v19  ;;  %v363_v19 = vld [vmem:[#allocation2 + $0xa90] sm:$0xff] }
 0x33f   :  { %v2849_v52 = vadd.f32 %v2848_v15, %v5445_v8  ;;  %3461 = vmatprep.mubr.f32.mxu1 %v346_v58  ;;  %v382_v58 = vld [vmem:[#allocation2 + $0xb28] sm:$0xff] }
 0x340   :  { %v3153_v34 = vpop.f32.mrf.mxu0  ;;  %3762 = vmatmul.mubr.f32.gmra.mxu0 %v329_v16  ;;  %v2850_v10 = vpop.f32.mrf.mxu1  ;;  %v365_v16 = vld [vmem:[#allocation2 + $0xaa0] sm:$0xff] }
 0x341   :  { %v5705_v38 = vadd.f32 %v3153_v34, %v2849_v52  ;;  %3766 = vmatprep.mubr.f32.mxu0 %v348_v22  ;;  %v384_v22 = vld [vmem:[#allocation2 + $0xb38] sm:$0xff] }
 0x342   :  { %v3155_v20 = vpop.f32.mrf.mxu0  ;;  %v2853_v37 = vpop.f32.mrf.mxu1  ;;  %3462 = vmatmul.mubr.f32.gmra.mxu1 %v345_v28  ;;  %v381_v28 = vld [vmem:[#allocation2 + $0xb20] sm:$0xff] }
 0x343   :  { %v2854_v32 = vadd.f32 %v2853_v37, %v5456_v18  ;;  %3466 = vmatprep.mubr.f32.mxu1 %v364_v27  ;;  %v400_v27 = vld [vmem:[#allocation2 + $0xbb8] sm:$0xff] }
 0x344   :  { %v3158_v35 = vpop.f32.mrf.mxu0  ;;  %3767 = vmatmul.mubr.f32.gmra.mxu0 %v347_v46  ;;  %v2855_v8 = vpop.f32.mrf.mxu1  ;;  %v383_v46 = vld [vmem:[#allocation2 + $0xb30] sm:$0xff] }
 0x345   :  { %v5708_v15 = vadd.f32 %v3158_v35, %v2854_v32  ;;  %3771 = vmatprep.mubr.f32.mxu0 %v366_v49  ;;  %v402_v49 = vld [vmem:[#allocation2 + $0xbc8] sm:$0xff] }
 0x346   :  { %v3160_v52 = vpop.f32.mrf.mxu0  ;;  %v2858_v34 = vpop.f32.mrf.mxu1  ;;  %3467 = vmatmul.mubr.f32.gmra.mxu1 %v363_v19  ;;  %v399_v19 = vld [vmem:[#allocation2 + $0xbb0] sm:$0xff] }
 0x347   :  { %v2859_v10 = vadd.f32 %v2858_v34, %v5467_v30  ;;  %3471 = vmatprep.mubr.f32.mxu1 %v382_v58  ;;  %v418_v58 = vld [vmem:[#allocation2 + $0xc48] sm:$0xff] }
 0x348   :  { %v3163_v20 = vpop.f32.mrf.mxu0  ;;  %3772 = vmatmul.mubr.f32.gmra.mxu0 %v365_v16  ;;  %v2860_v18 = vpop.f32.mrf.mxu1  ;;  %v401_v16 = vld [vmem:[#allocation2 + $0xbc0] sm:$0xff] }
 0x349   :  { %v5711_v37 = vadd.f32 %v3163_v20, %v2859_v10  ;;  %3776 = vmatprep.mubr.f32.mxu0 %v384_v22  ;;  %v420_v22 = vld [vmem:[#allocation2 + $0xc58] sm:$0xff] }
 0x34a   :  { %v3165_v32 = vpop.f32.mrf.mxu0  ;;  %v2863_v35 = vpop.f32.mrf.mxu1  ;;  %3472 = vmatmul.mubr.f32.gmra.mxu1 %v381_v28  ;;  %v417_v28 = vld [vmem:[#allocation2 + $0xc40] sm:$0xff] }
 0x34b   :  { %v2864_v8 = vadd.f32 %v2863_v35, %v5478_v41  ;;  %3476 = vmatprep.mubr.f32.mxu1 %v400_v27  ;;  %v436_v27 = vld [vmem:[#allocation2 + $0xcd8] sm:$0xff] }
 0x34c   :  { %v3168_v52 = vpop.f32.mrf.mxu0  ;;  %3777 = vmatmul.mubr.f32.gmra.mxu0 %v383_v46  ;;  %v2865_v30 = vpop.f32.mrf.mxu1  ;;  %v419_v46 = vld [vmem:[#allocation2 + $0xc50] sm:$0xff] }
 0x34d   :  { %v5714_v34 = vadd.f32 %v3168_v52, %v2864_v8  ;;  %3781 = vmatprep.mubr.f32.mxu0 %v402_v49  ;;  %v438_v49 = vld [vmem:[#allocation2 + $0xce8] sm:$0xff] }
 0x34e   :  { %v3170_v10 = vpop.f32.mrf.mxu0  ;;  %v2868_v20 = vpop.f32.mrf.mxu1  ;;  %3477 = vmatmul.mubr.f32.gmra.mxu1 %v399_v19  ;;  %v435_v19 = vld [vmem:[#allocation2 + $0xcd0] sm:$0xff] }
 0x34f   :  { %v2869_v18 = vadd.f32 %v2868_v20, %v5489_v51  ;;  %3481 = vmatprep.mubr.f32.mxu1 %v418_v58  ;;  %v454_v58 = vld [vmem:[#allocation2 + $0xd68] sm:$0xff] }
 0x350   :  { %v3173_v32 = vpop.f32.mrf.mxu0  ;;  %3782 = vmatmul.mubr.f32.gmra.mxu0 %v401_v16  ;;  %v2870_v41 = vpop.f32.mrf.mxu1  ;;  %v437_v16 = vld [vmem:[#allocation2 + $0xce0] sm:$0xff] }
 0x351   :  { %v5717_v35 = vadd.f32 %v3173_v32, %v2869_v18  ;;  %3786 = vmatprep.mubr.f32.mxu0 %v420_v22  ;;  %v456_v22 = vld [vmem:[#allocation2 + $0xd78] sm:$0xff] }
 0x352   :  { %v3175_v8 = vpop.f32.mrf.mxu0  ;;  %v2873_v52 = vpop.f32.mrf.mxu1  ;;  %3482 = vmatmul.mubr.f32.gmra.mxu1 %v417_v28  ;;  %v453_v28 = vld [vmem:[#allocation2 + $0xd60] sm:$0xff] }
 0x353   :  { %v2874_v30 = vadd.f32 %v2873_v52, %v5500_v63  ;;  %3486 = vmatprep.mubr.f32.mxu1 %v436_v27  ;;  %v472_v27 = vld [vmem:[#allocation2 + $0xdf8] sm:$0xff] }
 0x354   :  { %v3178_v10 = vpop.f32.mrf.mxu0  ;;  %3787 = vmatmul.mubr.f32.gmra.mxu0 %v419_v46  ;;  %v2875_v51 = vpop.f32.mrf.mxu1  ;;  %v455_v46 = vld [vmem:[#allocation2 + $0xd70] sm:$0xff] }
 0x355   :  { %v5720_v20 = vadd.f32 %v3178_v10, %v2874_v30  ;;  %3791 = vmatprep.mubr.f32.mxu0 %v438_v49  ;;  %v474_v49 = vld [vmem:[#allocation2 + $0xe08] sm:$0xff] }
 0x356   :  { %v3180_v18 = vpop.f32.mrf.mxu0  ;;  %v2878_v32 = vpop.f32.mrf.mxu1  ;;  %3487 = vmatmul.mubr.f32.gmra.mxu1 %v435_v19  ;;  %v471_v19 = vld [vmem:[#allocation2 + $0xdf0] sm:$0xff] }
 0x357   :  { %v2879_v41 = vadd.f32 %v2878_v32, %v5511_v13  ;;  %3491 = vmatprep.mubr.f32.mxu1 %v454_v58  ;;  %v490_v58 = vld [vmem:[#allocation2 + $0xe88] sm:$0xff] }
 0x358   :  { %v3183_v8 = vpop.f32.mrf.mxu0  ;;  %3792 = vmatmul.mubr.f32.gmra.mxu0 %v437_v16  ;;  %v2880_v63 = vpop.f32.mrf.mxu1  ;;  %v473_v16 = vld [vmem:[#allocation2 + $0xe00] sm:$0xff] }
 0x359   :  { %v5723_v52 = vadd.f32 %v3183_v8, %v2879_v41  ;;  %3796 = vmatprep.mubr.f32.mxu0 %v456_v22  ;;  %v492_v22 = vld [vmem:[#allocation2 + $0xe98] sm:$0xff] }
 0x35a   :  { %v3185_v30 = vpop.f32.mrf.mxu0  ;;  %v2883_v10 = vpop.f32.mrf.mxu1  ;;  %3492 = vmatmul.mubr.f32.gmra.mxu1 %v453_v28  ;;  %v489_v28 = vld [vmem:[#allocation2 + $0xe80] sm:$0xff] }
 0x35b   :  { %v2884_v51 = vadd.f32 %v2883_v10, %v5522_v25  ;;  %3496 = vmatprep.mubr.f32.mxu1 %v472_v27  ;;  %v508_v27 = vld [vmem:[#allocation2 + $0xf18] sm:$0xff] }
 0x35c   :  { %v3188_v18 = vpop.f32.mrf.mxu0  ;;  %3797 = vmatmul.mubr.f32.gmra.mxu0 %v455_v46  ;;  %v2885_v13 = vpop.f32.mrf.mxu1  ;;  %v491_v46 = vld [vmem:[#allocation2 + $0xe90] sm:$0xff] }
 0x35d   :  { %v5726_v32 = vadd.f32 %v3188_v18, %v2884_v51  ;;  %3801 = vmatprep.mubr.f32.mxu0 %v474_v49  ;;  %v510_v49 = vld [vmem:[#allocation2 + $0xf28] sm:$0xff] }
 0x35e   :  { %v3190_v41 = vpop.f32.mrf.mxu0  ;;  %v2888_v8 = vpop.f32.mrf.mxu1  ;;  %3497 = vmatmul.mubr.f32.gmra.mxu1 %v471_v19  ;;  %v507_v19 = vld [vmem:[#allocation2 + $0xf10] sm:$0xff] }
 0x35f   :  { %v2889_v63 = vadd.f32 %v2888_v8, %v5533_v40  ;;  %3501 = vmatprep.mubr.f32.mxu1 %v490_v58  ;;  %v526_v58 = vld [vmem:[#allocation2 + $0xfa8] sm:$0xff] }
 0x360   :  { %v3193_v30 = vpop.f32.mrf.mxu0  ;;  %3802 = vmatmul.mubr.f32.gmra.mxu0 %v473_v16  ;;  %v2890_v25 = vpop.f32.mrf.mxu1  ;;  %v509_v16 = vld [vmem:[#allocation2 + $0xf20] sm:$0xff] }
 0x361   :  { %v5729_v10 = vadd.f32 %v3193_v30, %v2889_v63  ;;  %3806 = vmatprep.mubr.f32.mxu0 %v492_v22  ;;  %v528_v22 = vld [vmem:[#allocation2 + $0xfb8] sm:$0xff] }
 0x362   :  { %v3195_v51 = vpop.f32.mrf.mxu0  ;;  %v2893_v18 = vpop.f32.mrf.mxu1  ;;  %3502 = vmatmul.mubr.f32.gmra.mxu1 %v489_v28  ;;  %v525_v28 = vld [vmem:[#allocation2 + $0xfa0] sm:$0xff] }
 0x363   :  { %v2894_v13 = vadd.f32 %v2893_v18, %v5544_v54  ;;  %3506 = vmatprep.mubr.f32.mxu1 %v508_v27  ;;  %v544_v27 = vld [vmem:[#allocation2 + $0x1038] sm:$0xff] }
 0x364   :  { %v3198_v41 = vpop.f32.mrf.mxu0  ;;  %3807 = vmatmul.mubr.f32.gmra.mxu0 %v491_v46  ;;  %v2895_v40 = vpop.f32.mrf.mxu1  ;;  %v527_v46 = vld [vmem:[#allocation2 + $0xfb0] sm:$0xff] }
 0x365   :  { %v5732_v8 = vadd.f32 %v3198_v41, %v2894_v13  ;;  %3811 = vmatprep.mubr.f32.mxu0 %v510_v49  ;;  %v546_v49 = vld [vmem:[#allocation2 + $0x1048] sm:$0xff] }
 0x366   :  { %v3200_v63 = vpop.f32.mrf.mxu0  ;;  %v2898_v30 = vpop.f32.mrf.mxu1  ;;  %3507 = vmatmul.mubr.f32.gmra.mxu1 %v507_v19  ;;  %v543_v19 = vld [vmem:[#allocation2 + $0x1030] sm:$0xff] }
 0x367   :  { %v2899_v25 = vadd.f32 %v2898_v30, %v5555_v3  ;;  %3511 = vmatprep.mubr.f32.mxu1 %v526_v58  ;;  %v562_v58 = vld [vmem:[#allocation2 + $0x10c8] sm:$0xff] }
 0x368   :  { %v3203_v51 = vpop.f32.mrf.mxu0  ;;  %3812 = vmatmul.mubr.f32.gmra.mxu0 %v509_v16  ;;  %v2900_v54 = vpop.f32.mrf.mxu1  ;;  %v545_v16 = vld [vmem:[#allocation2 + $0x1040] sm:$0xff] }
 0x369   :  { %v5735_v18 = vadd.f32 %v3203_v51, %v2899_v25  ;;  %3816 = vmatprep.mubr.f32.mxu0 %v528_v22  ;;  %v564_v22 = vld [vmem:[#allocation2 + $0x10d8] sm:$0xff] }
 0x36a   :  { %v3205_v13 = vpop.f32.mrf.mxu0  ;;  %v2903_v41 = vpop.f32.mrf.mxu1  ;;  %3512 = vmatmul.mubr.f32.gmra.mxu1 %v525_v28  ;;  %v561_v28 = vld [vmem:[#allocation2 + $0x10c0] sm:$0xff] }
 0x36b   :  { %v2904_v40 = vadd.f32 %v2903_v41, %v5566_v17  ;;  %3516 = vmatprep.mubr.f32.mxu1 %v544_v27  ;;  %v580_v27 = vld [vmem:[#allocation2 + $0x1158] sm:$0xff] }
 0x36c   :  { %v3208_v63 = vpop.f32.mrf.mxu0  ;;  %3817 = vmatmul.mubr.f32.gmra.mxu0 %v527_v46  ;;  %v2905_v3 = vpop.f32.mrf.mxu1  ;;  %v563_v46 = vld [vmem:[#allocation2 + $0x10d0] sm:$0xff] }
 0x36d   :  { %v5738_v30 = vadd.f32 %v3208_v63, %v2904_v40  ;;  %3821 = vmatprep.mubr.f32.mxu0 %v546_v49  ;;  %v582_v49 = vld [vmem:[#allocation2 + $0x1168] sm:$0xff] }
 0x36e   :  { %v3210_v25 = vpop.f32.mrf.mxu0  ;;  %v2908_v51 = vpop.f32.mrf.mxu1  ;;  %3517 = vmatmul.mubr.f32.gmra.mxu1 %v543_v19  ;;  %v579_v19 = vld [vmem:[#allocation2 + $0x1150] sm:$0xff] }
 0x36f   :  { %v2909_v54 = vadd.f32 %v2908_v51, %v5577_v31  ;;  %3521 = vmatprep.mubr.f32.mxu1 %v562_v58  ;;  %v598_v58 = vld [vmem:[#allocation2 + $0x11e8] sm:$0xff] }
 0x370   :  { %v3213_v13 = vpop.f32.mrf.mxu0  ;;  %3822 = vmatmul.mubr.f32.gmra.mxu0 %v545_v16  ;;  %v2910_v17 = vpop.f32.mrf.mxu1  ;;  %v581_v16 = vld [vmem:[#allocation2 + $0x1160] sm:$0xff] }
 0x371   :  { %v5741_v41 = vadd.f32 %v3213_v13, %v2909_v54  ;;  %3826 = vmatprep.mubr.f32.mxu0 %v564_v22  ;;  %v600_v22 = vld [vmem:[#allocation2 + $0x11f8] sm:$0xff]  ;;  %v6050_v17 = vld [vmem:[#allocation5_spill] sm:$0xff] }
 0x372   :  { %v3215_v40 = vpop.f32.mrf.mxu0  ;;  %v2913_v63 = vpop.f32.mrf.mxu1  ;;  %3522 = vmatmul.mubr.f32.gmra.mxu1 %v561_v28  ;;  %v597_v28 = vld [vmem:[#allocation2 + $0x11e0] sm:$0xff] }
 0x373   :  { %6049 = vst [vmem:[#allocation6_spill] sm:$0xff] %v5741_v41  ;;  %v2914_v3 = vadd.f32 %v2913_v63, %v5588_v43  ;;  %3526 = vmatprep.mubr.f32.mxu1 %v580_v27  ;;  %v616_v27 = vld [vmem:[#allocation2 + $0x1278] sm:$0xff] }
 0x374   :  { %v3218_v25 = vpop.f32.mrf.mxu0  ;;  %3827 = vmatmul.mubr.f32.gmra.mxu0 %v563_v46  ;;  %v2915_v31 = vpop.f32.mrf.mxu1  ;;  %v599_v46 = vld [vmem:[#allocation2 + $0x11f0] sm:$0xff] }
 0x375   :  { %v5744_v51 = vadd.f32 %v3218_v25, %v2914_v3  ;;  %3831 = vmatprep.mubr.f32.mxu0 %v582_v49  ;;  %v618_v49 = vld [vmem:[#allocation2 + $0x1288] sm:$0xff] }
 0x376   :  { %v3220_v54 = vpop.f32.mrf.mxu0  ;;  %v2918_v13 = vpop.f32.mrf.mxu1  ;;  %3527 = vmatmul.mubr.f32.gmra.mxu1 %v579_v19  ;;  %v615_v19 = vld [vmem:[#allocation2 + $0x1270] sm:$0xff] }
 0x377   :  { %v2919_v40 = vadd.f32 %v2918_v13, %v6050_v17  ;;  %3531 = vmatprep.mubr.f32.mxu1 %v598_v58  ;;  %v634_v13 = vld [vmem:[#allocation2 + $0x1308] sm:$0xff] }
 0x378   :  { %v3223_v41 = vpop.f32.mrf.mxu0  ;;  %3832 = vmatmul.mubr.f32.gmra.mxu0 %v581_v16  ;;  %v2920_v43 = vpop.f32.mrf.mxu1  ;;  %v617_v16 = vld [vmem:[#allocation2 + $0x1280] sm:$0xff] }
 0x379   :  { %v5747_v63 = vadd.f32 %v3223_v41, %v2919_v40  ;;  %3836 = vmatprep.mubr.f32.mxu0 %v600_v22  ;;  %v636_v22 = vld [vmem:[#allocation2 + $0x1318] sm:$0xff] }
 0x37a   :  { %v3225_v3 = vpop.f32.mrf.mxu0  ;;  %v2923_v25 = vpop.f32.mrf.mxu1  ;;  %3532 = vmatmul.mubr.f32.gmra.mxu1 %v597_v28  ;;  %v633_v28 = vld [vmem:[#allocation2 + $0x1300] sm:$0xff] }
 0x37b   :  { %v2924_v31 = vadd.f32 %v2923_v25, %v5606_v47  ;;  %3536 = vmatprep.mubr.f32.mxu1 %v616_v27  ;;  %v652_v27 = vld [vmem:[#allocation2 + $0x1398] sm:$0xff] }
 0x37c   :  { %v3228_v54 = vpop.f32.mrf.mxu0  ;;  %3837 = vmatmul.mubr.f32.gmra.mxu0 %v599_v46  ;;  %v2925_v58 = vpop.f32.mrf.mxu1  ;;  %v635_v46 = vld [vmem:[#allocation2 + $0x1310] sm:$0xff] }
 0x37d   :  { %v5750_v17 = vadd.f32 %v3228_v54, %v2924_v31  ;;  %3841 = vmatprep.mubr.f32.mxu0 %v618_v49  ;;  %v654_v49 = vld [vmem:[#allocation2 + $0x13a8] sm:$0xff] }
 0x37e   :  { %v3230_v41 = vpop.f32.mrf.mxu0  ;;  %v2928_v40 = vpop.f32.mrf.mxu1  ;;  %3537 = vmatmul.mubr.f32.gmra.mxu1 %v615_v19  ;;  %v651_v19 = vld [vmem:[#allocation2 + $0x1390] sm:$0xff] }
 0x37f   :  { %v2929_v43 = vadd.f32 %v2928_v40, %v5609_v42  ;;  %3541 = vmatprep.mubr.f32.mxu1 %v634_v13  ;;  %v670_v13 = vld [vmem:[#allocation2 + $0x1428] sm:$0xff] }
 0x380   :  { %v3233_v3 = vpop.f32.mrf.mxu0  ;;  %3842 = vmatmul.mubr.f32.gmra.mxu0 %v617_v16  ;;  %v2930_v47 = vpop.f32.mrf.mxu1  ;;  %v653_v16 = vld [vmem:[#allocation2 + $0x13a0] sm:$0xff] }
 0x381   :  { %v5753_v25 = vadd.f32 %v3233_v3, %v2929_v43  ;;  %3846 = vmatprep.mubr.f32.mxu0 %v636_v22  ;;  %v672_v22 = vld [vmem:[#allocation2 + $0x1438] sm:$0xff] }
 0x382   :  { %v3235_v31 = vpop.f32.mrf.mxu0  ;;  %v2933_v54 = vpop.f32.mrf.mxu1  ;;  %3542 = vmatmul.mubr.f32.gmra.mxu1 %v633_v28  ;;  %v669_v28 = vld [vmem:[#allocation2 + $0x1420] sm:$0xff] }
 0x383   :  { %v2934_v58 = vadd.f32 %v2933_v54, %v5612_v2  ;;  %3546 = vmatprep.mubr.f32.mxu1 %v652_v27  ;;  %v688_v27 = vld [vmem:[#allocation2 + $0x14b8] sm:$0xff] }
 0x384   :  { %v3238_v41 = vpop.f32.mrf.mxu0  ;;  %3847 = vmatmul.mubr.f32.gmra.mxu0 %v635_v46  ;;  %v2935_v42 = vpop.f32.mrf.mxu1  ;;  %v671_v46 = vld [vmem:[#allocation2 + $0x1430] sm:$0xff] }
 0x385   :  { %v5756_v40 = vadd.f32 %v3238_v41, %v2934_v58  ;;  %3851 = vmatprep.mubr.f32.mxu0 %v654_v49  ;;  %v690_v49 = vld [vmem:[#allocation2 + $0x14c8] sm:$0xff] }
 0x386   :  { %v3240_v43 = vpop.f32.mrf.mxu0  ;;  %v2938_v3 = vpop.f32.mrf.mxu1  ;;  %3547 = vmatmul.mubr.f32.gmra.mxu1 %v651_v19  ;;  %v687_v19 = vld [vmem:[#allocation2 + $0x14b0] sm:$0xff] }
 0x387   :  { %v2939_v47 = vadd.f32 %v2938_v3, %v5615_v33  ;;  %3551 = vmatprep.mubr.f32.mxu1 %v670_v13  ;;  %v706_v13 = vld [vmem:[#allocation2 + $0x1548] sm:$0xff] }
 0x388   :  { %v3243_v31 = vpop.f32.mrf.mxu0  ;;  %3852 = vmatmul.mubr.f32.gmra.mxu0 %v653_v16  ;;  %v2940_v2 = vpop.f32.mrf.mxu1  ;;  %v689_v16 = vld [vmem:[#allocation2 + $0x14c0] sm:$0xff] }
 0x389   :  { %v5759_v54 = vadd.f32 %v3243_v31, %v2939_v47  ;;  %3856 = vmatprep.mubr.f32.mxu0 %v672_v22  ;;  %v708_v22 = vld [vmem:[#allocation2 + $0x1558] sm:$0xff] }
 0x38a   :  { %v3245_v58 = vpop.f32.mrf.mxu0  ;;  %v2943_v41 = vpop.f32.mrf.mxu1  ;;  %3552 = vmatmul.mubr.f32.gmra.mxu1 %v669_v28  ;;  %v705_v28 = vld [vmem:[#allocation2 + $0x1540] sm:$0xff] }
 0x38b   :  { %v2944_v42 = vadd.f32 %v2943_v41, %v5618_v6  ;;  %3556 = vmatprep.mubr.f32.mxu1 %v688_v27  ;;  %v724_v27 = vld [vmem:[#allocation2 + $0x15d8] sm:$0xff] }
 0x38c   :  { %v3248_v43 = vpop.f32.mrf.mxu0  ;;  %3857 = vmatmul.mubr.f32.gmra.mxu0 %v671_v46  ;;  %v2945_v33 = vpop.f32.mrf.mxu1  ;;  %v707_v46 = vld [vmem:[#allocation2 + $0x1550] sm:$0xff] }
 0x38d   :  { %v5762_v3 = vadd.f32 %v3248_v43, %v2944_v42  ;;  %3861 = vmatprep.mubr.f32.mxu0 %v690_v49  ;;  %v726_v49 = vld [vmem:[#allocation2 + $0x15e8] sm:$0xff] }
 0x38e   :  { %v3250_v47 = vpop.f32.mrf.mxu0  ;;  %v2948_v31 = vpop.f32.mrf.mxu1  ;;  %3557 = vmatmul.mubr.f32.gmra.mxu1 %v687_v19  ;;  %v723_v19 = vld [vmem:[#allocation2 + $0x15d0] sm:$0xff] }
 0x38f   :  { %v2949_v2 = vadd.f32 %v2948_v31, %v5621_v57  ;;  %3561 = vmatprep.mubr.f32.mxu1 %v706_v13  ;;  %v742_v13 = vld [vmem:[#allocation2 + $0x1668] sm:$0xff] }
 0x390   :  { %v3253_v58 = vpop.f32.mrf.mxu0  ;;  %3862 = vmatmul.mubr.f32.gmra.mxu0 %v689_v16  ;;  %v2950_v6 = vpop.f32.mrf.mxu1  ;;  %v725_v16 = vld [vmem:[#allocation2 + $0x15e0] sm:$0xff] }
 0x391   :  { %v5765_v41 = vadd.f32 %v3253_v58, %v2949_v2  ;;  %3866 = vmatprep.mubr.f32.mxu0 %v708_v22  ;;  %v744_v22 = vld [vmem:[#allocation2 + $0x1678] sm:$0xff] }
 0x392   :  { %v3255_v42 = vpop.f32.mrf.mxu0  ;;  %v2953_v43 = vpop.f32.mrf.mxu1  ;;  %3562 = vmatmul.mubr.f32.gmra.mxu1 %v705_v28  ;;  %v741_v28 = vld [vmem:[#allocation2 + $0x1660] sm:$0xff] }
 0x393   :  { %v2954_v33 = vadd.f32 %v2953_v43, %v5624_v7  ;;  %3566 = vmatprep.mubr.f32.mxu1 %v724_v27  ;;  %v760_v27 = vld [vmem:[#allocation2 + $0x16f8] sm:$0xff] }
 0x394   :  { %v3258_v47 = vpop.f32.mrf.mxu0  ;;  %3867 = vmatmul.mubr.f32.gmra.mxu0 %v707_v46  ;;  %v2955_v57 = vpop.f32.mrf.mxu1  ;;  %v743_v46 = vld [vmem:[#allocation2 + $0x1670] sm:$0xff] }
 0x395   :  { %v5768_v31 = vadd.f32 %v3258_v47, %v2954_v33  ;;  %3871 = vmatprep.mubr.f32.mxu0 %v726_v49  ;;  %v762_v49 = vld [vmem:[#allocation2 + $0x1708] sm:$0xff] }
 0x396   :  { %v3260_v2 = vpop.f32.mrf.mxu0  ;;  %v2958_v58 = vpop.f32.mrf.mxu1  ;;  %3567 = vmatmul.mubr.f32.gmra.mxu1 %v723_v19  ;;  %v759_v19 = vld [vmem:[#allocation2 + $0x16f0] sm:$0xff] }
 0x397   :  { %v2959_v6 = vadd.f32 %v2958_v58, %v5627_v56  ;;  %3571 = vmatprep.mubr.f32.mxu1 %v742_v13  ;;  %v778_v13 = vld [vmem:[#allocation2 + $0x1788] sm:$0xff] }
 0x398   :  { %v3263_v42 = vpop.f32.mrf.mxu0  ;;  %3872 = vmatmul.mubr.f32.gmra.mxu0 %v725_v16  ;;  %v2960_v7 = vpop.f32.mrf.mxu1  ;;  %v761_v16 = vld [vmem:[#allocation2 + $0x1700] sm:$0xff] }
 0x399   :  { %v5771_v43 = vadd.f32 %v3263_v42, %v2959_v6  ;;  %3876 = vmatprep.mubr.f32.mxu0 %v744_v22  ;;  %v780_v22 = vld [vmem:[#allocation2 + $0x1798] sm:$0xff] }
 0x39a   :  { %v3265_v33 = vpop.f32.mrf.mxu0  ;;  %v2963_v47 = vpop.f32.mrf.mxu1  ;;  %3572 = vmatmul.mubr.f32.gmra.mxu1 %v741_v28  ;;  %v777_v28 = vld [vmem:[#allocation2 + $0x1780] sm:$0xff] }
 0x39b   :  { %v2964_v57 = vadd.f32 %v2963_v47, %v5630_v11  ;;  %3576 = vmatprep.mubr.f32.mxu1 %v760_v27  ;;  %v796_v27 = vld [vmem:[#allocation2 + $0x1818] sm:$0xff] }
 0x39c   :  { %v3268_v2 = vpop.f32.mrf.mxu0  ;;  %3877 = vmatmul.mubr.f32.gmra.mxu0 %v743_v46  ;;  %v2965_v56 = vpop.f32.mrf.mxu1  ;;  %v779_v46 = vld [vmem:[#allocation2 + $0x1790] sm:$0xff] }
 0x39d   :  { %v5774_v58 = vadd.f32 %v3268_v2, %v2964_v57  ;;  %3881 = vmatprep.mubr.f32.mxu0 %v762_v49  ;;  %v798_v49 = vld [vmem:[#allocation2 + $0x1828] sm:$0xff] }
 0x39e   :  { %v3270_v6 = vpop.f32.mrf.mxu0  ;;  %v2968_v42 = vpop.f32.mrf.mxu1  ;;  %3577 = vmatmul.mubr.f32.gmra.mxu1 %v759_v19  ;;  %v795_v19 = vld [vmem:[#allocation2 + $0x1810] sm:$0xff] }
 0x39f   :  { %v2969_v7 = vadd.f32 %v2968_v42, %v5633_v29  ;;  %3581 = vmatprep.mubr.f32.mxu1 %v778_v13  ;;  %v814_v13 = vld [vmem:[#allocation2 + $0x18a8] sm:$0xff] }
 0x3a0   :  { %v3273_v33 = vpop.f32.mrf.mxu0  ;;  %3882 = vmatmul.mubr.f32.gmra.mxu0 %v761_v16  ;;  %v2970_v11 = vpop.f32.mrf.mxu1  ;;  %v797_v16 = vld [vmem:[#allocation2 + $0x1820] sm:$0xff] }
 0x3a1   :  { %v5777_v47 = vadd.f32 %v3273_v33, %v2969_v7  ;;  %3886 = vmatprep.mubr.f32.mxu0 %v780_v22  ;;  %v816_v22 = vld [vmem:[#allocation2 + $0x18b8] sm:$0xff] }
 0x3a2   :  { %v3275_v57 = vpop.f32.mrf.mxu0  ;;  %v2973_v2 = vpop.f32.mrf.mxu1  ;;  %3582 = vmatmul.mubr.f32.gmra.mxu1 %v777_v28  ;;  %v813_v28 = vld [vmem:[#allocation2 + $0x18a0] sm:$0xff] }
 0x3a3   :  { %v2974_v56 = vadd.f32 %v2973_v2, %v5636_v55  ;;  %3586 = vmatprep.mubr.f32.mxu1 %v796_v27  ;;  %v832_v27 = vld [vmem:[#allocation2 + $0x1938] sm:$0xff] }
 0x3a4   :  { %v3278_v6 = vpop.f32.mrf.mxu0  ;;  %3887 = vmatmul.mubr.f32.gmra.mxu0 %v779_v46  ;;  %v2975_v29 = vpop.f32.mrf.mxu1  ;;  %v815_v46 = vld [vmem:[#allocation2 + $0x18b0] sm:$0xff] }
 0x3a5   :  { %v5780_v42 = vadd.f32 %v3278_v6, %v2974_v56  ;;  %3891 = vmatprep.mubr.f32.mxu0 %v798_v49  ;;  %v834_v49 = vld [vmem:[#allocation2 + $0x1948] sm:$0xff] }
 0x3a6   :  { %v3280_v7 = vpop.f32.mrf.mxu0  ;;  %v2978_v33 = vpop.f32.mrf.mxu1  ;;  %3587 = vmatmul.mubr.f32.gmra.mxu1 %v795_v19  ;;  %v831_v19 = vld [vmem:[#allocation2 + $0x1930] sm:$0xff] }
 0x3a7   :  { %v2979_v11 = vadd.f32 %v2978_v33, %v5639_v62  ;;  %3591 = vmatprep.mubr.f32.mxu1 %v814_v13  ;;  %v850_v13 = vld [vmem:[#allocation2 + $0x19c8] sm:$0xff] }
 0x3a8   :  { %v3283_v57 = vpop.f32.mrf.mxu0  ;;  %3892 = vmatmul.mubr.f32.gmra.mxu0 %v797_v16  ;;  %v2980_v55 = vpop.f32.mrf.mxu1  ;;  %v833_v16 = vld [vmem:[#allocation2 + $0x1940] sm:$0xff] }
 0x3a9   :  { %v5783_v2 = vadd.f32 %v3283_v57, %v2979_v11  ;;  %3896 = vmatprep.mubr.f32.mxu0 %v816_v22  ;;  %v852_v22 = vld [vmem:[#allocation2 + $0x19d8] sm:$0xff] }
 0x3aa   :  { %v3285_v56 = vpop.f32.mrf.mxu0  ;;  %v2983_v6 = vpop.f32.mrf.mxu1  ;;  %3592 = vmatmul.mubr.f32.gmra.mxu1 %v813_v28  ;;  %v849_v28 = vld [vmem:[#allocation2 + $0x19c0] sm:$0xff] }
 0x3ab   :  { %v2984_v29 = vadd.f32 %v2983_v6, %v5642_v61  ;;  %3596 = vmatprep.mubr.f32.mxu1 %v832_v27  ;;  %v868_v27 = vld [vmem:[#allocation2 + $0x1a58] sm:$0xff] }
 0x3ac   :  { %v3288_v7 = vpop.f32.mrf.mxu0  ;;  %3897 = vmatmul.mubr.f32.gmra.mxu0 %v815_v46  ;;  %v2985_v62 = vpop.f32.mrf.mxu1  ;;  %v851_v46 = vld [vmem:[#allocation2 + $0x19d0] sm:$0xff] }
 0x3ad   :  { %v5786_v33 = vadd.f32 %v3288_v7, %v2984_v29  ;;  %3901 = vmatprep.mubr.f32.mxu0 %v834_v49  ;;  %v870_v49 = vld [vmem:[#allocation2 + $0x1a68] sm:$0xff] }
 0x3ae   :  { %v3290_v11 = vpop.f32.mrf.mxu0  ;;  %v2988_v57 = vpop.f32.mrf.mxu1  ;;  %3597 = vmatmul.mubr.f32.gmra.mxu1 %v831_v19  ;;  %v867_v19 = vld [vmem:[#allocation2 + $0x1a50] sm:$0xff] }
 0x3af   :  { %v2989_v55 = vadd.f32 %v2988_v57, %v5645_v45  ;;  %3601 = vmatprep.mubr.f32.mxu1 %v850_v13  ;;  %v886_v13 = vld [vmem:[#allocation2 + $0x1ae8] sm:$0xff] }
 0x3b0   :  { %v3293_v56 = vpop.f32.mrf.mxu0  ;;  %3902 = vmatmul.mubr.f32.gmra.mxu0 %v833_v16  ;;  %v2990_v61 = vpop.f32.mrf.mxu1  ;;  %v869_v16 = vld [vmem:[#allocation2 + $0x1a60] sm:$0xff] }
 0x3b1   :  { %v5789_v6 = vadd.f32 %v3293_v56, %v2989_v55  ;;  %3906 = vmatprep.mubr.f32.mxu0 %v852_v22  ;;  %v888_v22 = vld [vmem:[#allocation2 + $0x1af8] sm:$0xff] }
 0x3b2   :  { %v3295_v29 = vpop.f32.mrf.mxu0  ;;  %v2993_v7 = vpop.f32.mrf.mxu1  ;;  %3602 = vmatmul.mubr.f32.gmra.mxu1 %v849_v28  ;;  %v885_v28 = vld [vmem:[#allocation2 + $0x1ae0] sm:$0xff] }
 0x3b3   :  { %v2994_v62 = vadd.f32 %v2993_v7, %v5648_v60  ;;  %3606 = vmatprep.mubr.f32.mxu1 %v868_v27 }
 0x3b4   :  { %v3298_v11 = vpop.f32.mrf.mxu0  ;;  %3907 = vmatmul.mubr.f32.gmra.mxu0 %v851_v46  ;;  %v2995_v45 = vpop.f32.mrf.mxu1  ;;  %v887_v46 = vld [vmem:[#allocation2 + $0x1af0] sm:$0xff] }
 0x3b5   :  { %v5792_v57 = vadd.f32 %v3298_v11, %v2994_v62  ;;  %3911 = vmatprep.mubr.f32.mxu0 %v870_v49 }
 0x3b6   :  { %v3300_v55 = vpop.f32.mrf.mxu0  ;;  %v2998_v56 = vpop.f32.mrf.mxu1  ;;  %3607 = vmatmul.mubr.f32.gmra.mxu1 %v867_v19 }
 0x3b7   :  { %v2999_v61 = vadd.f32 %v2998_v56, %v5651_v21  ;;  %3611 = vmatprep.mubr.f32.mxu1 %v886_v13 }
 0x3b8   :  { %v3303_v29 = vpop.f32.mrf.mxu0  ;;  %3912 = vmatmul.mubr.f32.gmra.mxu0 %v869_v16  ;;  %v3000_v60 = vpop.f32.mrf.mxu1 }
 0x3b9   :  { %v5795_v27 = vadd.f32 %v3303_v29, %v2999_v61  ;;  %3916 = vmatprep.mubr.f32.mxu0 %v888_v22 }
 0x3ba   :  { %v3305_v7 = vpop.f32.mrf.mxu0  ;;  %v3003_v62 = vpop.f32.mrf.mxu1  ;;  %3612 = vmatmul.mubr.f32.gmra.mxu1 %v885_v28 }
 0x3bb   :  { %v3004_v49 = vadd.f32 %v3003_v62, %v5654_v23 }
 0x3bc   :  { %v3308_v11 = vpop.f32.mrf.mxu0  ;;  %3917 = vmatmul.mubr.f32.gmra.mxu0 %v887_v46  ;;  %v3005_v19 = vpop.f32.mrf.mxu1 }
 0x3bd   :  { %v5798_v45 = vadd.f32 %v3308_v11, %v3004_v49 }
 0x3be   :  { %v3310_v21 = vpop.f32.mrf.mxu0  ;;  %v3378_v13 = vpop.f32.mrf.mxu1 }
 0x3bf   :  { %v3379_v55 = vadd.f32 %v3378_v13, %v5657_v0 }
 0x3c0   :  { %v3683_v16 = vpop.f32.mrf.mxu0  ;;  %v3380_v56 = vpop.f32.mrf.mxu1 }
 0x3c1   :  { %v3684_v61 = vadd.f32 %v3683_v16, %v3379_v55 }
 0x3c2   :  { %v3685_v22 = vpop.f32.mrf.mxu0  ;;  %v3383_v29 = vpop.f32.mrf.mxu1 }
 0x3c3   :  { %3923 = vst.msk [vmem:[%s6042_s2] sm:$0xff] %vm3922_vm0, %v3684_v61  ;;  %v3384_v23 = vadd.f32 %v3383_v29, %v5660_v24 }
 0x3c4   :  { %v3688_v28 = vpop.f32.mrf.mxu0  ;;  %v3385_v60 = vpop.f32.mrf.mxu1 }
 0x3c5   :  { %v3689_v46 = vadd.f32 %v3688_v28, %v3384_v23 }
 0x3c6   :  { %v3690_v7 = vpop.f32.mrf.mxu0  ;;  %v3388_v62 = vpop.f32.mrf.mxu1 }
 0x3c7   :  { %3924 = vst.msk [vmem:[%s6042_s2 + $0x8] sm:$0xff] %vm3922_vm0, %v3689_v46  ;;  %v3389_v0 = vadd.f32 %v3388_v62, %v5663_v36 }
 0x3c8   :  { %v3693_v49 = vpop.f32.mrf.mxu0  ;;  %v3390_v11 = vpop.f32.mrf.mxu1 }
 0x3c9   :  { %v3694_v19 = vadd.f32 %v3693_v49, %v3389_v0 }
 0x3ca   :  { %v3695_v21 = vpop.f32.mrf.mxu0  ;;  %v3393_v13 = vpop.f32.mrf.mxu1 }
 0x3cb   :  { %3925 = vst.msk [vmem:[%s6042_s2 + $0x10] sm:$0xff] %vm3922_vm0, %v3694_v19  ;;  %v3394_v24 = vadd.f32 %v3393_v13, %v5666_v48 }
 0x3cc   :  { %v3698_v55 = vpop.f32.mrf.mxu0  ;;  %v3395_v16 = vpop.f32.mrf.mxu1 }
 0x3cd   :  { %v3699_v56 = vadd.f32 %v3698_v55, %v3394_v24 }
 0x3ce   :  { %v3700_v61 = vpop.f32.mrf.mxu0  ;;  %v3398_v22 = vpop.f32.mrf.mxu1 }
 0x3cf   :  { %3926 = vst.msk [vmem:[%s6042_s2 + $0x18] sm:$0xff] %vm3922_vm0, %v3699_v56  ;;  %v3399_v36 = vadd.f32 %v3398_v22, %v5669_v1 }
 0x3d0   :  { %v3703_v29 = vpop.f32.mrf.mxu0  ;;  %v3400_v23 = vpop.f32.mrf.mxu1 }
 0x3d1   :  { %v3704_v28 = vadd.f32 %v3703_v29, %v3399_v36 }
 0x3d2   :  { %v3705_v60 = vpop.f32.mrf.mxu0  ;;  %v3403_v46 = vpop.f32.mrf.mxu1 }
 0x3d3   :  { %3927 = vst.msk [vmem:[%s6042_s2 + $0x20] sm:$0xff] %vm3922_vm0, %v3704_v28  ;;  %v3404_v48 = vadd.f32 %v3403_v46, %v5672_v14 }
 0x3d4   :  { %v3708_v7 = vpop.f32.mrf.mxu0  ;;  %v3405_v62 = vpop.f32.mrf.mxu1 }
 0x3d5   :  { %v3709_v0 = vadd.f32 %v3708_v7, %v3404_v48 }
 0x3d6   :  { %v3710_v49 = vpop.f32.mrf.mxu0  ;;  %v3408_v11 = vpop.f32.mrf.mxu1 }
 0x3d7   :  { %3928 = vst.msk [vmem:[%s6042_s2 + $0x28] sm:$0xff] %vm3922_vm0, %v3709_v0  ;;  %v3409_v1 = vadd.f32 %v3408_v11, %v5675_v26 }
 0x3d8   :  { %v3713_v19 = vpop.f32.mrf.mxu0  ;;  %v3410_v21 = vpop.f32.mrf.mxu1 }
 0x3d9   :  { %v3714_v13 = vadd.f32 %v3713_v19, %v3409_v1 }
 0x3da   :  { %v3715_v24 = vpop.f32.mrf.mxu0  ;;  %v3413_v55 = vpop.f32.mrf.mxu1 }
 0x3db   :  { %3929 = vst.msk [vmem:[%s6042_s2 + $0x30] sm:$0xff] %vm3922_vm0, %v3714_v13  ;;  %v3414_v14 = vadd.f32 %v3413_v55, %v5678_v39 }
 0x3dc   :  { %v3718_v16 = vpop.f32.mrf.mxu0  ;;  %v3415_v56 = vpop.f32.mrf.mxu1 }
 0x3dd   :  { %v3719_v61 = vadd.f32 %v3718_v16, %v3414_v14 }
 0x3de   :  { %v3720_v22 = vpop.f32.mrf.mxu0  ;;  %v3418_v36 = vpop.f32.mrf.mxu1 }
 0x3df   :  { %3930 = vst.msk [vmem:[%s6042_s2 + $0x38] sm:$0xff] %vm3922_vm0, %v3719_v61  ;;  %v3419_v26 = vadd.f32 %v3418_v36, %v5681_v53 }
 0x3e0   :  { %v3723_v29 = vpop.f32.mrf.mxu0  ;;  %v3420_v23 = vpop.f32.mrf.mxu1 }
 0x3e1   :  { %v3724_v28 = vadd.f32 %v3723_v29, %v3419_v26 }
 0x3e2   :  { %v3725_v60 = vpop.f32.mrf.mxu0  ;;  %v3423_v46 = vpop.f32.mrf.mxu1 }
 0x3e3   :  { %3931 = vst.msk [vmem:[%s6042_s2 + $0x40] sm:$0xff] %vm3922_vm0, %v3724_v28  ;;  %v3424_v39 = vadd.f32 %v3423_v46, %v5684_v4 }
 0x3e4   :  { %v3728_v48 = vpop.f32.mrf.mxu0  ;;  %v3425_v7 = vpop.f32.mrf.mxu1 }
 0x3e5   :  { %v3729_v62 = vadd.f32 %v3728_v48, %v3424_v39 }
 0x3e6   :  { %v3730_v0 = vpop.f32.mrf.mxu0  ;;  %v3428_v49 = vpop.f32.mrf.mxu1 }
 0x3e7   :  { %3932 = vst.msk [vmem:[%s6042_s2 + $0x48] sm:$0xff] %vm3922_vm0, %v3729_v62  ;;  %v3429_v53 = vadd.f32 %v3428_v49, %v5687_v9 }
 0x3e8   :  { %v3733_v11 = vpop.f32.mrf.mxu0  ;;  %v3430_v1 = vpop.f32.mrf.mxu1 }
 0x3e9   :  { %v3734_v19 = vadd.f32 %v3733_v11, %v3429_v53 }
 0x3ea   :  { %v3735_v21 = vpop.f32.mrf.mxu0  ;;  %v3433_v13 = vpop.f32.mrf.mxu1 }
 0x3eb   :  { %3933 = vst.msk [vmem:[%s6042_s2 + $0x50] sm:$0xff] %vm3922_vm0, %v3734_v19  ;;  %v3434_v4 = vadd.f32 %v3433_v13, %v5690_v5 }
 0x3ec   :  { %v3738_v24 = vpop.f32.mrf.mxu0  ;;  %v3435_v55 = vpop.f32.mrf.mxu1 }
 0x3ed   :  { %v3739_v14 = vadd.f32 %v3738_v24, %v3434_v4 }
 0x3ee   :  { %v3740_v16 = vpop.f32.mrf.mxu0  ;;  %v3438_v56 = vpop.f32.mrf.mxu1 }
 0x3ef   :  { %3934 = vst.msk [vmem:[%s6042_s2 + $0x58] sm:$0xff] %vm3922_vm0, %v3739_v14  ;;  %v3439_v9 = vadd.f32 %v3438_v56, %v5693_v12 }
 0x3f0   :  { %v3743_v61 = vpop.f32.mrf.mxu0  ;;  %v3440_v22 = vpop.f32.mrf.mxu1 }
 0x3f1   :  { %v3744_v36 = vadd.f32 %v3743_v61, %v3439_v9 }
 0x3f2   :  { %v3745_v26 = vpop.f32.mrf.mxu0  ;;  %v3443_v29 = vpop.f32.mrf.mxu1 }
 0x3f3   :  { %3935 = vst.msk [vmem:[%s6042_s2 + $0x60] sm:$0xff] %vm3922_vm0, %v3744_v36  ;;  %v3444_v5 = vadd.f32 %v3443_v29, %v5696_v50 }
 0x3f4   :  { %v3748_v23 = vpop.f32.mrf.mxu0  ;;  %v3445_v28 = vpop.f32.mrf.mxu1 }
 0x3f5   :  { %v3749_v60 = vadd.f32 %v3748_v23, %v3444_v5 }
 0x3f6   :  { %v3750_v46 = vpop.f32.mrf.mxu0  ;;  %v3448_v39 = vpop.f32.mrf.mxu1 }
 0x3f7   :  { %3936 = vst.msk [vmem:[%s6042_s2 + $0x68] sm:$0xff] %vm3922_vm0, %v3749_v60  ;;  %v3449_v12 = vadd.f32 %v3448_v39, %v5699_v44 }
 0x3f8   :  { %v3753_v48 = vpop.f32.mrf.mxu0  ;;  %v3450_v7 = vpop.f32.mrf.mxu1 }
 0x3f9   :  { %v3754_v62 = vadd.f32 %v3753_v48, %v3449_v12 }
 0x3fa   :  { %v3755_v0 = vpop.f32.mrf.mxu0  ;;  %v3453_v49 = vpop.f32.mrf.mxu1 }
 0x3fb   :  { %3937 = vst.msk [vmem:[%s6042_s2 + $0x70] sm:$0xff] %vm3922_vm0, %v3754_v62  ;;  %v3454_v50 = vadd.f32 %v3453_v49, %v5702_v59 }
 0x3fc   :  { %v3758_v53 = vpop.f32.mrf.mxu0  ;;  %v3455_v11 = vpop.f32.mrf.mxu1 }
 0x3fd   :  { %v3759_v1 = vadd.f32 %v3758_v53, %v3454_v50 }
 0x3fe   :  { %v3760_v19 = vpop.f32.mrf.mxu0  ;;  %v3458_v21 = vpop.f32.mrf.mxu1 }
 0x3ff   :  { %3938 = vst.msk [vmem:[%s6042_s2 + $0x78] sm:$0xff] %vm3922_vm0, %v3759_v1  ;;  %v3459_v44 = vadd.f32 %v3458_v21, %v5705_v38 }
 0x400   :  { %v3763_v13 = vpop.f32.mrf.mxu0  ;;  %v3460_v4 = vpop.f32.mrf.mxu1 }
 0x401   :  { %v3764_v24 = vadd.f32 %v3763_v13, %v3459_v44 }
 0x402   :  { %v3765_v55 = vpop.f32.mrf.mxu0  ;;  %v3463_v14 = vpop.f32.mrf.mxu1 }
 0x403   :  { %3939 = vst.msk [vmem:[%s6042_s2 + $0x80] sm:$0xff] %vm3922_vm0, %v3764_v24  ;;  %v3464_v59 = vadd.f32 %v3463_v14, %v5708_v15 }
 0x404   :  { %v3768_v16 = vpop.f32.mrf.mxu0  ;;  %v3465_v56 = vpop.f32.mrf.mxu1 }
 0x405   :  { %v3769_v9 = vadd.f32 %v3768_v16, %v3464_v59 }
 0x406   :  { %v3770_v61 = vpop.f32.mrf.mxu0  ;;  %v3468_v22 = vpop.f32.mrf.mxu1 }
 0x407   :  { %3940 = vst.msk [vmem:[%s6042_s2 + $0x88] sm:$0xff] %vm3922_vm0, %v3769_v9  ;;  %v3469_v38 = vadd.f32 %v3468_v22, %v5711_v37 }
 0x408   :  { %v3773_v36 = vpop.f32.mrf.mxu0  ;;  %v3470_v26 = vpop.f32.mrf.mxu1 }
 0x409   :  { %v3774_v29 = vadd.f32 %v3773_v36, %v3469_v38 }
 0x40a   :  { %v3775_v5 = vpop.f32.mrf.mxu0  ;;  %v3473_v23 = vpop.f32.mrf.mxu1 }
 0x40b   :  { %3941 = vst.msk [vmem:[%s6042_s2 + $0x90] sm:$0xff] %vm3922_vm0, %v3774_v29  ;;  %v3474_v15 = vadd.f32 %v3473_v23, %v5714_v34 }
 0x40c   :  { %v3778_v28 = vpop.f32.mrf.mxu0  ;;  %v3475_v60 = vpop.f32.mrf.mxu1 }
 0x40d   :  { %v3779_v46 = vadd.f32 %v3778_v28, %v3474_v15 }
 0x40e   :  { %v3780_v39 = vpop.f32.mrf.mxu0  ;;  %v3478_v12 = vpop.f32.mrf.mxu1 }
 0x40f   :  { %3942 = vst.msk [vmem:[%s6042_s2 + $0x98] sm:$0xff] %vm3922_vm0, %v3779_v46  ;;  %v3479_v37 = vadd.f32 %v3478_v12, %v5717_v35 }
 0x410   :  { %v3783_v48 = vpop.f32.mrf.mxu0  ;;  %v3480_v7 = vpop.f32.mrf.mxu1 }
 0x411   :  { %v3784_v62 = vadd.f32 %v3783_v48, %v3479_v37 }
 0x412   :  { %v3785_v0 = vpop.f32.mrf.mxu0  ;;  %v3483_v49 = vpop.f32.mrf.mxu1 }
 0x413   :  { %3943 = vst.msk [vmem:[%s6042_s2 + $0xa0] sm:$0xff] %vm3922_vm0, %v3784_v62  ;;  %v3484_v34 = vadd.f32 %v3483_v49, %v5720_v20 }
 0x414   :  { %v3788_v50 = vpop.f32.mrf.mxu0  ;;  %v3485_v53 = vpop.f32.mrf.mxu1 }
 0x415   :  { %v3789_v11 = vadd.f32 %v3788_v50, %v3484_v34 }
 0x416   :  { %v3790_v1 = vpop.f32.mrf.mxu0  ;;  %v3488_v19 = vpop.f32.mrf.mxu1 }
 0x417   :  { %3944 = vst.msk [vmem:[%s6042_s2 + $0xa8] sm:$0xff] %vm3922_vm0, %v3789_v11  ;;  %v3489_v35 = vadd.f32 %v3488_v19, %v5723_v52 }
 0x418   :  { %v3793_v21 = vpop.f32.mrf.mxu0  ;;  %v3490_v44 = vpop.f32.mrf.mxu1 }
 0x419   :  { %v3794_v13 = vadd.f32 %v3793_v21, %v3489_v35 }
 0x41a   :  { %v3795_v4 = vpop.f32.mrf.mxu0  ;;  %v3493_v24 = vpop.f32.mrf.mxu1 }
 0x41b   :  { %3945 = vst.msk [vmem:[%s6042_s2 + $0xb0] sm:$0xff] %vm3922_vm0, %v3794_v13  ;;  %v3494_v20 = vadd.f32 %v3493_v24, %v5726_v32 }
 0x41c   :  { %v3798_v55 = vpop.f32.mrf.mxu0  ;;  %v3495_v14 = vpop.f32.mrf.mxu1 }
 0x41d   :  { %v3799_v59 = vadd.f32 %v3798_v55, %v3494_v20 }
 0x41e   :  { %v3800_v16 = vpop.f32.mrf.mxu0  ;;  %v3498_v56 = vpop.f32.mrf.mxu1 }
 0x41f   :  { %3946 = vst.msk [vmem:[%s6042_s2 + $0xb8] sm:$0xff] %vm3922_vm0, %v3799_v59  ;;  %v3499_v52 = vadd.f32 %v3498_v56, %v5729_v10 }
 0x420   :  { %v3803_v9 = vpop.f32.mrf.mxu0  ;;  %v3500_v61 = vpop.f32.mrf.mxu1 }
 0x421   :  { %v3804_v22 = vadd.f32 %v3803_v9, %v3499_v52 }
 0x422   :  { %v3805_v38 = vpop.f32.mrf.mxu0  ;;  %v3503_v36 = vpop.f32.mrf.mxu1 }
 0x423   :  { %3947 = vst.msk [vmem:[%s6042_s2 + $0xc0] sm:$0xff] %vm3922_vm0, %v3804_v22  ;;  %v3504_v32 = vadd.f32 %v3503_v36, %v5732_v8 }
 0x424   :  { %v3808_v26 = vpop.f32.mrf.mxu0  ;;  %v3505_v29 = vpop.f32.mrf.mxu1 }
 0x425   :  { %v3809_v5 = vadd.f32 %v3808_v26, %v3504_v32 }
 0x426   :  { %v3810_v23 = vpop.f32.mrf.mxu0  ;;  %v3508_v15 = vpop.f32.mrf.mxu1 }
 0x427   :  { %3948 = vst.msk [vmem:[%s6042_s2 + $0xc8] sm:$0xff] %vm3922_vm0, %v3809_v5  ;;  %v3509_v10 = vadd.f32 %v3508_v15, %v5735_v18  ;;  %v6051_v18 = vld [vmem:[#allocation6_spill] sm:$0xff] }
 0x428   :  { %v3813_v28 = vpop.f32.mrf.mxu0  ;;  %v3510_v60 = vpop.f32.mrf.mxu1 }
 0x429   :  { %v3814_v46 = vadd.f32 %v3813_v28, %v3509_v10 }
 0x42a   :  { %v3815_v39 = vpop.f32.mrf.mxu0  ;;  %v3513_v12 = vpop.f32.mrf.mxu1 }
 0x42b   :  { %3949 = vst.msk [vmem:[%s6042_s2 + $0xd0] sm:$0xff] %vm3922_vm0, %v3814_v46  ;;  %v3514_v8 = vadd.f32 %v3513_v12, %v5738_v30 }
 0x42c   :  { %v3818_v37 = vpop.f32.mrf.mxu0  ;;  %v3515_v48 = vpop.f32.mrf.mxu1 }
 0x42d   :  { %v3819_v7 = vadd.f32 %v3818_v37, %v3514_v8 }
 0x42e   :  { %v3820_v62 = vpop.f32.mrf.mxu0  ;;  %v3518_v0 = vpop.f32.mrf.mxu1 }
 0x42f   :  { %3950 = vst.msk [vmem:[%s6042_s2 + $0xd8] sm:$0xff] %vm3922_vm0, %v3819_v7  ;;  %v3519_v49 = vadd.f32 %v3518_v0, %v6051_v18 }
 0x430   :  { %v3823_v34 = vpop.f32.mrf.mxu0  ;;  %v3520_v50 = vpop.f32.mrf.mxu1 }
 0x431   :  { %v3824_v53 = vadd.f32 %v3823_v34, %v3519_v49 }
 0x432   :  { %v3825_v11 = vpop.f32.mrf.mxu0  ;;  %v3523_v1 = vpop.f32.mrf.mxu1 }
 0x433   :  { %3951 = vst.msk [vmem:[%s6042_s2 + $0xe0] sm:$0xff] %vm3922_vm0, %v3824_v53  ;;  %v3524_v30 = vadd.f32 %v3523_v1, %v5744_v51 }
 0x434   :  { %v3828_v19 = vpop.f32.mrf.mxu0  ;;  %v3525_v35 = vpop.f32.mrf.mxu1 }
 0x435   :  { %v3829_v21 = vadd.f32 %v3828_v19, %v3524_v30 }
 0x436   :  { %v3830_v44 = vpop.f32.mrf.mxu0  ;;  %v3528_v13 = vpop.f32.mrf.mxu1 }
 0x437   :  { %3952 = vst.msk [vmem:[%s6042_s2 + $0xe8] sm:$0xff] %vm3922_vm0, %v3829_v21  ;;  %v3529_v4 = vadd.f32 %v3528_v13, %v5747_v63 }
 0x438   :  { %v3833_v24 = vpop.f32.mrf.mxu0  ;;  %v3530_v20 = vpop.f32.mrf.mxu1 }
 0x439   :  { %v3834_v55 = vadd.f32 %v3833_v24, %v3529_v4 }
 0x43a   :  { %v3835_v14 = vpop.f32.mrf.mxu0  ;;  %v3533_v59 = vpop.f32.mrf.mxu1 }
 0x43b   :  { %3953 = vst.msk [vmem:[%s6042_s2 + $0xf0] sm:$0xff] %vm3922_vm0, %v3834_v55  ;;  %v3534_v51 = vadd.f32 %v3533_v59, %v5750_v17 }
 0x43c   :  { %v3838_v16 = vpop.f32.mrf.mxu0  ;;  %v3535_v56 = vpop.f32.mrf.mxu1 }
 0x43d   :  { %v3839_v52 = vadd.f32 %v3838_v16, %v3534_v51 }
 0x43e   :  { %v3840_v9 = vpop.f32.mrf.mxu0  ;;  %v3538_v61 = vpop.f32.mrf.mxu1 }
 0x43f   :  { %3954 = vst.msk [vmem:[%s6042_s2 + $0xf8] sm:$0xff] %vm3922_vm0, %v3839_v52  ;;  %v3539_v63 = vadd.f32 %v3538_v61, %v5753_v25 }
 0x440   :  { %v3843_v22 = vpop.f32.mrf.mxu0  ;;  %v3540_v38 = vpop.f32.mrf.mxu1 }
 0x441   :  { %v3844_v36 = vadd.f32 %v3843_v22, %v3539_v63 }
 0x442   :  { %v3845_v32 = vpop.f32.mrf.mxu0  ;;  %v3543_v26 = vpop.f32.mrf.mxu1 }
 0x443   :  { %3955 = vst.msk [vmem:[%s6042_s2 + $0x100] sm:$0xff] %vm3922_vm0, %v3844_v36  ;;  %v3544_v17 = vadd.f32 %v3543_v26, %v5756_v40 }
 0x444   :  { %v3848_v29 = vpop.f32.mrf.mxu0  ;;  %v3545_v5 = vpop.f32.mrf.mxu1 }
 0x445   :  { %v3849_v23 = vadd.f32 %v3848_v29, %v3544_v17 }
 0x446   :  { %v3850_v15 = vpop.f32.mrf.mxu0  ;;  %v3548_v10 = vpop.f32.mrf.mxu1 }
 0x447   :  { %3956 = vst.msk [vmem:[%s6042_s2 + $0x108] sm:$0xff] %vm3922_vm0, %v3849_v23  ;;  %v3549_v25 = vadd.f32 %v3548_v10, %v5759_v54 }
 0x448   :  { %v3853_v28 = vpop.f32.mrf.mxu0  ;;  %v3550_v60 = vpop.f32.mrf.mxu1 }
 0x449   :  { %v3854_v46 = vadd.f32 %v3853_v28, %v3549_v25 }
 0x44a   :  { %v3855_v39 = vpop.f32.mrf.mxu0  ;;  %v3553_v12 = vpop.f32.mrf.mxu1 }
 0x44b   :  { %3957 = vst.msk [vmem:[%s6042_s2 + $0x110] sm:$0xff] %vm3922_vm0, %v3854_v46  ;;  %v3554_v40 = vadd.f32 %v3553_v12, %v5762_v3 }
 0x44c   :  { %v3858_v8 = vpop.f32.mrf.mxu0  ;;  %v3555_v37 = vpop.f32.mrf.mxu1 }
 0x44d   :  { %v3859_v48 = vadd.f32 %v3858_v8, %v3554_v40 }
 0x44e   :  { %v3860_v7 = vpop.f32.mrf.mxu0  ;;  %v3558_v62 = vpop.f32.mrf.mxu1 }
 0x44f   :  { %3958 = vst.msk [vmem:[%s6042_s2 + $0x118] sm:$0xff] %vm3922_vm0, %v3859_v48  ;;  %v3559_v54 = vadd.f32 %v3558_v62, %v5765_v41 }
 0x450   :  { %v3863_v0 = vpop.f32.mrf.mxu0  ;;  %v3560_v18 = vpop.f32.mrf.mxu1 }
 0x451   :  { %v3864_v49 = vadd.f32 %v3863_v0, %v3559_v54 }
 0x452   :  { %v3865_v34 = vpop.f32.mrf.mxu0  ;;  %v3563_v50 = vpop.f32.mrf.mxu1 }
 0x453   :  { %3959 = vst.msk [vmem:[%s6042_s2 + $0x120] sm:$0xff] %vm3922_vm0, %v3864_v49  ;;  %v3564_v3 = vadd.f32 %v3563_v50, %v5768_v31 }
 0x454   :  { %v3868_v53 = vpop.f32.mrf.mxu0  ;;  %v3565_v11 = vpop.f32.mrf.mxu1 }
 0x455   :  { %v3869_v1 = vadd.f32 %v3868_v53, %v3564_v3 }
 0x456   :  { %v3870_v30 = vpop.f32.mrf.mxu0  ;;  %v3568_v19 = vpop.f32.mrf.mxu1 }
 0x457   :  { %3960 = vst.msk [vmem:[%s6042_s2 + $0x128] sm:$0xff] %vm3922_vm0, %v3869_v1  ;;  %v3569_v41 = vadd.f32 %v3568_v19, %v5771_v43 }
 0x458   :  { %v3873_v35 = vpop.f32.mrf.mxu0  ;;  %v3570_v21 = vpop.f32.mrf.mxu1 }
 0x459   :  { %v3874_v44 = vadd.f32 %v3873_v35, %v3569_v41 }
 0x45a   :  { %v3875_v13 = vpop.f32.mrf.mxu0  ;;  %v3573_v4 = vpop.f32.mrf.mxu1 }
 0x45b   :  { %3961 = vst.msk [vmem:[%s6042_s2 + $0x130] sm:$0xff] %vm3922_vm0, %v3874_v44  ;;  %v3574_v31 = vadd.f32 %v3573_v4, %v5774_v58 }
 0x45c   :  { %v3878_v24 = vpop.f32.mrf.mxu0  ;;  %v3575_v20 = vpop.f32.mrf.mxu1 }
 0x45d   :  { %v3879_v55 = vadd.f32 %v3878_v24, %v3574_v31 }
 0x45e   :  { %v3880_v14 = vpop.f32.mrf.mxu0  ;;  %v3578_v59 = vpop.f32.mrf.mxu1 }
 0x45f   :  { %3962 = vst.msk [vmem:[%s6042_s2 + $0x138] sm:$0xff] %vm3922_vm0, %v3879_v55  ;;  %v3579_v43 = vadd.f32 %v3578_v59, %v5777_v47 }
 0x460   :  { %v3883_v51 = vpop.f32.mrf.mxu0  ;;  %v3580_v16 = vpop.f32.mrf.mxu1 }
 0x461   :  { %v3884_v56 = vadd.f32 %v3883_v51, %v3579_v43 }
 0x462   :  { %v3885_v52 = vpop.f32.mrf.mxu0  ;;  %v3583_v9 = vpop.f32.mrf.mxu1 }
 0x463   :  { %3963 = vst.msk [vmem:[%s6042_s2 + $0x140] sm:$0xff] %vm3922_vm0, %v3884_v56  ;;  %v3584_v58 = vadd.f32 %v3583_v9, %v5780_v42 }
 0x464   :  { %v3888_v61 = vpop.f32.mrf.mxu0  ;;  %v3585_v63 = vpop.f32.mrf.mxu1 }
 0x465   :  { %v3889_v22 = vadd.f32 %v3888_v61, %v3584_v58 }
 0x466   :  { %v3890_v38 = vpop.f32.mrf.mxu0  ;;  %v3588_v36 = vpop.f32.mrf.mxu1 }
 0x467   :  { %3964 = vst.msk [vmem:[%s6042_s2 + $0x148] sm:$0xff] %vm3922_vm0, %v3889_v22  ;;  %v3589_v47 = vadd.f32 %v3588_v36, %v5783_v2 }
 0x468   :  { %v3893_v32 = vpop.f32.mrf.mxu0  ;;  %v3590_v26 = vpop.f32.mrf.mxu1 }
 0x469   :  { %v3894_v17 = vadd.f32 %v3893_v32, %v3589_v47 }
 0x46a   :  { %v3895_v29 = vpop.f32.mrf.mxu0  ;;  %v3593_v5 = vpop.f32.mrf.mxu1 }
 0x46b   :  { %3965 = vst.msk [vmem:[%s6042_s2 + $0x150] sm:$0xff] %vm3922_vm0, %v3894_v17  ;;  %v3594_v42 = vadd.f32 %v3593_v5, %v5786_v33 }
 0x46c   :  { %v3898_v23 = vpop.f32.mrf.mxu0  ;;  %v3595_v15 = vpop.f32.mrf.mxu1 }
 0x46d   :  { %v3899_v10 = vadd.f32 %v3898_v23, %v3594_v42 }
 0x46e   :  { %v3900_v25 = vpop.f32.mrf.mxu0  ;;  %v3598_v28 = vpop.f32.mrf.mxu1 }
 0x46f   :  { %3966 = vst.msk [vmem:[%s6042_s2 + $0x158] sm:$0xff] %vm3922_vm0, %v3899_v10  ;;  %v3599_v2 = vadd.f32 %v3598_v28, %v5789_v6 }
 0x470   :  { %v3903_v60 = vpop.f32.mrf.mxu0  ;;  %v3600_v46 = vpop.f32.mrf.mxu1 }
 0x471   :  { %v3904_v39 = vadd.f32 %v3903_v60, %v3599_v2 }
 0x472   :  { %v3905_v12 = vpop.f32.mrf.mxu0  ;;  %v3603_v40 = vpop.f32.mrf.mxu1 }
 0x473   :  { %3967 = vst.msk [vmem:[%s6042_s2 + $0x160] sm:$0xff] %vm3922_vm0, %v3904_v39  ;;  %v3604_v33 = vadd.f32 %v3603_v40, %v5792_v57 }
 0x474   :  { %v3908_v8 = vpop.f32.mrf.mxu0  ;;  %v3605_v37 = vpop.f32.mrf.mxu1 }
 0x475   :  { %v3909_v48 = vadd.f32 %v3908_v8, %v3604_v33 }
 0x476   :  { %v3910_v7 = vpop.f32.mrf.mxu0  ;;  %v3608_v62 = vpop.f32.mrf.mxu1 }
 0x477   :  { %3968 = vst.msk [vmem:[%s6042_s2 + $0x168] sm:$0xff] %vm3922_vm0, %v3909_v48  ;;  %v3609_v6 = vadd.f32 %v3608_v62, %v5795_v27 }
 0x478   :  { %v3913_v54 = vpop.f32.mrf.mxu0  ;;  %v3610_v0 = vpop.f32.mrf.mxu1 }
 0x479   :  { %v3914_v18 = vadd.f32 %v3913_v54, %v3609_v6 }
 0x47a   :  { %v3915_v49 = vpop.f32.mrf.mxu0  ;;  %v3613_v34 = vpop.f32.mrf.mxu1 }
 0x47b   :  { %3969 = vst.msk [vmem:[%s6042_s2 + $0x170] sm:$0xff] %vm3922_vm0, %v3914_v18  ;;  %v3614_v57 = vadd.f32 %v3613_v34, %v5798_v45 }
 0x47c   :  { %v3918_v50 = vpop.f32.mrf.mxu0  ;;  %v3615_v3 = vpop.f32.mrf.mxu1 }
 0x47d   :  { %v3919_v53 = vadd.f32 %v3918_v50, %v3614_v57 }
 0x47e   :  { %v3920_v11 = vpop.f32.mrf.mxu0 }
 0x47f   :  { %3970 = vst.msk [vmem:[%s6042_s2 + $0x178] sm:$0xff] %vm3922_vm0, %v3919_v53 }
 0x480   :  { %3975 = vsyncpa [#allocation3], 1 }

</bundles_post_ra>
